<compile_context>
chip_gen: v5e
topology: v5e:2x2
jax: 0.10.0
libtpu: 0.0.40
codegen_flags: <defaults>
</compile_context>

<pallas_src>
import functools

import jax
import jax.numpy as jnp
from jax.experimental import pallas as pl
from jax.experimental.pallas import tpu as pltpu


C_PAD = 128      # every channel dimension is zero-padded to the 128-lane width
NC_PAD = 128     # logits padded to a lane-dense width (sliced back to num_classes outside)

BLOCKS_CFG = (
    dict(in_channels=64,  out_channels=128, kernel_size=11, padding=5,  dilation=1, residual=False),
    dict(in_channels=128, out_channels=64,  kernel_size=13, padding=6,  dilation=1, residual=True),
    dict(in_channels=64,  out_channels=64,  kernel_size=15, padding=7,  dilation=1, residual=True),
    dict(in_channels=64,  out_channels=64,  kernel_size=17, padding=8,  dilation=1, residual=True),
    dict(in_channels=64,  out_channels=128, kernel_size=29, padding=28, dilation=2, residual=False),
    dict(in_channels=128, out_channels=128, kernel_size=1,  padding=0,  dilation=1, residual=False),
)


# -----------------------------------------------------------------------------
# MFCC preprocessor (plain JAX glue — mirrors torchaudio.transforms.MFCC defaults)
# -----------------------------------------------------------------------------
# TODO(synk): jnp.fft.rfft is used for the STFT; FFT has no clean Pallas equivalent.

def _hz_to_mel(f):
    return 2595.0 * jnp.log10(1.0 + f / 700.0)


def _mel_to_hz(m):
    return 700.0 * (10.0 ** (m / 2595.0) - 1.0)


def _melscale_fbanks(n_freqs, f_min, f_max, n_mels, sample_rate):
    all_freqs = jnp.linspace(0.0, sample_rate // 2, n_freqs)
    m_pts = jnp.linspace(_hz_to_mel(jnp.float32(f_min)),
                         _hz_to_mel(jnp.float32(f_max)), n_mels + 2)
    f_pts = _mel_to_hz(m_pts)
    f_diff = f_pts[1:] - f_pts[:-1]
    slopes = f_pts[None, :] - all_freqs[:, None]          # (n_freqs, n_mels+2)
    down = -slopes[:, :-2] / f_diff[:-1]
    up = slopes[:, 2:] / f_diff[1:]
    fb = jnp.maximum(0.0, jnp.minimum(down, up))          # (n_freqs, n_mels)
    return fb.astype(jnp.float32)


def _create_dct(n_mfcc, n_mels):
    n = jnp.arange(n_mels, dtype=jnp.float32)
    k = jnp.arange(n_mfcc, dtype=jnp.float32)
    dct = jnp.cos(jnp.pi / n_mels * (n[:, None] + 0.5) * k[None, :]) * 2.0
    dct = dct.at[:, 0].multiply(1.0 / jnp.sqrt(2.0))
    dct = dct * jnp.sqrt(1.0 / (2.0 * n_mels))
    return dct                                             # (n_mels, n_mfcc), norm="ortho"


def mfcc_preprocessor(x, length, *, sample_rate=16000, n_mels=64, n_mfcc=64,
                      n_fft=512, hop_length=160, f_min=0.0, f_max=8000.0):
    """x: (B, L) float32 audio -> (B, T, n_mfcc) float32 time-major features."""
    B, L = x.shape
    pad = n_fft // 2
    xp = jnp.pad(x, ((0, 0), (pad, pad)), mode="reflect")    # center=True
    num_frames = 1 + L // hop_length
    idx = (jnp.arange(num_frames)[:, None] * hop_length
           + jnp.arange(n_fft)[None, :])
    frames = xp[:, idx]                                       # (B, T, n_fft)
    n = jnp.arange(n_fft, dtype=jnp.float32)
    window = 0.5 - 0.5 * jnp.cos(2.0 * jnp.pi * n / n_fft)    # periodic Hann
    spec = jnp.fft.rfft(frames * window, axis=-1)
    power = (jnp.abs(spec) ** 2).astype(jnp.float32)          # (B, T, n_fft//2+1)
    fb = _melscale_fbanks(n_fft // 2 + 1, f_min, f_max, n_mels, sample_rate)
    mel = jnp.einsum("btn,nm->btm", power, fb)                # (B, T, n_mels)
    db = 10.0 * jnp.log10(jnp.maximum(mel, 1e-10))
    # torchaudio's AmplitudeToDB(top_db=80) packs a (B, n_mels, T) input as "channels",
    # so the clamp reference max is taken over the WHOLE tensor.
    db = jnp.maximum(db, jnp.max(db) - 80.0)
    dct = _create_dct(n_mfcc, n_mels)
    feats = jnp.einsum("btm,mk->btk", db, dct)                # (B, T, n_mfcc)
    # The spec's AudioToMFCCPreprocessor returns `length` unchanged (sample counts).
    return feats.astype(jnp.float32), length


# -----------------------------------------------------------------------------
# Fused encoder (6 JasperBlocks) + decoder kernel
# -----------------------------------------------------------------------------

def _fused_encdec_kernel(len_ref, x_ref, *refs, block_cfgs):
    """One batch item end-to-end: 6 JasperBlocks -> mean-pool -> Linear.

    len_ref : SMEM (B,) int32           scalar-prefetched lengths (PyTorch sample counts)
    x_ref   : VMEM (1, T, C) f32        MFCC features, channels zero-padded to C=128
    refs    : per block [dw (K,C) f32, pw (C,C) bf16, bn_scale (1,C) f32, bn_bias (1,C) f32,
                          (res_w (C,C) bf16, res_scale (1,C) f32, res_bias (1,C) f32)],
              then dec_w (C,NC) bf16, dec_b (1,NC) f32, o_ref (1,1,NC) f32, pad scratch.
    """
    o_ref, pad_ref = refs[-2], refs[-1]
    wrefs = iter(refs[:-2])

    T, C = x_ref.shape[1], x_ref.shape[2]
    b = pl.program_id(0)
    cur_len = len_ref[b]
    t_idx = jax.lax.broadcasted_iota(jnp.int32, (T, C), 0)

    x = x_ref[0]                                             # (T, C) f32

    for cfg in block_cfgs:
        K, pd, dil = cfg["kernel_size"], cfg["padding"], cfg["dilation"]
        dw_ref, pw_ref, bns_ref, bnb_ref = (next(wrefs) for _ in range(4))
        if cfg["residual"]:
            rw_ref, rs_ref, rb_ref = (next(wrefs) for _ in range(3))

        # ---- MaskedConv1d #1: depthwise, dilated, groups=C_in, bias=False ----
        # (length update happens before the mask, as in the PyTorch reference; stride == 1)
        new_len = cur_len + 2 * pd - dil * (K - 1)
        mask = (t_idx < new_len).astype(jnp.float32)         # (T, C)
        x_dw = x * mask

        if K == 1:
            dw_out = x_dw * dw_ref[...]                      # (T, C) * (1, C)
        else:
            tp = T + 2 * pd
            zpad = jnp.zeros((pd, C), jnp.float32)
            pad_ref[0:pd, :] = zpad                          # zero only the pad margins
            pad_ref[pd + T:tp, :] = zpad
            pad_ref[pd:pd + T, :] = x_dw
            acc = jnp.zeros((T, C), jnp.float32)
            for k in range(K):                               # unrolled taps, lane-dense loads
                off = k * dil
                acc = acc + pad_ref[off:off + T, :] * dw_ref[k:k + 1, :]
            dw_out = acc

        # ---- MaskedConv1d #2: pointwise 1x1 (length unchanged) on the MXU + BatchNorm ----
        dw_out = dw_out * mask
        y = jnp.dot(dw_out.astype(jnp.bfloat16), pw_ref[...],
                    preferred_element_type=jnp.float32)      # (T, C)
        y = y * bns_ref[...] + bnb_ref[...]                  # folded eval-mode BN

        # ---- residual branch: masked pointwise conv + BatchNorm on the block input ----
        if cfg["residual"]:
            rmask = (t_idx < cur_len).astype(jnp.float32)
            r = jnp.dot((x * rmask).astype(jnp.bfloat16), rw_ref[...],
                        preferred_element_type=jnp.float32)
            y = y + r * rs_ref[...] + rb_ref[...]

        # ---- ReLU (Dropout p=0.0 is identity) ----
        x = jnp.maximum(y, 0.0)
        cur_len = new_len

    # ---- decoder: AdaptiveAvgPool1d(1) over time + Linear ----
    dec_w_ref, dec_b_ref = next(wrefs), next(wrefs)
    pooled = jnp.mean(x, axis=0, keepdims=True)              # (1, C) sublane reduce
    logits = jnp.dot(pooled.astype(jnp.bfloat16), dec_w_ref[...],
                     preferred_element_type=jnp.float32) + dec_b_ref[...]
    o_ref[0] = logits                                        # lane-dense (1, 128) store


def _fused_encoder_decoder(feats, length, packed):
    """feats: (B, T, C_PAD) f32, length: (B,) int32 -> (B, NC_PAD) f32 logits."""
    B, T, C = feats.shape
    tp_max = T + 2 * max(cfg["padding"] for cfg in BLOCKS_CFG)

    in_specs = [pl.BlockSpec((1, T, C), lambda b, l: (b, 0, 0))]
    args = [feats]
    for cfg, blk in zip(BLOCKS_CFG, packed["blocks"]):
        names = ["dw_w", "pw_w", "bn_scale", "bn_bias"]
        if cfg["residual"]:
            names += ["res_w", "res_scale", "res_bias"]
        for name in names:
            w = blk[name]
            args.append(w)
            in_specs.append(pl.BlockSpec(w.shape, lambda b, l: (0, 0)))
    for name in ("dec_w", "dec_b"):
        w = packed[name]
        args.append(w)
        in_specs.append(pl.BlockSpec(w.shape, lambda b, l: (0, 0)))

    kernel = functools.partial(_fused_encdec_kernel, block_cfgs=BLOCKS_CFG)

    out = pl.pallas_call(
        kernel,
        out_shape=jax.ShapeDtypeStruct((B, 1, NC_PAD), jnp.float32),
        grid_spec=pltpu.PrefetchScalarGridSpec(
            num_scalar_prefetch=1,
            grid=(B,),
            in_specs=in_specs,
            out_specs=pl.BlockSpec((1, 1, NC_PAD), lambda b, l: (b, 0, 0)),
            scratch_shapes=[pltpu.VMEM((tp_max, C), jnp.float32)],
        ),
        compiler_params=pltpu.CompilerParams(dimension_semantics=("parallel",)),
    )(length, *args)
    return out[:, 0, :]


# -----------------------------------------------------------------------------
# Parameter construction (deterministic, synthetic) + packing for the kernel
# -----------------------------------------------------------------------------

def _folded_bn(key, c, eps=1e-5):
    k1, k2, k3, k4 = jax.random.split(key, 4)
    gamma = 1.0 + 0.05 * jax.random.normal(k1, (c,), jnp.float32)
    beta = 0.05 * jax.random.normal(k2, (c,), jnp.float32)
    run_mean = 0.01 * jax.random.normal(k3, (c,), jnp.float32)
    run_var = 1.0 + 0.1 * jnp.abs(jax.random.normal(k4, (c,), jnp.float32))
    scale = gamma / jnp.sqrt(run_var + eps)                 # eval-mode BN fold
    bias = beta - run_mean * scale
    return scale, bias


def init_params(key, num_classes):
    """Deterministic synthetic parameters in PyTorch layouts (all f32)."""
    params = {"blocks": []}
    for cfg in BLOCKS_CFG:
        key, kd, kp, kb, kr, krb = jax.random.split(key, 6)
        cin, cout, K = cfg["in_channels"], cfg["out_channels"], cfg["kernel_size"]
        blk = {
            # depthwise Conv1d weight (cin, 1, K) -> (cin, K)
            "dw_w": jax.random.normal(kd, (cin, K), jnp.float32) / jnp.sqrt(K),
            # pointwise Conv1d weight (cout, cin, 1) -> (cout, cin)
            "pw_w": jax.random.normal(kp, (cout, cin), jnp.float32) / jnp.sqrt(cin),
        }
        blk["bn_scale"], blk["bn_bias"] = _folded_bn(kb, cout)
        if cfg["residual"]:
            blk["res_w"] = jax.random.normal(kr, (cout, cin), jnp.float32) / jnp.sqrt(cin)
            blk["res_scale"], blk["res_bias"] = _folded_bn(krb, cout)
        params["blocks"].append(blk)
    key, kw, kbb = jax.random.split(key, 3)
    params["dec_w"] = jax.random.normal(kw, (num_classes, 128), jnp.float32) / jnp.sqrt(128.0)
    params["dec_b"] = 0.01 * jax.random.normal(kbb, (num_classes,), jnp.float32)
    return params


def pack_params(params):
    """Transpose / zero-pad to 128 lanes / cast MXU weights to bf16 (done once)."""
    packed = {"blocks": []}
    for cfg, blk in zip(BLOCKS_CFG, params["blocks"]):
        cin, cout, K = cfg["in_channels"], cfg["out_channels"], cfg["kernel_size"]
        pk = {
            "dw_w": jnp.zeros((K, C_PAD), jnp.float32).at[:, :cin].set(blk["dw_w"].T),
            "pw_w": (jnp.zeros((C_PAD, C_PAD), jnp.float32)
                     .at[:cin, :cout].set(blk["pw_w"].T).astype(jnp.bfloat16)),
            "bn_scale": jnp.zeros((1, C_PAD), jnp.float32).at[0, :cout].set(blk["bn_scale"]),
            "bn_bias": jnp.zeros((1, C_PAD), jnp.float32).at[0, :cout].set(blk["bn_bias"]),
        }
        if cfg["residual"]:
            pk["res_w"] = (jnp.zeros((C_PAD, C_PAD), jnp.float32)
                           .at[:cin, :cout].set(blk["res_w"].T).astype(jnp.bfloat16))
            pk["res_scale"] = jnp.zeros((1, C_PAD), jnp.float32).at[0, :cout].set(blk["res_scale"])
            pk["res_bias"] = jnp.zeros((1, C_PAD), jnp.float32).at[0, :cout].set(blk["res_bias"])
        packed["blocks"].append(pk)
    nc = params["dec_b"].shape[0]
    packed["dec_w"] = (jnp.zeros((C_PAD, NC_PAD), jnp.float32)
                       .at[:, :nc].set(params["dec_w"].T).astype(jnp.bfloat16))
    packed["dec_b"] = jnp.zeros((1, NC_PAD), jnp.float32).at[0, :nc].set(params["dec_b"])
    return packed


# -----------------------------------------------------------------------------
# Full model forward (y=None inference path -> logits)
# -----------------------------------------------------------------------------
# TODO(synk): CrossEntropyLoss / TopK accuracy (the y is not None branch) are
#             training-only metrics and are not implemented here.

@functools.partial(jax.jit, static_argnames=("num_classes",))
def enc_dec_classification_forward(packed, x_audio, length, *, num_classes):
    feats, length = mfcc_preprocessor(x_audio, length)        # (B, T, 64)
    feats = jnp.pad(feats, ((0, 0), (0, 0), (0, C_PAD - feats.shape[-1])))
    logits = _fused_encoder_decoder(feats, length.astype(jnp.int32), packed)
    return logits[:, :num_classes]


@functools.partial(jax.jit, static_argnames=("num_classes",))
def predict(packed, x_audio, length, *, num_classes):
    logits = enc_dec_classification_forward(packed, x_audio, length, num_classes=num_classes)
    return jnp.argmax(logits, axis=-1)


# -----------------------------------------------------------------------------
# Main
# -----------------------------------------------------------------------------

if __name__ == "__main__":
    key = jax.random.PRNGKey(0)
    k_params, k_audio = jax.random.split(key)

    num_classes = 10
    batch = 2
    num_samples = 2560          # -> 1 + 2560 // 160 = 17 MFCC frames

    params = init_params(k_params, num_classes)
    packed = pack_params(params)

    x_audio = 0.1 * jax.random.normal(k_audio, (batch, num_samples), jnp.float32)
    # PyTorch semantics: `length` is the valid-sample count; the spec's preprocessor
    # passes it through unchanged and MaskedConv1d compares it against time indices.
    length = jnp.array([2560, 2400], dtype=jnp.int32)

    logits = enc_dec_classification_forward(packed, x_audio, length, num_classes=num_classes)
    logits = jax.block_until_ready(logits)
    preds = jax.block_until_ready(predict(packed, x_audio, length, num_classes=num_classes))

    assert logits.shape == (batch, num_classes)
    assert preds.shape == (batch,)
    print("KERNEL_OK")
</pallas_src>

<mosaic_0001>
module attributes {stable_mosaic.version = 11 : i64} {
  func.func @_fused_encdec_kernel(%arg0: i32, %arg1: memref<2xi32, #tpu.memory_space<smem>>, %arg2: memref<1x17x128xf32, #tpu.memory_space<vmem>>, %arg3: memref<11x128xf32, #tpu.memory_space<vmem>>, %arg4: memref<128x128xbf16, #tpu.memory_space<vmem>>, %arg5: memref<1x128xf32, #tpu.memory_space<vmem>>, %arg6: memref<1x128xf32, #tpu.memory_space<vmem>>, %arg7: memref<13x128xf32, #tpu.memory_space<vmem>>, %arg8: memref<128x128xbf16, #tpu.memory_space<vmem>>, %arg9: memref<1x128xf32, #tpu.memory_space<vmem>>, %arg10: memref<1x128xf32, #tpu.memory_space<vmem>>, %arg11: memref<128x128xbf16, #tpu.memory_space<vmem>>, %arg12: memref<1x128xf32, #tpu.memory_space<vmem>>, %arg13: memref<1x128xf32, #tpu.memory_space<vmem>>, %arg14: memref<15x128xf32, #tpu.memory_space<vmem>>, %arg15: memref<128x128xbf16, #tpu.memory_space<vmem>>, %arg16: memref<1x128xf32, #tpu.memory_space<vmem>>, %arg17: memref<1x128xf32, #tpu.memory_space<vmem>>, %arg18: memref<128x128xbf16, #tpu.memory_space<vmem>>, %arg19: memref<1x128xf32, #tpu.memory_space<vmem>>, %arg20: memref<1x128xf32, #tpu.memory_space<vmem>>, %arg21: memref<17x128xf32, #tpu.memory_space<vmem>>, %arg22: memref<128x128xbf16, #tpu.memory_space<vmem>>, %arg23: memref<1x128xf32, #tpu.memory_space<vmem>>, %arg24: memref<1x128xf32, #tpu.memory_space<vmem>>, %arg25: memref<128x128xbf16, #tpu.memory_space<vmem>>, %arg26: memref<1x128xf32, #tpu.memory_space<vmem>>, %arg27: memref<1x128xf32, #tpu.memory_space<vmem>>, %arg28: memref<29x128xf32, #tpu.memory_space<vmem>>, %arg29: memref<128x128xbf16, #tpu.memory_space<vmem>>, %arg30: memref<1x128xf32, #tpu.memory_space<vmem>>, %arg31: memref<1x128xf32, #tpu.memory_space<vmem>>, %arg32: memref<1x128xf32, #tpu.memory_space<vmem>>, %arg33: memref<128x128xbf16, #tpu.memory_space<vmem>>, %arg34: memref<1x128xf32, #tpu.memory_space<vmem>>, %arg35: memref<1x128xf32, #tpu.memory_space<vmem>>, %arg36: memref<128x128xbf16, #tpu.memory_space<vmem>>, %arg37: memref<1x128xf32, #tpu.memory_space<vmem>>, %arg38: memref<1x1x128xf32, #tpu.memory_space<vmem>>, %arg39: memref<73x128xf32, #tpu.memory_space<vmem>>) attributes {dimension_semantics = [#tpu.dimension_semantics<parallel>], iteration_bounds = array<i64: 2>, scalar_prefetch = 1 : i64, scratch_operands = 1 : i64, tpu.core_type = #tpu.core_type<tc>, window_params = [{transform_indices = @transform_0, window_bounds = array<i64: 1, 17, 128>}, {pipeline_mode = #tpu.pipeline_mode<synchronous>, transform_indices = @transform_1, window_bounds = array<i64: 11, 128>}, {pipeline_mode = #tpu.pipeline_mode<synchronous>, transform_indices = @transform_2, window_bounds = array<i64: 128, 128>}, {pipeline_mode = #tpu.pipeline_mode<synchronous>, transform_indices = @transform_3, window_bounds = array<i64: 1, 128>}, {pipeline_mode = #tpu.pipeline_mode<synchronous>, transform_indices = @transform_4, window_bounds = array<i64: 1, 128>}, {pipeline_mode = #tpu.pipeline_mode<synchronous>, transform_indices = @transform_5, window_bounds = array<i64: 13, 128>}, {pipeline_mode = #tpu.pipeline_mode<synchronous>, transform_indices = @transform_6, window_bounds = array<i64: 128, 128>}, {pipeline_mode = #tpu.pipeline_mode<synchronous>, transform_indices = @transform_7, window_bounds = array<i64: 1, 128>}, {pipeline_mode = #tpu.pipeline_mode<synchronous>, transform_indices = @transform_8, window_bounds = array<i64: 1, 128>}, {pipeline_mode = #tpu.pipeline_mode<synchronous>, transform_indices = @transform_9, window_bounds = array<i64: 128, 128>}, {pipeline_mode = #tpu.pipeline_mode<synchronous>, transform_indices = @transform_10, window_bounds = array<i64: 1, 128>}, {pipeline_mode = #tpu.pipeline_mode<synchronous>, transform_indices = @transform_11, window_bounds = array<i64: 1, 128>}, {pipeline_mode = #tpu.pipeline_mode<synchronous>, transform_indices = @transform_12, window_bounds = array<i64: 15, 128>}, {pipeline_mode = #tpu.pipeline_mode<synchronous>, transform_indices = @transform_13, window_bounds = array<i64: 128, 128>}, {pipeline_mode = #tpu.pipeline_mode<synchronous>, transform_indices = @transform_14, window_bounds = array<i64: 1, 128>}, {pipeline_mode = #tpu.pipeline_mode<synchronous>, transform_indices = @transform_15, window_bounds = array<i64: 1, 128>}, {pipeline_mode = #tpu.pipeline_mode<synchronous>, transform_indices = @transform_16, window_bounds = array<i64: 128, 128>}, {pipeline_mode = #tpu.pipeline_mode<synchronous>, transform_indices = @transform_17, window_bounds = array<i64: 1, 128>}, {pipeline_mode = #tpu.pipeline_mode<synchronous>, transform_indices = @transform_18, window_bounds = array<i64: 1, 128>}, {pipeline_mode = #tpu.pipeline_mode<synchronous>, transform_indices = @transform_19, window_bounds = array<i64: 17, 128>}, {pipeline_mode = #tpu.pipeline_mode<synchronous>, transform_indices = @transform_20, window_bounds = array<i64: 128, 128>}, {pipeline_mode = #tpu.pipeline_mode<synchronous>, transform_indices = @transform_21, window_bounds = array<i64: 1, 128>}, {pipeline_mode = #tpu.pipeline_mode<synchronous>, transform_indices = @transform_22, window_bounds = array<i64: 1, 128>}, {pipeline_mode = #tpu.pipeline_mode<synchronous>, transform_indices = @transform_23, window_bounds = array<i64: 128, 128>}, {pipeline_mode = #tpu.pipeline_mode<synchronous>, transform_indices = @transform_24, window_bounds = array<i64: 1, 128>}, {pipeline_mode = #tpu.pipeline_mode<synchronous>, transform_indices = @transform_25, window_bounds = array<i64: 1, 128>}, {pipeline_mode = #tpu.pipeline_mode<synchronous>, transform_indices = @transform_26, window_bounds = array<i64: 29, 128>}, {pipeline_mode = #tpu.pipeline_mode<synchronous>, transform_indices = @transform_27, window_bounds = array<i64: 128, 128>}, {pipeline_mode = #tpu.pipeline_mode<synchronous>, transform_indices = @transform_28, window_bounds = array<i64: 1, 128>}, {pipeline_mode = #tpu.pipeline_mode<synchronous>, transform_indices = @transform_29, window_bounds = array<i64: 1, 128>}, {pipeline_mode = #tpu.pipeline_mode<synchronous>, transform_indices = @transform_30, window_bounds = array<i64: 1, 128>}, {pipeline_mode = #tpu.pipeline_mode<synchronous>, transform_indices = @transform_31, window_bounds = array<i64: 128, 128>}, {pipeline_mode = #tpu.pipeline_mode<synchronous>, transform_indices = @transform_32, window_bounds = array<i64: 1, 128>}, {pipeline_mode = #tpu.pipeline_mode<synchronous>, transform_indices = @transform_33, window_bounds = array<i64: 1, 128>}, {pipeline_mode = #tpu.pipeline_mode<synchronous>, transform_indices = @transform_34, window_bounds = array<i64: 128, 128>}, {pipeline_mode = #tpu.pipeline_mode<synchronous>, transform_indices = @transform_35, window_bounds = array<i64: 1, 128>}, {transform_indices = @transform_36, window_bounds = array<i64: 1, 1, 128>}]} {
    %0 = arith.index_cast %arg0 : i32 to index
    %1 = memref.load %arg1[%0] : memref<2xi32, #tpu.memory_space<smem>>
    %2 = tpu.iota {dimensions = array<i32: 0>} : vector<17x128xi32>
    %c0 = arith.constant 0 : index
    %c0_0 = arith.constant 0 : index
    %c0_1 = arith.constant 0 : index
    %3 = vector.load %arg2[%c0, %c0_0, %c0_1] : memref<1x17x128xf32, #tpu.memory_space<vmem>>, vector<1x17x128xf32>
    %4 = vector.shape_cast %3 : vector<1x17x128xf32> to vector<17x128xf32>
    %c10_i32 = arith.constant 10 : i32
    %5 = arith.addi %1, %c10_i32 : i32
    %c10_i32_2 = arith.constant 10 : i32
    %6 = arith.subi %5, %c10_i32_2 : i32
    %7 = vector.broadcast %6 : i32 to vector<17x128xi32>
    %8 = arith.cmpi slt, %2, %7 : vector<17x128xi32>
    %9 = arith.extui %8 : vector<17x128xi1> to vector<17x128xi32>
    %10 = arith.sitofp %9 : vector<17x128xi32> to vector<17x128xf32>
    %11 = arith.mulf %4, %10 : vector<17x128xf32>
    %cst = arith.constant 0.000000e+00 : f32
    %12 = vector.broadcast %cst : f32 to vector<5x128xf32>
    %c0_3 = arith.constant 0 : index
    %c0_4 = arith.constant 0 : index
    %13 = vector.load %arg39[%c0_3, %c0_4] : memref<73x128xf32, #tpu.memory_space<vmem>>, vector<5x128xf32>
    tpu.vector_store %arg39[%c0_3, %c0_4], %12 {strides = array<i32>} : memref<73x128xf32, #tpu.memory_space<vmem>>, vector<5x128xf32>,
    %c22 = arith.constant 22 : index
    %c0_5 = arith.constant 0 : index
    %14 = vector.load %arg39[%c22, %c0_5] : memref<73x128xf32, #tpu.memory_space<vmem>>, vector<5x128xf32>
    tpu.vector_store %arg39[%c22, %c0_5], %12 {strides = array<i32>} : memref<73x128xf32, #tpu.memory_space<vmem>>, vector<5x128xf32>,
    %c5 = arith.constant 5 : index
    %c0_6 = arith.constant 0 : index
    %15 = vector.load %arg39[%c5, %c0_6] : memref<73x128xf32, #tpu.memory_space<vmem>>, vector<17x128xf32>
    tpu.vector_store %arg39[%c5, %c0_6], %11 {strides = array<i32>} : memref<73x128xf32, #tpu.memory_space<vmem>>, vector<17x128xf32>,
    %cst_7 = arith.constant 0.000000e+00 : f32
    %16 = vector.broadcast %cst_7 : f32 to vector<17x128xf32>
    %c0_8 = arith.constant 0 : index
    %c0_9 = arith.constant 0 : index
    %17 = vector.load %arg39[%c0_8, %c0_9] : memref<73x128xf32, #tpu.memory_space<vmem>>, vector<17x128xf32>
    %c0_10 = arith.constant 0 : index
    %c0_11 = arith.constant 0 : index
    %18 = vector.load %arg3[%c0_10, %c0_11] : memref<11x128xf32, #tpu.memory_space<vmem>>, vector<1x128xf32>
    %19 = vector.broadcast %18 : vector<1x128xf32> to vector<17x128xf32>
    %20 = arith.mulf %17, %19 : vector<17x128xf32>
    %21 = arith.addf %16, %20 : vector<17x128xf32>
    %c1 = arith.constant 1 : index
    %c0_12 = arith.constant 0 : index
    %22 = vector.load %arg39[%c1, %c0_12] : memref<73x128xf32, #tpu.memory_space<vmem>>, vector<17x128xf32>
    %c1_13 = arith.constant 1 : index
    %c0_14 = arith.constant 0 : index
    %23 = vector.load %arg3[%c1_13, %c0_14] : memref<11x128xf32, #tpu.memory_space<vmem>>, vector<1x128xf32>
    %24 = vector.broadcast %23 : vector<1x128xf32> to vector<17x128xf32>
    %25 = arith.mulf %22, %24 : vector<17x128xf32>
    %26 = arith.addf %21, %25 : vector<17x128xf32>
    %c2 = arith.constant 2 : index
    %c0_15 = arith.constant 0 : index
    %27 = vector.load %arg39[%c2, %c0_15] : memref<73x128xf32, #tpu.memory_space<vmem>>, vector<17x128xf32>
    %c2_16 = arith.constant 2 : index
    %c0_17 = arith.constant 0 : index
    %28 = vector.load %arg3[%c2_16, %c0_17] : memref<11x128xf32, #tpu.memory_space<vmem>>, vector<1x128xf32>
    %29 = vector.broadcast %28 : vector<1x128xf32> to vector<17x128xf32>
    %30 = arith.mulf %27, %29 : vector<17x128xf32>
    %31 = arith.addf %26, %30 : vector<17x128xf32>
    %c3 = arith.constant 3 : index
    %c0_18 = arith.constant 0 : index
    %32 = vector.load %arg39[%c3, %c0_18] : memref<73x128xf32, #tpu.memory_space<vmem>>, vector<17x128xf32>
    %c3_19 = arith.constant 3 : index
    %c0_20 = arith.constant 0 : index
    %33 = vector.load %arg3[%c3_19, %c0_20] : memref<11x128xf32, #tpu.memory_space<vmem>>, vector<1x128xf32>
    %34 = vector.broadcast %33 : vector<1x128xf32> to vector<17x128xf32>
    %35 = arith.mulf %32, %34 : vector<17x128xf32>
    %36 = arith.addf %31, %35 : vector<17x128xf32>
    %c4 = arith.constant 4 : index
    %c0_21 = arith.constant 0 : index
    %37 = vector.load %arg39[%c4, %c0_21] : memref<73x128xf32, #tpu.memory_space<vmem>>, vector<17x128xf32>
    %c4_22 = arith.constant 4 : index
    %c0_23 = arith.constant 0 : index
    %38 = vector.load %arg3[%c4_22, %c0_23] : memref<11x128xf32, #tpu.memory_space<vmem>>, vector<1x128xf32>
    %39 = vector.broadcast %38 : vector<1x128xf32> to vector<17x128xf32>
    %40 = arith.mulf %37, %39 : vector<17x128xf32>
    %41 = arith.addf %36, %40 : vector<17x128xf32>
    %c5_24 = arith.constant 5 : index
    %c0_25 = arith.constant 0 : index
    %42 = vector.load %arg39[%c5_24, %c0_25] : memref<73x128xf32, #tpu.memory_space<vmem>>, vector<17x128xf32>
    %c5_26 = arith.constant 5 : index
    %c0_27 = arith.constant 0 : index
    %43 = vector.load %arg3[%c5_26, %c0_27] : memref<11x128xf32, #tpu.memory_space<vmem>>, vector<1x128xf32>
    %44 = vector.broadcast %43 : vector<1x128xf32> to vector<17x128xf32>
    %45 = arith.mulf %42, %44 : vector<17x128xf32>
    %46 = arith.addf %41, %45 : vector<17x128xf32>
    %c6 = arith.constant 6 : index
    %c0_28 = arith.constant 0 : index
    %47 = vector.load %arg39[%c6, %c0_28] : memref<73x128xf32, #tpu.memory_space<vmem>>, vector<17x128xf32>
    %c6_29 = arith.constant 6 : index
    %c0_30 = arith.constant 0 : index
    %48 = vector.load %arg3[%c6_29, %c0_30] : memref<11x128xf32, #tpu.memory_space<vmem>>, vector<1x128xf32>
    %49 = vector.broadcast %48 : vector<1x128xf32> to vector<17x128xf32>
    %50 = arith.mulf %47, %49 : vector<17x128xf32>
    %51 = arith.addf %46, %50 : vector<17x128xf32>
    %c7 = arith.constant 7 : index
    %c0_31 = arith.constant 0 : index
    %52 = vector.load %arg39[%c7, %c0_31] : memref<73x128xf32, #tpu.memory_space<vmem>>, vector<17x128xf32>
    %c7_32 = arith.constant 7 : index
    %c0_33 = arith.constant 0 : index
    %53 = vector.load %arg3[%c7_32, %c0_33] : memref<11x128xf32, #tpu.memory_space<vmem>>, vector<1x128xf32>
    %54 = vector.broadcast %53 : vector<1x128xf32> to vector<17x128xf32>
    %55 = arith.mulf %52, %54 : vector<17x128xf32>
    %56 = arith.addf %51, %55 : vector<17x128xf32>
    %c8 = arith.constant 8 : index
    %c0_34 = arith.constant 0 : index
    %57 = vector.load %arg39[%c8, %c0_34] : memref<73x128xf32, #tpu.memory_space<vmem>>, vector<17x128xf32>
    %c8_35 = arith.constant 8 : index
    %c0_36 = arith.constant 0 : index
    %58 = vector.load %arg3[%c8_35, %c0_36] : memref<11x128xf32, #tpu.memory_space<vmem>>, vector<1x128xf32>
    %59 = vector.broadcast %58 : vector<1x128xf32> to vector<17x128xf32>
    %60 = arith.mulf %57, %59 : vector<17x128xf32>
    %61 = arith.addf %56, %60 : vector<17x128xf32>
    %c9 = arith.constant 9 : index
    %c0_37 = arith.constant 0 : index
    %62 = vector.load %arg39[%c9, %c0_37] : memref<73x128xf32, #tpu.memory_space<vmem>>, vector<17x128xf32>
    %c9_38 = arith.constant 9 : index
    %c0_39 = arith.constant 0 : index
    %63 = vector.load %arg3[%c9_38, %c0_39] : memref<11x128xf32, #tpu.memory_space<vmem>>, vector<1x128xf32>
    %64 = vector.broadcast %63 : vector<1x128xf32> to vector<17x128xf32>
    %65 = arith.mulf %62, %64 : vector<17x128xf32>
    %66 = arith.addf %61, %65 : vector<17x128xf32>
    %c10 = arith.constant 10 : index
    %c0_40 = arith.constant 0 : index
    %67 = vector.load %arg39[%c10, %c0_40] : memref<73x128xf32, #tpu.memory_space<vmem>>, vector<17x128xf32>
    %c10_41 = arith.constant 10 : index
    %c0_42 = arith.constant 0 : index
    %68 = vector.load %arg3[%c10_41, %c0_42] : memref<11x128xf32, #tpu.memory_space<vmem>>, vector<1x128xf32>
    %69 = vector.broadcast %68 : vector<1x128xf32> to vector<17x128xf32>
    %70 = arith.mulf %67, %69 : vector<17x128xf32>
    %71 = arith.addf %66, %70 : vector<17x128xf32>
    %72 = arith.mulf %71, %10 : vector<17x128xf32>
    %73 = arith.truncf %72 : vector<17x128xf32> to vector<17x128xbf16>
    %c0_43 = arith.constant 0 : index
    %c0_44 = arith.constant 0 : index
    %74 = vector.load %arg4[%c0_43, %c0_44] : memref<128x128xbf16, #tpu.memory_space<vmem>>, vector<128x128xbf16>
    %cst_45 = arith.constant dense<0.000000e+00> : vector<17x128xf32>
    %75 = tpu.matmul %73, %74, %cst_45 {dimension_numbers = #tpu.dot_dimension_numbers<[1], [0], [0], [1], [0, 0, 1, 1], [], []>} : vector<17x128xbf16>, vector<128x128xbf16>, vector<17x128xf32> -> vector<17x128xf32>
    %c0_46 = arith.constant 0 : index
    %c0_47 = arith.constant 0 : index
    %76 = vector.load %arg5[%c0_46, %c0_47] : memref<1x128xf32, #tpu.memory_space<vmem>>, vector<1x128xf32>
    %77 = vector.broadcast %76 : vector<1x128xf32> to vector<17x128xf32>
    %78 = arith.mulf %75, %77 : vector<17x128xf32>
    %c0_48 = arith.constant 0 : index
    %c0_49 = arith.constant 0 : index
    %79 = vector.load %arg6[%c0_48, %c0_49] : memref<1x128xf32, #tpu.memory_space<vmem>>, vector<1x128xf32>
    %80 = vector.broadcast %79 : vector<1x128xf32> to vector<17x128xf32>
    %81 = arith.addf %78, %80 : vector<17x128xf32>
    %cst_50 = arith.constant 0.000000e+00 : f32
    %82 = vector.broadcast %cst_50 : f32 to vector<17x128xf32>
    %83 = arith.maximumf %81, %82 : vector<17x128xf32>
    %c12_i32 = arith.constant 12 : i32
    %84 = arith.addi %6, %c12_i32 : i32
    %c12_i32_51 = arith.constant 12 : i32
    %85 = arith.subi %84, %c12_i32_51 : i32
    %86 = vector.broadcast %85 : i32 to vector<17x128xi32>
    %87 = arith.cmpi slt, %2, %86 : vector<17x128xi32>
    %88 = arith.extui %87 : vector<17x128xi1> to vector<17x128xi32>
    %89 = arith.sitofp %88 : vector<17x128xi32> to vector<17x128xf32>
    %90 = arith.mulf %83, %89 : vector<17x128xf32>
    %cst_52 = arith.constant 0.000000e+00 : f32
    %91 = vector.broadcast %cst_52 : f32 to vector<6x128xf32>
    %c0_53 = arith.constant 0 : index
    %c0_54 = arith.constant 0 : index
    %92 = vector.load %arg39[%c0_53, %c0_54] : memref<73x128xf32, #tpu.memory_space<vmem>>, vector<6x128xf32>
    tpu.vector_store %arg39[%c0_53, %c0_54], %91 {strides = array<i32>} : memref<73x128xf32, #tpu.memory_space<vmem>>, vector<6x128xf32>,
    %c23 = arith.constant 23 : index
    %c0_55 = arith.constant 0 : index
    %93 = vector.load %arg39[%c23, %c0_55] : memref<73x128xf32, #tpu.memory_space<vmem>>, vector<6x128xf32>
    tpu.vector_store %arg39[%c23, %c0_55], %91 {strides = array<i32>} : memref<73x128xf32, #tpu.memory_space<vmem>>, vector<6x128xf32>,
    %c6_56 = arith.constant 6 : index
    %c0_57 = arith.constant 0 : index
    %94 = vector.load %arg39[%c6_56, %c0_57] : memref<73x128xf32, #tpu.memory_space<vmem>>, vector<17x128xf32>
    tpu.vector_store %arg39[%c6_56, %c0_57], %90 {strides = array<i32>} : memref<73x128xf32, #tpu.memory_space<vmem>>, vector<17x128xf32>,
    %cst_58 = arith.constant 0.000000e+00 : f32
    %95 = vector.broadcast %cst_58 : f32 to vector<17x128xf32>
    %c0_59 = arith.constant 0 : index
    %c0_60 = arith.constant 0 : index
    %96 = vector.load %arg39[%c0_59, %c0_60] : memref<73x128xf32, #tpu.memory_space<vmem>>, vector<17x128xf32>
    %c0_61 = arith.constant 0 : index
    %c0_62 = arith.constant 0 : index
    %97 = vector.load %arg7[%c0_61, %c0_62] : memref<13x128xf32, #tpu.memory_space<vmem>>, vector<1x128xf32>
    %98 = vector.broadcast %97 : vector<1x128xf32> to vector<17x128xf32>
    %99 = arith.mulf %96, %98 : vector<17x128xf32>
    %100 = arith.addf %95, %99 : vector<17x128xf32>
    %c1_63 = arith.constant 1 : index
    %c0_64 = arith.constant 0 : index
    %101 = vector.load %arg39[%c1_63, %c0_64] : memref<73x128xf32, #tpu.memory_space<vmem>>, vector<17x128xf32>
    %c1_65 = arith.constant 1 : index
    %c0_66 = arith.constant 0 : index
    %102 = vector.load %arg7[%c1_65, %c0_66] : memref<13x128xf32, #tpu.memory_space<vmem>>, vector<1x128xf32>
    %103 = vector.broadcast %102 : vector<1x128xf32> to vector<17x128xf32>
    %104 = arith.mulf %101, %103 : vector<17x128xf32>
    %105 = arith.addf %100, %104 : vector<17x128xf32>
    %c2_67 = arith.constant 2 : index
    %c0_68 = arith.constant 0 : index
    %106 = vector.load %arg39[%c2_67, %c0_68] : memref<73x128xf32, #tpu.memory_space<vmem>>, vector<17x128xf32>
    %c2_69 = arith.constant 2 : index
    %c0_70 = arith.constant 0 : index
    %107 = vector.load %arg7[%c2_69, %c0_70] : memref<13x128xf32, #tpu.memory_space<vmem>>, vector<1x128xf32>
    %108 = vector.broadcast %107 : vector<1x128xf32> to vector<17x128xf32>
    %109 = arith.mulf %106, %108 : vector<17x128xf32>
    %110 = arith.addf %105, %109 : vector<17x128xf32>
    %c3_71 = arith.constant 3 : index
    %c0_72 = arith.constant 0 : index
    %111 = vector.load %arg39[%c3_71, %c0_72] : memref<73x128xf32, #tpu.memory_space<vmem>>, vector<17x128xf32>
    %c3_73 = arith.constant 3 : index
    %c0_74 = arith.constant 0 : index
    %112 = vector.load %arg7[%c3_73, %c0_74] : memref<13x128xf32, #tpu.memory_space<vmem>>, vector<1x128xf32>
    %113 = vector.broadcast %112 : vector<1x128xf32> to vector<17x128xf32>
    %114 = arith.mulf %111, %113 : vector<17x128xf32>
    %115 = arith.addf %110, %114 : vector<17x128xf32>
    %c4_75 = arith.constant 4 : index
    %c0_76 = arith.constant 0 : index
    %116 = vector.load %arg39[%c4_75, %c0_76] : memref<73x128xf32, #tpu.memory_space<vmem>>, vector<17x128xf32>
    %c4_77 = arith.constant 4 : index
    %c0_78 = arith.constant 0 : index
    %117 = vector.load %arg7[%c4_77, %c0_78] : memref<13x128xf32, #tpu.memory_space<vmem>>, vector<1x128xf32>
    %118 = vector.broadcast %117 : vector<1x128xf32> to vector<17x128xf32>
    %119 = arith.mulf %116, %118 : vector<17x128xf32>
    %120 = arith.addf %115, %119 : vector<17x128xf32>
    %c5_79 = arith.constant 5 : index
    %c0_80 = arith.constant 0 : index
    %121 = vector.load %arg39[%c5_79, %c0_80] : memref<73x128xf32, #tpu.memory_space<vmem>>, vector<17x128xf32>
    %c5_81 = arith.constant 5 : index
    %c0_82 = arith.constant 0 : index
    %122 = vector.load %arg7[%c5_81, %c0_82] : memref<13x128xf32, #tpu.memory_space<vmem>>, vector<1x128xf32>
    %123 = vector.broadcast %122 : vector<1x128xf32> to vector<17x128xf32>
    %124 = arith.mulf %121, %123 : vector<17x128xf32>
    %125 = arith.addf %120, %124 : vector<17x128xf32>
    %c6_83 = arith.constant 6 : index
    %c0_84 = arith.constant 0 : index
    %126 = vector.load %arg39[%c6_83, %c0_84] : memref<73x128xf32, #tpu.memory_space<vmem>>, vector<17x128xf32>
    %c6_85 = arith.constant 6 : index
    %c0_86 = arith.constant 0 : index
    %127 = vector.load %arg7[%c6_85, %c0_86] : memref<13x128xf32, #tpu.memory_space<vmem>>, vector<1x128xf32>
    %128 = vector.broadcast %127 : vector<1x128xf32> to vector<17x128xf32>
    %129 = arith.mulf %126, %128 : vector<17x128xf32>
    %130 = arith.addf %125, %129 : vector<17x128xf32>
    %c7_87 = arith.constant 7 : index
    %c0_88 = arith.constant 0 : index
    %131 = vector.load %arg39[%c7_87, %c0_88] : memref<73x128xf32, #tpu.memory_space<vmem>>, vector<17x128xf32>
    %c7_89 = arith.constant 7 : index
    %c0_90 = arith.constant 0 : index
    %132 = vector.load %arg7[%c7_89, %c0_90] : memref<13x128xf32, #tpu.memory_space<vmem>>, vector<1x128xf32>
    %133 = vector.broadcast %132 : vector<1x128xf32> to vector<17x128xf32>
    %134 = arith.mulf %131, %133 : vector<17x128xf32>
    %135 = arith.addf %130, %134 : vector<17x128xf32>
    %c8_91 = arith.constant 8 : index
    %c0_92 = arith.constant 0 : index
    %136 = vector.load %arg39[%c8_91, %c0_92] : memref<73x128xf32, #tpu.memory_space<vmem>>, vector<17x128xf32>
    %c8_93 = arith.constant 8 : index
    %c0_94 = arith.constant 0 : index
    %137 = vector.load %arg7[%c8_93, %c0_94] : memref<13x128xf32, #tpu.memory_space<vmem>>, vector<1x128xf32>
    %138 = vector.broadcast %137 : vector<1x128xf32> to vector<17x128xf32>
    %139 = arith.mulf %136, %138 : vector<17x128xf32>
    %140 = arith.addf %135, %139 : vector<17x128xf32>
    %c9_95 = arith.constant 9 : index
    %c0_96 = arith.constant 0 : index
    %141 = vector.load %arg39[%c9_95, %c0_96] : memref<73x128xf32, #tpu.memory_space<vmem>>, vector<17x128xf32>
    %c9_97 = arith.constant 9 : index
    %c0_98 = arith.constant 0 : index
    %142 = vector.load %arg7[%c9_97, %c0_98] : memref<13x128xf32, #tpu.memory_space<vmem>>, vector<1x128xf32>
    %143 = vector.broadcast %142 : vector<1x128xf32> to vector<17x128xf32>
    %144 = arith.mulf %141, %143 : vector<17x128xf32>
    %145 = arith.addf %140, %144 : vector<17x128xf32>
    %c10_99 = arith.constant 10 : index
    %c0_100 = arith.constant 0 : index
    %146 = vector.load %arg39[%c10_99, %c0_100] : memref<73x128xf32, #tpu.memory_space<vmem>>, vector<17x128xf32>
    %c10_101 = arith.constant 10 : index
    %c0_102 = arith.constant 0 : index
    %147 = vector.load %arg7[%c10_101, %c0_102] : memref<13x128xf32, #tpu.memory_space<vmem>>, vector<1x128xf32>
    %148 = vector.broadcast %147 : vector<1x128xf32> to vector<17x128xf32>
    %149 = arith.mulf %146, %148 : vector<17x128xf32>
    %150 = arith.addf %145, %149 : vector<17x128xf32>
    %c11 = arith.constant 11 : index
    %c0_103 = arith.constant 0 : index
    %151 = vector.load %arg39[%c11, %c0_103] : memref<73x128xf32, #tpu.memory_space<vmem>>, vector<17x128xf32>
    %c11_104 = arith.constant 11 : index
    %c0_105 = arith.constant 0 : index
    %152 = vector.load %arg7[%c11_104, %c0_105] : memref<13x128xf32, #tpu.memory_space<vmem>>, vector<1x128xf32>
    %153 = vector.broadcast %152 : vector<1x128xf32> to vector<17x128xf32>
    %154 = arith.mulf %151, %153 : vector<17x128xf32>
    %155 = arith.addf %150, %154 : vector<17x128xf32>
    %c12 = arith.constant 12 : index
    %c0_106 = arith.constant 0 : index
    %156 = vector.load %arg39[%c12, %c0_106] : memref<73x128xf32, #tpu.memory_space<vmem>>, vector<17x128xf32>
    %c12_107 = arith.constant 12 : index
    %c0_108 = arith.constant 0 : index
    %157 = vector.load %arg7[%c12_107, %c0_108] : memref<13x128xf32, #tpu.memory_space<vmem>>, vector<1x128xf32>
    %158 = vector.broadcast %157 : vector<1x128xf32> to vector<17x128xf32>
    %159 = arith.mulf %156, %158 : vector<17x128xf32>
    %160 = arith.addf %155, %159 : vector<17x128xf32>
    %161 = arith.mulf %160, %89 : vector<17x128xf32>
    %162 = arith.truncf %161 : vector<17x128xf32> to vector<17x128xbf16>
    %c0_109 = arith.constant 0 : index
    %c0_110 = arith.constant 0 : index
    %163 = vector.load %arg8[%c0_109, %c0_110] : memref<128x128xbf16, #tpu.memory_space<vmem>>, vector<128x128xbf16>
    %cst_111 = arith.constant dense<0.000000e+00> : vector<17x128xf32>
    %164 = tpu.matmul %162, %163, %cst_111 {dimension_numbers = #tpu.dot_dimension_numbers<[1], [0], [0], [1], [0, 0, 1, 1], [], []>} : vector<17x128xbf16>, vector<128x128xbf16>, vector<17x128xf32> -> vector<17x128xf32>
    %c0_112 = arith.constant 0 : index
    %c0_113 = arith.constant 0 : index
    %165 = vector.load %arg9[%c0_112, %c0_113] : memref<1x128xf32, #tpu.memory_space<vmem>>, vector<1x128xf32>
    %166 = vector.broadcast %165 : vector<1x128xf32> to vector<17x128xf32>
    %167 = arith.mulf %164, %166 : vector<17x128xf32>
    %c0_114 = arith.constant 0 : index
    %c0_115 = arith.constant 0 : index
    %168 = vector.load %arg10[%c0_114, %c0_115] : memref<1x128xf32, #tpu.memory_space<vmem>>, vector<1x128xf32>
    %169 = vector.broadcast %168 : vector<1x128xf32> to vector<17x128xf32>
    %170 = arith.addf %167, %169 : vector<17x128xf32>
    %171 = vector.broadcast %6 : i32 to vector<17x128xi32>
    %172 = arith.cmpi slt, %2, %171 : vector<17x128xi32>
    %173 = arith.extui %172 : vector<17x128xi1> to vector<17x128xi32>
    %174 = arith.sitofp %173 : vector<17x128xi32> to vector<17x128xf32>
    %175 = arith.mulf %83, %174 : vector<17x128xf32>
    %176 = arith.truncf %175 : vector<17x128xf32> to vector<17x128xbf16>
    %c0_116 = arith.constant 0 : index
    %c0_117 = arith.constant 0 : index
    %177 = vector.load %arg11[%c0_116, %c0_117] : memref<128x128xbf16, #tpu.memory_space<vmem>>, vector<128x128xbf16>
    %cst_118 = arith.constant dense<0.000000e+00> : vector<17x128xf32>
    %178 = tpu.matmul %176, %177, %cst_118 {dimension_numbers = #tpu.dot_dimension_numbers<[1], [0], [0], [1], [0, 0, 1, 1], [], []>} : vector<17x128xbf16>, vector<128x128xbf16>, vector<17x128xf32> -> vector<17x128xf32>
    %c0_119 = arith.constant 0 : index
    %c0_120 = arith.constant 0 : index
    %179 = vector.load %arg12[%c0_119, %c0_120] : memref<1x128xf32, #tpu.memory_space<vmem>>, vector<1x128xf32>
    %180 = vector.broadcast %179 : vector<1x128xf32> to vector<17x128xf32>
    %181 = arith.mulf %178, %180 : vector<17x128xf32>
    %182 = arith.addf %170, %181 : vector<17x128xf32>
    %c0_121 = arith.constant 0 : index
    %c0_122 = arith.constant 0 : index
    %183 = vector.load %arg13[%c0_121, %c0_122] : memref<1x128xf32, #tpu.memory_space<vmem>>, vector<1x128xf32>
    %184 = vector.broadcast %183 : vector<1x128xf32> to vector<17x128xf32>
    %185 = arith.addf %182, %184 : vector<17x128xf32>
    %cst_123 = arith.constant 0.000000e+00 : f32
    %186 = vector.broadcast %cst_123 : f32 to vector<17x128xf32>
    %187 = arith.maximumf %185, %186 : vector<17x128xf32>
    %c14_i32 = arith.constant 14 : i32
    %188 = arith.addi %85, %c14_i32 : i32
    %c14_i32_124 = arith.constant 14 : i32
    %189 = arith.subi %188, %c14_i32_124 : i32
    %190 = vector.broadcast %189 : i32 to vector<17x128xi32>
    %191 = arith.cmpi slt, %2, %190 : vector<17x128xi32>
    %192 = arith.extui %191 : vector<17x128xi1> to vector<17x128xi32>
    %193 = arith.sitofp %192 : vector<17x128xi32> to vector<17x128xf32>
    %194 = arith.mulf %187, %193 : vector<17x128xf32>
    %cst_125 = arith.constant 0.000000e+00 : f32
    %195 = vector.broadcast %cst_125 : f32 to vector<7x128xf32>
    %c0_126 = arith.constant 0 : index
    %c0_127 = arith.constant 0 : index
    %196 = vector.load %arg39[%c0_126, %c0_127] : memref<73x128xf32, #tpu.memory_space<vmem>>, vector<7x128xf32>
    tpu.vector_store %arg39[%c0_126, %c0_127], %195 {strides = array<i32>} : memref<73x128xf32, #tpu.memory_space<vmem>>, vector<7x128xf32>,
    %c24 = arith.constant 24 : index
    %c0_128 = arith.constant 0 : index
    %197 = vector.load %arg39[%c24, %c0_128] : memref<73x128xf32, #tpu.memory_space<vmem>>, vector<7x128xf32>
    tpu.vector_store %arg39[%c24, %c0_128], %195 {strides = array<i32>} : memref<73x128xf32, #tpu.memory_space<vmem>>, vector<7x128xf32>,
    %c7_129 = arith.constant 7 : index
    %c0_130 = arith.constant 0 : index
    %198 = vector.load %arg39[%c7_129, %c0_130] : memref<73x128xf32, #tpu.memory_space<vmem>>, vector<17x128xf32>
    tpu.vector_store %arg39[%c7_129, %c0_130], %194 {strides = array<i32>} : memref<73x128xf32, #tpu.memory_space<vmem>>, vector<17x128xf32>,
    %cst_131 = arith.constant 0.000000e+00 : f32
    %199 = vector.broadcast %cst_131 : f32 to vector<17x128xf32>
    %c0_132 = arith.constant 0 : index
    %c0_133 = arith.constant 0 : index
    %200 = vector.load %arg39[%c0_132, %c0_133] : memref<73x128xf32, #tpu.memory_space<vmem>>, vector<17x128xf32>
    %c0_134 = arith.constant 0 : index
    %c0_135 = arith.constant 0 : index
    %201 = vector.load %arg14[%c0_134, %c0_135] : memref<15x128xf32, #tpu.memory_space<vmem>>, vector<1x128xf32>
    %202 = vector.broadcast %201 : vector<1x128xf32> to vector<17x128xf32>
    %203 = arith.mulf %200, %202 : vector<17x128xf32>
    %204 = arith.addf %199, %203 : vector<17x128xf32>
    %c1_136 = arith.constant 1 : index
    %c0_137 = arith.constant 0 : index
    %205 = vector.load %arg39[%c1_136, %c0_137] : memref<73x128xf32, #tpu.memory_space<vmem>>, vector<17x128xf32>
    %c1_138 = arith.constant 1 : index
    %c0_139 = arith.constant 0 : index
    %206 = vector.load %arg14[%c1_138, %c0_139] : memref<15x128xf32, #tpu.memory_space<vmem>>, vector<1x128xf32>
    %207 = vector.broadcast %206 : vector<1x128xf32> to vector<17x128xf32>
    %208 = arith.mulf %205, %207 : vector<17x128xf32>
    %209 = arith.addf %204, %208 : vector<17x128xf32>
    %c2_140 = arith.constant 2 : index
    %c0_141 = arith.constant 0 : index
    %210 = vector.load %arg39[%c2_140, %c0_141] : memref<73x128xf32, #tpu.memory_space<vmem>>, vector<17x128xf32>
    %c2_142 = arith.constant 2 : index
    %c0_143 = arith.constant 0 : index
    %211 = vector.load %arg14[%c2_142, %c0_143] : memref<15x128xf32, #tpu.memory_space<vmem>>, vector<1x128xf32>
    %212 = vector.broadcast %211 : vector<1x128xf32> to vector<17x128xf32>
    %213 = arith.mulf %210, %212 : vector<17x128xf32>
    %214 = arith.addf %209, %213 : vector<17x128xf32>
    %c3_144 = arith.constant 3 : index
    %c0_145 = arith.constant 0 : index
    %215 = vector.load %arg39[%c3_144, %c0_145] : memref<73x128xf32, #tpu.memory_space<vmem>>, vector<17x128xf32>
    %c3_146 = arith.constant 3 : index
    %c0_147 = arith.constant 0 : index
    %216 = vector.load %arg14[%c3_146, %c0_147] : memref<15x128xf32, #tpu.memory_space<vmem>>, vector<1x128xf32>
    %217 = vector.broadcast %216 : vector<1x128xf32> to vector<17x128xf32>
    %218 = arith.mulf %215, %217 : vector<17x128xf32>
    %219 = arith.addf %214, %218 : vector<17x128xf32>
    %c4_148 = arith.constant 4 : index
    %c0_149 = arith.constant 0 : index
    %220 = vector.load %arg39[%c4_148, %c0_149] : memref<73x128xf32, #tpu.memory_space<vmem>>, vector<17x128xf32>
    %c4_150 = arith.constant 4 : index
    %c0_151 = arith.constant 0 : index
    %221 = vector.load %arg14[%c4_150, %c0_151] : memref<15x128xf32, #tpu.memory_space<vmem>>, vector<1x128xf32>
    %222 = vector.broadcast %221 : vector<1x128xf32> to vector<17x128xf32>
    %223 = arith.mulf %220, %222 : vector<17x128xf32>
    %224 = arith.addf %219, %223 : vector<17x128xf32>
    %c5_152 = arith.constant 5 : index
    %c0_153 = arith.constant 0 : index
    %225 = vector.load %arg39[%c5_152, %c0_153] : memref<73x128xf32, #tpu.memory_space<vmem>>, vector<17x128xf32>
    %c5_154 = arith.constant 5 : index
    %c0_155 = arith.constant 0 : index
    %226 = vector.load %arg14[%c5_154, %c0_155] : memref<15x128xf32, #tpu.memory_space<vmem>>, vector<1x128xf32>
    %227 = vector.broadcast %226 : vector<1x128xf32> to vector<17x128xf32>
    %228 = arith.mulf %225, %227 : vector<17x128xf32>
    %229 = arith.addf %224, %228 : vector<17x128xf32>
    %c6_156 = arith.constant 6 : index
    %c0_157 = arith.constant 0 : index
    %230 = vector.load %arg39[%c6_156, %c0_157] : memref<73x128xf32, #tpu.memory_space<vmem>>, vector<17x128xf32>
    %c6_158 = arith.constant 6 : index
    %c0_159 = arith.constant 0 : index
    %231 = vector.load %arg14[%c6_158, %c0_159] : memref<15x128xf32, #tpu.memory_space<vmem>>, vector<1x128xf32>
    %232 = vector.broadcast %231 : vector<1x128xf32> to vector<17x128xf32>
    %233 = arith.mulf %230, %232 : vector<17x128xf32>
    %234 = arith.addf %229, %233 : vector<17x128xf32>
    %c7_160 = arith.constant 7 : index
    %c0_161 = arith.constant 0 : index
    %235 = vector.load %arg39[%c7_160, %c0_161] : memref<73x128xf32, #tpu.memory_space<vmem>>, vector<17x128xf32>
    %c7_162 = arith.constant 7 : index
    %c0_163 = arith.constant 0 : index
    %236 = vector.load %arg14[%c7_162, %c0_163] : memref<15x128xf32, #tpu.memory_space<vmem>>, vector<1x128xf32>
    %237 = vector.broadcast %236 : vector<1x128xf32> to vector<17x128xf32>
    %238 = arith.mulf %235, %237 : vector<17x128xf32>
    %239 = arith.addf %234, %238 : vector<17x128xf32>
    %c8_164 = arith.constant 8 : index
    %c0_165 = arith.constant 0 : index
    %240 = vector.load %arg39[%c8_164, %c0_165] : memref<73x128xf32, #tpu.memory_space<vmem>>, vector<17x128xf32>
    %c8_166 = arith.constant 8 : index
    %c0_167 = arith.constant 0 : index
    %241 = vector.load %arg14[%c8_166, %c0_167] : memref<15x128xf32, #tpu.memory_space<vmem>>, vector<1x128xf32>
    %242 = vector.broadcast %241 : vector<1x128xf32> to vector<17x128xf32>
    %243 = arith.mulf %240, %242 : vector<17x128xf32>
    %244 = arith.addf %239, %243 : vector<17x128xf32>
    %c9_168 = arith.constant 9 : index
    %c0_169 = arith.constant 0 : index
    %245 = vector.load %arg39[%c9_168, %c0_169] : memref<73x128xf32, #tpu.memory_space<vmem>>, vector<17x128xf32>
    %c9_170 = arith.constant 9 : index
    %c0_171 = arith.constant 0 : index
    %246 = vector.load %arg14[%c9_170, %c0_171] : memref<15x128xf32, #tpu.memory_space<vmem>>, vector<1x128xf32>
    %247 = vector.broadcast %246 : vector<1x128xf32> to vector<17x128xf32>
    %248 = arith.mulf %245, %247 : vector<17x128xf32>
    %249 = arith.addf %244, %248 : vector<17x128xf32>
    %c10_172 = arith.constant 10 : index
    %c0_173 = arith.constant 0 : index
    %250 = vector.load %arg39[%c10_172, %c0_173] : memref<73x128xf32, #tpu.memory_space<vmem>>, vector<17x128xf32>
    %c10_174 = arith.constant 10 : index
    %c0_175 = arith.constant 0 : index
    %251 = vector.load %arg14[%c10_174, %c0_175] : memref<15x128xf32, #tpu.memory_space<vmem>>, vector<1x128xf32>
    %252 = vector.broadcast %251 : vector<1x128xf32> to vector<17x128xf32>
    %253 = arith.mulf %250, %252 : vector<17x128xf32>
    %254 = arith.addf %249, %253 : vector<17x128xf32>
    %c11_176 = arith.constant 11 : index
    %c0_177 = arith.constant 0 : index
    %255 = vector.load %arg39[%c11_176, %c0_177] : memref<73x128xf32, #tpu.memory_space<vmem>>, vector<17x128xf32>
    %c11_178 = arith.constant 11 : index
    %c0_179 = arith.constant 0 : index
    %256 = vector.load %arg14[%c11_178, %c0_179] : memref<15x128xf32, #tpu.memory_space<vmem>>, vector<1x128xf32>
    %257 = vector.broadcast %256 : vector<1x128xf32> to vector<17x128xf32>
    %258 = arith.mulf %255, %257 : vector<17x128xf32>
    %259 = arith.addf %254, %258 : vector<17x128xf32>
    %c12_180 = arith.constant 12 : index
    %c0_181 = arith.constant 0 : index
    %260 = vector.load %arg39[%c12_180, %c0_181] : memref<73x128xf32, #tpu.memory_space<vmem>>, vector<17x128xf32>
    %c12_182 = arith.constant 12 : index
    %c0_183 = arith.constant 0 : index
    %261 = vector.load %arg14[%c12_182, %c0_183] : memref<15x128xf32, #tpu.memory_space<vmem>>, vector<1x128xf32>
    %262 = vector.broadcast %261 : vector<1x128xf32> to vector<17x128xf32>
    %263 = arith.mulf %260, %262 : vector<17x128xf32>
    %264 = arith.addf %259, %263 : vector<17x128xf32>
    %c13 = arith.constant 13 : index
    %c0_184 = arith.constant 0 : index
    %265 = vector.load %arg39[%c13, %c0_184] : memref<73x128xf32, #tpu.memory_space<vmem>>, vector<17x128xf32>
    %c13_185 = arith.constant 13 : index
    %c0_186 = arith.constant 0 : index
    %266 = vector.load %arg14[%c13_185, %c0_186] : memref<15x128xf32, #tpu.memory_space<vmem>>, vector<1x128xf32>
    %267 = vector.broadcast %266 : vector<1x128xf32> to vector<17x128xf32>
    %268 = arith.mulf %265, %267 : vector<17x128xf32>
    %269 = arith.addf %264, %268 : vector<17x128xf32>
    %c14 = arith.constant 14 : index
    %c0_187 = arith.constant 0 : index
    %270 = vector.load %arg39[%c14, %c0_187] : memref<73x128xf32, #tpu.memory_space<vmem>>, vector<17x128xf32>
    %c14_188 = arith.constant 14 : index
    %c0_189 = arith.constant 0 : index
    %271 = vector.load %arg14[%c14_188, %c0_189] : memref<15x128xf32, #tpu.memory_space<vmem>>, vector<1x128xf32>
    %272 = vector.broadcast %271 : vector<1x128xf32> to vector<17x128xf32>
    %273 = arith.mulf %270, %272 : vector<17x128xf32>
    %274 = arith.addf %269, %273 : vector<17x128xf32>
    %275 = arith.mulf %274, %193 : vector<17x128xf32>
    %276 = arith.truncf %275 : vector<17x128xf32> to vector<17x128xbf16>
    %c0_190 = arith.constant 0 : index
    %c0_191 = arith.constant 0 : index
    %277 = vector.load %arg15[%c0_190, %c0_191] : memref<128x128xbf16, #tpu.memory_space<vmem>>, vector<128x128xbf16>
    %cst_192 = arith.constant dense<0.000000e+00> : vector<17x128xf32>
    %278 = tpu.matmul %276, %277, %cst_192 {dimension_numbers = #tpu.dot_dimension_numbers<[1], [0], [0], [1], [0, 0, 1, 1], [], []>} : vector<17x128xbf16>, vector<128x128xbf16>, vector<17x128xf32> -> vector<17x128xf32>
    %c0_193 = arith.constant 0 : index
    %c0_194 = arith.constant 0 : index
    %279 = vector.load %arg16[%c0_193, %c0_194] : memref<1x128xf32, #tpu.memory_space<vmem>>, vector<1x128xf32>
    %280 = vector.broadcast %279 : vector<1x128xf32> to vector<17x128xf32>
    %281 = arith.mulf %278, %280 : vector<17x128xf32>
    %c0_195 = arith.constant 0 : index
    %c0_196 = arith.constant 0 : index
    %282 = vector.load %arg17[%c0_195, %c0_196] : memref<1x128xf32, #tpu.memory_space<vmem>>, vector<1x128xf32>
    %283 = vector.broadcast %282 : vector<1x128xf32> to vector<17x128xf32>
    %284 = arith.addf %281, %283 : vector<17x128xf32>
    %285 = vector.broadcast %85 : i32 to vector<17x128xi32>
    %286 = arith.cmpi slt, %2, %285 : vector<17x128xi32>
    %287 = arith.extui %286 : vector<17x128xi1> to vector<17x128xi32>
    %288 = arith.sitofp %287 : vector<17x128xi32> to vector<17x128xf32>
    %289 = arith.mulf %187, %288 : vector<17x128xf32>
    %290 = arith.truncf %289 : vector<17x128xf32> to vector<17x128xbf16>
    %c0_197 = arith.constant 0 : index
    %c0_198 = arith.constant 0 : index
    %291 = vector.load %arg18[%c0_197, %c0_198] : memref<128x128xbf16, #tpu.memory_space<vmem>>, vector<128x128xbf16>
    %cst_199 = arith.constant dense<0.000000e+00> : vector<17x128xf32>
    %292 = tpu.matmul %290, %291, %cst_199 {dimension_numbers = #tpu.dot_dimension_numbers<[1], [0], [0], [1], [0, 0, 1, 1], [], []>} : vector<17x128xbf16>, vector<128x128xbf16>, vector<17x128xf32> -> vector<17x128xf32>
    %c0_200 = arith.constant 0 : index
    %c0_201 = arith.constant 0 : index
    %293 = vector.load %arg19[%c0_200, %c0_201] : memref<1x128xf32, #tpu.memory_space<vmem>>, vector<1x128xf32>
    %294 = vector.broadcast %293 : vector<1x128xf32> to vector<17x128xf32>
    %295 = arith.mulf %292, %294 : vector<17x128xf32>
    %296 = arith.addf %284, %295 : vector<17x128xf32>
    %c0_202 = arith.constant 0 : index
    %c0_203 = arith.constant 0 : index
    %297 = vector.load %arg20[%c0_202, %c0_203] : memref<1x128xf32, #tpu.memory_space<vmem>>, vector<1x128xf32>
    %298 = vector.broadcast %297 : vector<1x128xf32> to vector<17x128xf32>
    %299 = arith.addf %296, %298 : vector<17x128xf32>
    %cst_204 = arith.constant 0.000000e+00 : f32
    %300 = vector.broadcast %cst_204 : f32 to vector<17x128xf32>
    %301 = arith.maximumf %299, %300 : vector<17x128xf32>
    %c16_i32 = arith.constant 16 : i32
    %302 = arith.addi %189, %c16_i32 : i32
    %c16_i32_205 = arith.constant 16 : i32
    %303 = arith.subi %302, %c16_i32_205 : i32
    %304 = vector.broadcast %303 : i32 to vector<17x128xi32>
    %305 = arith.cmpi slt, %2, %304 : vector<17x128xi32>
    %306 = arith.extui %305 : vector<17x128xi1> to vector<17x128xi32>
    %307 = arith.sitofp %306 : vector<17x128xi32> to vector<17x128xf32>
    %308 = arith.mulf %301, %307 : vector<17x128xf32>
    %cst_206 = arith.constant 0.000000e+00 : f32
    %309 = vector.broadcast %cst_206 : f32 to vector<8x128xf32>
    %c0_207 = arith.constant 0 : index
    %c0_208 = arith.constant 0 : index
    %310 = vector.load %arg39[%c0_207, %c0_208] : memref<73x128xf32, #tpu.memory_space<vmem>>, vector<8x128xf32>
    tpu.vector_store %arg39[%c0_207, %c0_208], %309 {strides = array<i32>} : memref<73x128xf32, #tpu.memory_space<vmem>>, vector<8x128xf32>,
    %c25 = arith.constant 25 : index
    %c0_209 = arith.constant 0 : index
    %311 = vector.load %arg39[%c25, %c0_209] : memref<73x128xf32, #tpu.memory_space<vmem>>, vector<8x128xf32>
    tpu.vector_store %arg39[%c25, %c0_209], %309 {strides = array<i32>} : memref<73x128xf32, #tpu.memory_space<vmem>>, vector<8x128xf32>,
    %c8_210 = arith.constant 8 : index
    %c0_211 = arith.constant 0 : index
    %312 = vector.load %arg39[%c8_210, %c0_211] : memref<73x128xf32, #tpu.memory_space<vmem>>, vector<17x128xf32>
    tpu.vector_store %arg39[%c8_210, %c0_211], %308 {strides = array<i32>} : memref<73x128xf32, #tpu.memory_space<vmem>>, vector<17x128xf32>,
    %cst_212 = arith.constant 0.000000e+00 : f32
    %313 = vector.broadcast %cst_212 : f32 to vector<17x128xf32>
    %c0_213 = arith.constant 0 : index
    %c0_214 = arith.constant 0 : index
    %314 = vector.load %arg39[%c0_213, %c0_214] : memref<73x128xf32, #tpu.memory_space<vmem>>, vector<17x128xf32>
    %c0_215 = arith.constant 0 : index
    %c0_216 = arith.constant 0 : index
    %315 = vector.load %arg21[%c0_215, %c0_216] : memref<17x128xf32, #tpu.memory_space<vmem>>, vector<1x128xf32>
    %316 = vector.broadcast %315 : vector<1x128xf32> to vector<17x128xf32>
    %317 = arith.mulf %314, %316 : vector<17x128xf32>
    %318 = arith.addf %313, %317 : vector<17x128xf32>
    %c1_217 = arith.constant 1 : index
    %c0_218 = arith.constant 0 : index
    %319 = vector.load %arg39[%c1_217, %c0_218] : memref<73x128xf32, #tpu.memory_space<vmem>>, vector<17x128xf32>
    %c1_219 = arith.constant 1 : index
    %c0_220 = arith.constant 0 : index
    %320 = vector.load %arg21[%c1_219, %c0_220] : memref<17x128xf32, #tpu.memory_space<vmem>>, vector<1x128xf32>
    %321 = vector.broadcast %320 : vector<1x128xf32> to vector<17x128xf32>
    %322 = arith.mulf %319, %321 : vector<17x128xf32>
    %323 = arith.addf %318, %322 : vector<17x128xf32>
    %c2_221 = arith.constant 2 : index
    %c0_222 = arith.constant 0 : index
    %324 = vector.load %arg39[%c2_221, %c0_222] : memref<73x128xf32, #tpu.memory_space<vmem>>, vector<17x128xf32>
    %c2_223 = arith.constant 2 : index
    %c0_224 = arith.constant 0 : index
    %325 = vector.load %arg21[%c2_223, %c0_224] : memref<17x128xf32, #tpu.memory_space<vmem>>, vector<1x128xf32>
    %326 = vector.broadcast %325 : vector<1x128xf32> to vector<17x128xf32>
    %327 = arith.mulf %324, %326 : vector<17x128xf32>
    %328 = arith.addf %323, %327 : vector<17x128xf32>
    %c3_225 = arith.constant 3 : index
    %c0_226 = arith.constant 0 : index
    %329 = vector.load %arg39[%c3_225, %c0_226] : memref<73x128xf32, #tpu.memory_space<vmem>>, vector<17x128xf32>
    %c3_227 = arith.constant 3 : index
    %c0_228 = arith.constant 0 : index
    %330 = vector.load %arg21[%c3_227, %c0_228] : memref<17x128xf32, #tpu.memory_space<vmem>>, vector<1x128xf32>
    %331 = vector.broadcast %330 : vector<1x128xf32> to vector<17x128xf32>
    %332 = arith.mulf %329, %331 : vector<17x128xf32>
    %333 = arith.addf %328, %332 : vector<17x128xf32>
    %c4_229 = arith.constant 4 : index
    %c0_230 = arith.constant 0 : index
    %334 = vector.load %arg39[%c4_229, %c0_230] : memref<73x128xf32, #tpu.memory_space<vmem>>, vector<17x128xf32>
    %c4_231 = arith.constant 4 : index
    %c0_232 = arith.constant 0 : index
    %335 = vector.load %arg21[%c4_231, %c0_232] : memref<17x128xf32, #tpu.memory_space<vmem>>, vector<1x128xf32>
    %336 = vector.broadcast %335 : vector<1x128xf32> to vector<17x128xf32>
    %337 = arith.mulf %334, %336 : vector<17x128xf32>
    %338 = arith.addf %333, %337 : vector<17x128xf32>
    %c5_233 = arith.constant 5 : index
    %c0_234 = arith.constant 0 : index
    %339 = vector.load %arg39[%c5_233, %c0_234] : memref<73x128xf32, #tpu.memory_space<vmem>>, vector<17x128xf32>
    %c5_235 = arith.constant 5 : index
    %c0_236 = arith.constant 0 : index
    %340 = vector.load %arg21[%c5_235, %c0_236] : memref<17x128xf32, #tpu.memory_space<vmem>>, vector<1x128xf32>
    %341 = vector.broadcast %340 : vector<1x128xf32> to vector<17x128xf32>
    %342 = arith.mulf %339, %341 : vector<17x128xf32>
    %343 = arith.addf %338, %342 : vector<17x128xf32>
    %c6_237 = arith.constant 6 : index
    %c0_238 = arith.constant 0 : index
    %344 = vector.load %arg39[%c6_237, %c0_238] : memref<73x128xf32, #tpu.memory_space<vmem>>, vector<17x128xf32>
    %c6_239 = arith.constant 6 : index
    %c0_240 = arith.constant 0 : index
    %345 = vector.load %arg21[%c6_239, %c0_240] : memref<17x128xf32, #tpu.memory_space<vmem>>, vector<1x128xf32>
    %346 = vector.broadcast %345 : vector<1x128xf32> to vector<17x128xf32>
    %347 = arith.mulf %344, %346 : vector<17x128xf32>
    %348 = arith.addf %343, %347 : vector<17x128xf32>
    %c7_241 = arith.constant 7 : index
    %c0_242 = arith.constant 0 : index
    %349 = vector.load %arg39[%c7_241, %c0_242] : memref<73x128xf32, #tpu.memory_space<vmem>>, vector<17x128xf32>
    %c7_243 = arith.constant 7 : index
    %c0_244 = arith.constant 0 : index
    %350 = vector.load %arg21[%c7_243, %c0_244] : memref<17x128xf32, #tpu.memory_space<vmem>>, vector<1x128xf32>
    %351 = vector.broadcast %350 : vector<1x128xf32> to vector<17x128xf32>
    %352 = arith.mulf %349, %351 : vector<17x128xf32>
    %353 = arith.addf %348, %352 : vector<17x128xf32>
    %c8_245 = arith.constant 8 : index
    %c0_246 = arith.constant 0 : index
    %354 = vector.load %arg39[%c8_245, %c0_246] : memref<73x128xf32, #tpu.memory_space<vmem>>, vector<17x128xf32>
    %c8_247 = arith.constant 8 : index
    %c0_248 = arith.constant 0 : index
    %355 = vector.load %arg21[%c8_247, %c0_248] : memref<17x128xf32, #tpu.memory_space<vmem>>, vector<1x128xf32>
    %356 = vector.broadcast %355 : vector<1x128xf32> to vector<17x128xf32>
    %357 = arith.mulf %354, %356 : vector<17x128xf32>
    %358 = arith.addf %353, %357 : vector<17x128xf32>
    %c9_249 = arith.constant 9 : index
    %c0_250 = arith.constant 0 : index
    %359 = vector.load %arg39[%c9_249, %c0_250] : memref<73x128xf32, #tpu.memory_space<vmem>>, vector<17x128xf32>
    %c9_251 = arith.constant 9 : index
    %c0_252 = arith.constant 0 : index
    %360 = vector.load %arg21[%c9_251, %c0_252] : memref<17x128xf32, #tpu.memory_space<vmem>>, vector<1x128xf32>
    %361 = vector.broadcast %360 : vector<1x128xf32> to vector<17x128xf32>
    %362 = arith.mulf %359, %361 : vector<17x128xf32>
    %363 = arith.addf %358, %362 : vector<17x128xf32>
    %c10_253 = arith.constant 10 : index
    %c0_254 = arith.constant 0 : index
    %364 = vector.load %arg39[%c10_253, %c0_254] : memref<73x128xf32, #tpu.memory_space<vmem>>, vector<17x128xf32>
    %c10_255 = arith.constant 10 : index
    %c0_256 = arith.constant 0 : index
    %365 = vector.load %arg21[%c10_255, %c0_256] : memref<17x128xf32, #tpu.memory_space<vmem>>, vector<1x128xf32>
    %366 = vector.broadcast %365 : vector<1x128xf32> to vector<17x128xf32>
    %367 = arith.mulf %364, %366 : vector<17x128xf32>
    %368 = arith.addf %363, %367 : vector<17x128xf32>
    %c11_257 = arith.constant 11 : index
    %c0_258 = arith.constant 0 : index
    %369 = vector.load %arg39[%c11_257, %c0_258] : memref<73x128xf32, #tpu.memory_space<vmem>>, vector<17x128xf32>
    %c11_259 = arith.constant 11 : index
    %c0_260 = arith.constant 0 : index
    %370 = vector.load %arg21[%c11_259, %c0_260] : memref<17x128xf32, #tpu.memory_space<vmem>>, vector<1x128xf32>
    %371 = vector.broadcast %370 : vector<1x128xf32> to vector<17x128xf32>
    %372 = arith.mulf %369, %371 : vector<17x128xf32>
    %373 = arith.addf %368, %372 : vector<17x128xf32>
    %c12_261 = arith.constant 12 : index
    %c0_262 = arith.constant 0 : index
    %374 = vector.load %arg39[%c12_261, %c0_262] : memref<73x128xf32, #tpu.memory_space<vmem>>, vector<17x128xf32>
    %c12_263 = arith.constant 12 : index
    %c0_264 = arith.constant 0 : index
    %375 = vector.load %arg21[%c12_263, %c0_264] : memref<17x128xf32, #tpu.memory_space<vmem>>, vector<1x128xf32>
    %376 = vector.broadcast %375 : vector<1x128xf32> to vector<17x128xf32>
    %377 = arith.mulf %374, %376 : vector<17x128xf32>
    %378 = arith.addf %373, %377 : vector<17x128xf32>
    %c13_265 = arith.constant 13 : index
    %c0_266 = arith.constant 0 : index
    %379 = vector.load %arg39[%c13_265, %c0_266] : memref<73x128xf32, #tpu.memory_space<vmem>>, vector<17x128xf32>
    %c13_267 = arith.constant 13 : index
    %c0_268 = arith.constant 0 : index
    %380 = vector.load %arg21[%c13_267, %c0_268] : memref<17x128xf32, #tpu.memory_space<vmem>>, vector<1x128xf32>
    %381 = vector.broadcast %380 : vector<1x128xf32> to vector<17x128xf32>
    %382 = arith.mulf %379, %381 : vector<17x128xf32>
    %383 = arith.addf %378, %382 : vector<17x128xf32>
    %c14_269 = arith.constant 14 : index
    %c0_270 = arith.constant 0 : index
    %384 = vector.load %arg39[%c14_269, %c0_270] : memref<73x128xf32, #tpu.memory_space<vmem>>, vector<17x128xf32>
    %c14_271 = arith.constant 14 : index
    %c0_272 = arith.constant 0 : index
    %385 = vector.load %arg21[%c14_271, %c0_272] : memref<17x128xf32, #tpu.memory_space<vmem>>, vector<1x128xf32>
    %386 = vector.broadcast %385 : vector<1x128xf32> to vector<17x128xf32>
    %387 = arith.mulf %384, %386 : vector<17x128xf32>
    %388 = arith.addf %383, %387 : vector<17x128xf32>
    %c15 = arith.constant 15 : index
    %c0_273 = arith.constant 0 : index
    %389 = vector.load %arg39[%c15, %c0_273] : memref<73x128xf32, #tpu.memory_space<vmem>>, vector<17x128xf32>
    %c15_274 = arith.constant 15 : index
    %c0_275 = arith.constant 0 : index
    %390 = vector.load %arg21[%c15_274, %c0_275] : memref<17x128xf32, #tpu.memory_space<vmem>>, vector<1x128xf32>
    %391 = vector.broadcast %390 : vector<1x128xf32> to vector<17x128xf32>
    %392 = arith.mulf %389, %391 : vector<17x128xf32>
    %393 = arith.addf %388, %392 : vector<17x128xf32>
    %c16 = arith.constant 16 : index
    %c0_276 = arith.constant 0 : index
    %394 = vector.load %arg39[%c16, %c0_276] : memref<73x128xf32, #tpu.memory_space<vmem>>, vector<17x128xf32>
    %c16_277 = arith.constant 16 : index
    %c0_278 = arith.constant 0 : index
    %395 = vector.load %arg21[%c16_277, %c0_278] : memref<17x128xf32, #tpu.memory_space<vmem>>, vector<1x128xf32>
    %396 = vector.broadcast %395 : vector<1x128xf32> to vector<17x128xf32>
    %397 = arith.mulf %394, %396 : vector<17x128xf32>
    %398 = arith.addf %393, %397 : vector<17x128xf32>
    %399 = arith.mulf %398, %307 : vector<17x128xf32>
    %400 = arith.truncf %399 : vector<17x128xf32> to vector<17x128xbf16>
    %c0_279 = arith.constant 0 : index
    %c0_280 = arith.constant 0 : index
    %401 = vector.load %arg22[%c0_279, %c0_280] : memref<128x128xbf16, #tpu.memory_space<vmem>>, vector<128x128xbf16>
    %cst_281 = arith.constant dense<0.000000e+00> : vector<17x128xf32>
    %402 = tpu.matmul %400, %401, %cst_281 {dimension_numbers = #tpu.dot_dimension_numbers<[1], [0], [0], [1], [0, 0, 1, 1], [], []>} : vector<17x128xbf16>, vector<128x128xbf16>, vector<17x128xf32> -> vector<17x128xf32>
    %c0_282 = arith.constant 0 : index
    %c0_283 = arith.constant 0 : index
    %403 = vector.load %arg23[%c0_282, %c0_283] : memref<1x128xf32, #tpu.memory_space<vmem>>, vector<1x128xf32>
    %404 = vector.broadcast %403 : vector<1x128xf32> to vector<17x128xf32>
    %405 = arith.mulf %402, %404 : vector<17x128xf32>
    %c0_284 = arith.constant 0 : index
    %c0_285 = arith.constant 0 : index
    %406 = vector.load %arg24[%c0_284, %c0_285] : memref<1x128xf32, #tpu.memory_space<vmem>>, vector<1x128xf32>
    %407 = vector.broadcast %406 : vector<1x128xf32> to vector<17x128xf32>
    %408 = arith.addf %405, %407 : vector<17x128xf32>
    %409 = vector.broadcast %189 : i32 to vector<17x128xi32>
    %410 = arith.cmpi slt, %2, %409 : vector<17x128xi32>
    %411 = arith.extui %410 : vector<17x128xi1> to vector<17x128xi32>
    %412 = arith.sitofp %411 : vector<17x128xi32> to vector<17x128xf32>
    %413 = arith.mulf %301, %412 : vector<17x128xf32>
    %414 = arith.truncf %413 : vector<17x128xf32> to vector<17x128xbf16>
    %c0_286 = arith.constant 0 : index
    %c0_287 = arith.constant 0 : index
    %415 = vector.load %arg25[%c0_286, %c0_287] : memref<128x128xbf16, #tpu.memory_space<vmem>>, vector<128x128xbf16>
    %cst_288 = arith.constant dense<0.000000e+00> : vector<17x128xf32>
    %416 = tpu.matmul %414, %415, %cst_288 {dimension_numbers = #tpu.dot_dimension_numbers<[1], [0], [0], [1], [0, 0, 1, 1], [], []>} : vector<17x128xbf16>, vector<128x128xbf16>, vector<17x128xf32> -> vector<17x128xf32>
    %c0_289 = arith.constant 0 : index
    %c0_290 = arith.constant 0 : index
    %417 = vector.load %arg26[%c0_289, %c0_290] : memref<1x128xf32, #tpu.memory_space<vmem>>, vector<1x128xf32>
    %418 = vector.broadcast %417 : vector<1x128xf32> to vector<17x128xf32>
    %419 = arith.mulf %416, %418 : vector<17x128xf32>
    %420 = arith.addf %408, %419 : vector<17x128xf32>
    %c0_291 = arith.constant 0 : index
    %c0_292 = arith.constant 0 : index
    %421 = vector.load %arg27[%c0_291, %c0_292] : memref<1x128xf32, #tpu.memory_space<vmem>>, vector<1x128xf32>
    %422 = vector.broadcast %421 : vector<1x128xf32> to vector<17x128xf32>
    %423 = arith.addf %420, %422 : vector<17x128xf32>
    %cst_293 = arith.constant 0.000000e+00 : f32
    %424 = vector.broadcast %cst_293 : f32 to vector<17x128xf32>
    %425 = arith.maximumf %423, %424 : vector<17x128xf32>
    %c56_i32 = arith.constant 56 : i32
    %426 = arith.addi %303, %c56_i32 : i32
    %c56_i32_294 = arith.constant 56 : i32
    %427 = arith.subi %426, %c56_i32_294 : i32
    %428 = vector.broadcast %427 : i32 to vector<17x128xi32>
    %429 = arith.cmpi slt, %2, %428 : vector<17x128xi32>
    %430 = arith.extui %429 : vector<17x128xi1> to vector<17x128xi32>
    %431 = arith.sitofp %430 : vector<17x128xi32> to vector<17x128xf32>
    %432 = arith.mulf %425, %431 : vector<17x128xf32>
    %cst_295 = arith.constant 0.000000e+00 : f32
    %433 = vector.broadcast %cst_295 : f32 to vector<28x128xf32>
    %c0_296 = arith.constant 0 : index
    %c0_297 = arith.constant 0 : index
    %434 = vector.load %arg39[%c0_296, %c0_297] : memref<73x128xf32, #tpu.memory_space<vmem>>, vector<28x128xf32>
    tpu.vector_store %arg39[%c0_296, %c0_297], %433 {strides = array<i32>} : memref<73x128xf32, #tpu.memory_space<vmem>>, vector<28x128xf32>,
    %c45 = arith.constant 45 : index
    %c0_298 = arith.constant 0 : index
    %435 = vector.load %arg39[%c45, %c0_298] : memref<73x128xf32, #tpu.memory_space<vmem>>, vector<28x128xf32>
    tpu.vector_store %arg39[%c45, %c0_298], %433 {strides = array<i32>} : memref<73x128xf32, #tpu.memory_space<vmem>>, vector<28x128xf32>,
    %c28 = arith.constant 28 : index
    %c0_299 = arith.constant 0 : index
    %436 = vector.load %arg39[%c28, %c0_299] : memref<73x128xf32, #tpu.memory_space<vmem>>, vector<17x128xf32>
    tpu.vector_store %arg39[%c28, %c0_299], %432 {strides = array<i32>} : memref<73x128xf32, #tpu.memory_space<vmem>>, vector<17x128xf32>,
    %cst_300 = arith.constant 0.000000e+00 : f32
    %437 = vector.broadcast %cst_300 : f32 to vector<17x128xf32>
    %c0_301 = arith.constant 0 : index
    %c0_302 = arith.constant 0 : index
    %438 = vector.load %arg39[%c0_301, %c0_302] : memref<73x128xf32, #tpu.memory_space<vmem>>, vector<17x128xf32>
    %c0_303 = arith.constant 0 : index
    %c0_304 = arith.constant 0 : index
    %439 = vector.load %arg28[%c0_303, %c0_304] : memref<29x128xf32, #tpu.memory_space<vmem>>, vector<1x128xf32>
    %440 = vector.broadcast %439 : vector<1x128xf32> to vector<17x128xf32>
    %441 = arith.mulf %438, %440 : vector<17x128xf32>
    %442 = arith.addf %437, %441 : vector<17x128xf32>
    %c2_305 = arith.constant 2 : index
    %c0_306 = arith.constant 0 : index
    %443 = vector.load %arg39[%c2_305, %c0_306] : memref<73x128xf32, #tpu.memory_space<vmem>>, vector<17x128xf32>
    %c1_307 = arith.constant 1 : index
    %c0_308 = arith.constant 0 : index
    %444 = vector.load %arg28[%c1_307, %c0_308] : memref<29x128xf32, #tpu.memory_space<vmem>>, vector<1x128xf32>
    %445 = vector.broadcast %444 : vector<1x128xf32> to vector<17x128xf32>
    %446 = arith.mulf %443, %445 : vector<17x128xf32>
    %447 = arith.addf %442, %446 : vector<17x128xf32>
    %c4_309 = arith.constant 4 : index
    %c0_310 = arith.constant 0 : index
    %448 = vector.load %arg39[%c4_309, %c0_310] : memref<73x128xf32, #tpu.memory_space<vmem>>, vector<17x128xf32>
    %c2_311 = arith.constant 2 : index
    %c0_312 = arith.constant 0 : index
    %449 = vector.load %arg28[%c2_311, %c0_312] : memref<29x128xf32, #tpu.memory_space<vmem>>, vector<1x128xf32>
    %450 = vector.broadcast %449 : vector<1x128xf32> to vector<17x128xf32>
    %451 = arith.mulf %448, %450 : vector<17x128xf32>
    %452 = arith.addf %447, %451 : vector<17x128xf32>
    %c6_313 = arith.constant 6 : index
    %c0_314 = arith.constant 0 : index
    %453 = vector.load %arg39[%c6_313, %c0_314] : memref<73x128xf32, #tpu.memory_space<vmem>>, vector<17x128xf32>
    %c3_315 = arith.constant 3 : index
    %c0_316 = arith.constant 0 : index
    %454 = vector.load %arg28[%c3_315, %c0_316] : memref<29x128xf32, #tpu.memory_space<vmem>>, vector<1x128xf32>
    %455 = vector.broadcast %454 : vector<1x128xf32> to vector<17x128xf32>
    %456 = arith.mulf %453, %455 : vector<17x128xf32>
    %457 = arith.addf %452, %456 : vector<17x128xf32>
    %c8_317 = arith.constant 8 : index
    %c0_318 = arith.constant 0 : index
    %458 = vector.load %arg39[%c8_317, %c0_318] : memref<73x128xf32, #tpu.memory_space<vmem>>, vector<17x128xf32>
    %c4_319 = arith.constant 4 : index
    %c0_320 = arith.constant 0 : index
    %459 = vector.load %arg28[%c4_319, %c0_320] : memref<29x128xf32, #tpu.memory_space<vmem>>, vector<1x128xf32>
    %460 = vector.broadcast %459 : vector<1x128xf32> to vector<17x128xf32>
    %461 = arith.mulf %458, %460 : vector<17x128xf32>
    %462 = arith.addf %457, %461 : vector<17x128xf32>
    %c10_321 = arith.constant 10 : index
    %c0_322 = arith.constant 0 : index
    %463 = vector.load %arg39[%c10_321, %c0_322] : memref<73x128xf32, #tpu.memory_space<vmem>>, vector<17x128xf32>
    %c5_323 = arith.constant 5 : index
    %c0_324 = arith.constant 0 : index
    %464 = vector.load %arg28[%c5_323, %c0_324] : memref<29x128xf32, #tpu.memory_space<vmem>>, vector<1x128xf32>
    %465 = vector.broadcast %464 : vector<1x128xf32> to vector<17x128xf32>
    %466 = arith.mulf %463, %465 : vector<17x128xf32>
    %467 = arith.addf %462, %466 : vector<17x128xf32>
    %c12_325 = arith.constant 12 : index
    %c0_326 = arith.constant 0 : index
    %468 = vector.load %arg39[%c12_325, %c0_326] : memref<73x128xf32, #tpu.memory_space<vmem>>, vector<17x128xf32>
    %c6_327 = arith.constant 6 : index
    %c0_328 = arith.constant 0 : index
    %469 = vector.load %arg28[%c6_327, %c0_328] : memref<29x128xf32, #tpu.memory_space<vmem>>, vector<1x128xf32>
    %470 = vector.broadcast %469 : vector<1x128xf32> to vector<17x128xf32>
    %471 = arith.mulf %468, %470 : vector<17x128xf32>
    %472 = arith.addf %467, %471 : vector<17x128xf32>
    %c14_329 = arith.constant 14 : index
    %c0_330 = arith.constant 0 : index
    %473 = vector.load %arg39[%c14_329, %c0_330] : memref<73x128xf32, #tpu.memory_space<vmem>>, vector<17x128xf32>
    %c7_331 = arith.constant 7 : index
    %c0_332 = arith.constant 0 : index
    %474 = vector.load %arg28[%c7_331, %c0_332] : memref<29x128xf32, #tpu.memory_space<vmem>>, vector<1x128xf32>
    %475 = vector.broadcast %474 : vector<1x128xf32> to vector<17x128xf32>
    %476 = arith.mulf %473, %475 : vector<17x128xf32>
    %477 = arith.addf %472, %476 : vector<17x128xf32>
    %c16_333 = arith.constant 16 : index
    %c0_334 = arith.constant 0 : index
    %478 = vector.load %arg39[%c16_333, %c0_334] : memref<73x128xf32, #tpu.memory_space<vmem>>, vector<17x128xf32>
    %c8_335 = arith.constant 8 : index
    %c0_336 = arith.constant 0 : index
    %479 = vector.load %arg28[%c8_335, %c0_336] : memref<29x128xf32, #tpu.memory_space<vmem>>, vector<1x128xf32>
    %480 = vector.broadcast %479 : vector<1x128xf32> to vector<17x128xf32>
    %481 = arith.mulf %478, %480 : vector<17x128xf32>
    %482 = arith.addf %477, %481 : vector<17x128xf32>
    %c18 = arith.constant 18 : index
    %c0_337 = arith.constant 0 : index
    %483 = vector.load %arg39[%c18, %c0_337] : memref<73x128xf32, #tpu.memory_space<vmem>>, vector<17x128xf32>
    %c9_338 = arith.constant 9 : index
    %c0_339 = arith.constant 0 : index
    %484 = vector.load %arg28[%c9_338, %c0_339] : memref<29x128xf32, #tpu.memory_space<vmem>>, vector<1x128xf32>
    %485 = vector.broadcast %484 : vector<1x128xf32> to vector<17x128xf32>
    %486 = arith.mulf %483, %485 : vector<17x128xf32>
    %487 = arith.addf %482, %486 : vector<17x128xf32>
    %c20 = arith.constant 20 : index
    %c0_340 = arith.constant 0 : index
    %488 = vector.load %arg39[%c20, %c0_340] : memref<73x128xf32, #tpu.memory_space<vmem>>, vector<17x128xf32>
    %c10_341 = arith.constant 10 : index
    %c0_342 = arith.constant 0 : index
    %489 = vector.load %arg28[%c10_341, %c0_342] : memref<29x128xf32, #tpu.memory_space<vmem>>, vector<1x128xf32>
    %490 = vector.broadcast %489 : vector<1x128xf32> to vector<17x128xf32>
    %491 = arith.mulf %488, %490 : vector<17x128xf32>
    %492 = arith.addf %487, %491 : vector<17x128xf32>
    %c22_343 = arith.constant 22 : index
    %c0_344 = arith.constant 0 : index
    %493 = vector.load %arg39[%c22_343, %c0_344] : memref<73x128xf32, #tpu.memory_space<vmem>>, vector<17x128xf32>
    %c11_345 = arith.constant 11 : index
    %c0_346 = arith.constant 0 : index
    %494 = vector.load %arg28[%c11_345, %c0_346] : memref<29x128xf32, #tpu.memory_space<vmem>>, vector<1x128xf32>
    %495 = vector.broadcast %494 : vector<1x128xf32> to vector<17x128xf32>
    %496 = arith.mulf %493, %495 : vector<17x128xf32>
    %497 = arith.addf %492, %496 : vector<17x128xf32>
    %c24_347 = arith.constant 24 : index
    %c0_348 = arith.constant 0 : index
    %498 = vector.load %arg39[%c24_347, %c0_348] : memref<73x128xf32, #tpu.memory_space<vmem>>, vector<17x128xf32>
    %c12_349 = arith.constant 12 : index
    %c0_350 = arith.constant 0 : index
    %499 = vector.load %arg28[%c12_349, %c0_350] : memref<29x128xf32, #tpu.memory_space<vmem>>, vector<1x128xf32>
    %500 = vector.broadcast %499 : vector<1x128xf32> to vector<17x128xf32>
    %501 = arith.mulf %498, %500 : vector<17x128xf32>
    %502 = arith.addf %497, %501 : vector<17x128xf32>
    %c26 = arith.constant 26 : index
    %c0_351 = arith.constant 0 : index
    %503 = vector.load %arg39[%c26, %c0_351] : memref<73x128xf32, #tpu.memory_space<vmem>>, vector<17x128xf32>
    %c13_352 = arith.constant 13 : index
    %c0_353 = arith.constant 0 : index
    %504 = vector.load %arg28[%c13_352, %c0_353] : memref<29x128xf32, #tpu.memory_space<vmem>>, vector<1x128xf32>
    %505 = vector.broadcast %504 : vector<1x128xf32> to vector<17x128xf32>
    %506 = arith.mulf %503, %505 : vector<17x128xf32>
    %507 = arith.addf %502, %506 : vector<17x128xf32>
    %c28_354 = arith.constant 28 : index
    %c0_355 = arith.constant 0 : index
    %508 = vector.load %arg39[%c28_354, %c0_355] : memref<73x128xf32, #tpu.memory_space<vmem>>, vector<17x128xf32>
    %c14_356 = arith.constant 14 : index
    %c0_357 = arith.constant 0 : index
    %509 = vector.load %arg28[%c14_356, %c0_357] : memref<29x128xf32, #tpu.memory_space<vmem>>, vector<1x128xf32>
    %510 = vector.broadcast %509 : vector<1x128xf32> to vector<17x128xf32>
    %511 = arith.mulf %508, %510 : vector<17x128xf32>
    %512 = arith.addf %507, %511 : vector<17x128xf32>
    %c30 = arith.constant 30 : index
    %c0_358 = arith.constant 0 : index
    %513 = vector.load %arg39[%c30, %c0_358] : memref<73x128xf32, #tpu.memory_space<vmem>>, vector<17x128xf32>
    %c15_359 = arith.constant 15 : index
    %c0_360 = arith.constant 0 : index
    %514 = vector.load %arg28[%c15_359, %c0_360] : memref<29x128xf32, #tpu.memory_space<vmem>>, vector<1x128xf32>
    %515 = vector.broadcast %514 : vector<1x128xf32> to vector<17x128xf32>
    %516 = arith.mulf %513, %515 : vector<17x128xf32>
    %517 = arith.addf %512, %516 : vector<17x128xf32>
    %c32 = arith.constant 32 : index
    %c0_361 = arith.constant 0 : index
    %518 = vector.load %arg39[%c32, %c0_361] : memref<73x128xf32, #tpu.memory_space<vmem>>, vector<17x128xf32>
    %c16_362 = arith.constant 16 : index
    %c0_363 = arith.constant 0 : index
    %519 = vector.load %arg28[%c16_362, %c0_363] : memref<29x128xf32, #tpu.memory_space<vmem>>, vector<1x128xf32>
    %520 = vector.broadcast %519 : vector<1x128xf32> to vector<17x128xf32>
    %521 = arith.mulf %518, %520 : vector<17x128xf32>
    %522 = arith.addf %517, %521 : vector<17x128xf32>
    %c34 = arith.constant 34 : index
    %c0_364 = arith.constant 0 : index
    %523 = vector.load %arg39[%c34, %c0_364] : memref<73x128xf32, #tpu.memory_space<vmem>>, vector<17x128xf32>
    %c17 = arith.constant 17 : index
    %c0_365 = arith.constant 0 : index
    %524 = vector.load %arg28[%c17, %c0_365] : memref<29x128xf32, #tpu.memory_space<vmem>>, vector<1x128xf32>
    %525 = vector.broadcast %524 : vector<1x128xf32> to vector<17x128xf32>
    %526 = arith.mulf %523, %525 : vector<17x128xf32>
    %527 = arith.addf %522, %526 : vector<17x128xf32>
    %c36 = arith.constant 36 : index
    %c0_366 = arith.constant 0 : index
    %528 = vector.load %arg39[%c36, %c0_366] : memref<73x128xf32, #tpu.memory_space<vmem>>, vector<17x128xf32>
    %c18_367 = arith.constant 18 : index
    %c0_368 = arith.constant 0 : index
    %529 = vector.load %arg28[%c18_367, %c0_368] : memref<29x128xf32, #tpu.memory_space<vmem>>, vector<1x128xf32>
    %530 = vector.broadcast %529 : vector<1x128xf32> to vector<17x128xf32>
    %531 = arith.mulf %528, %530 : vector<17x128xf32>
    %532 = arith.addf %527, %531 : vector<17x128xf32>
    %c38 = arith.constant 38 : index
    %c0_369 = arith.constant 0 : index
    %533 = vector.load %arg39[%c38, %c0_369] : memref<73x128xf32, #tpu.memory_space<vmem>>, vector<17x128xf32>
    %c19 = arith.constant 19 : index
    %c0_370 = arith.constant 0 : index
    %534 = vector.load %arg28[%c19, %c0_370] : memref<29x128xf32, #tpu.memory_space<vmem>>, vector<1x128xf32>
    %535 = vector.broadcast %534 : vector<1x128xf32> to vector<17x128xf32>
    %536 = arith.mulf %533, %535 : vector<17x128xf32>
    %537 = arith.addf %532, %536 : vector<17x128xf32>
    %c40 = arith.constant 40 : index
    %c0_371 = arith.constant 0 : index
    %538 = vector.load %arg39[%c40, %c0_371] : memref<73x128xf32, #tpu.memory_space<vmem>>, vector<17x128xf32>
    %c20_372 = arith.constant 20 : index
    %c0_373 = arith.constant 0 : index
    %539 = vector.load %arg28[%c20_372, %c0_373] : memref<29x128xf32, #tpu.memory_space<vmem>>, vector<1x128xf32>
    %540 = vector.broadcast %539 : vector<1x128xf32> to vector<17x128xf32>
    %541 = arith.mulf %538, %540 : vector<17x128xf32>
    %542 = arith.addf %537, %541 : vector<17x128xf32>
    %c42 = arith.constant 42 : index
    %c0_374 = arith.constant 0 : index
    %543 = vector.load %arg39[%c42, %c0_374] : memref<73x128xf32, #tpu.memory_space<vmem>>, vector<17x128xf32>
    %c21 = arith.constant 21 : index
    %c0_375 = arith.constant 0 : index
    %544 = vector.load %arg28[%c21, %c0_375] : memref<29x128xf32, #tpu.memory_space<vmem>>, vector<1x128xf32>
    %545 = vector.broadcast %544 : vector<1x128xf32> to vector<17x128xf32>
    %546 = arith.mulf %543, %545 : vector<17x128xf32>
    %547 = arith.addf %542, %546 : vector<17x128xf32>
    %c44 = arith.constant 44 : index
    %c0_376 = arith.constant 0 : index
    %548 = vector.load %arg39[%c44, %c0_376] : memref<73x128xf32, #tpu.memory_space<vmem>>, vector<17x128xf32>
    %c22_377 = arith.constant 22 : index
    %c0_378 = arith.constant 0 : index
    %549 = vector.load %arg28[%c22_377, %c0_378] : memref<29x128xf32, #tpu.memory_space<vmem>>, vector<1x128xf32>
    %550 = vector.broadcast %549 : vector<1x128xf32> to vector<17x128xf32>
    %551 = arith.mulf %548, %550 : vector<17x128xf32>
    %552 = arith.addf %547, %551 : vector<17x128xf32>
    %c46 = arith.constant 46 : index
    %c0_379 = arith.constant 0 : index
    %553 = vector.load %arg39[%c46, %c0_379] : memref<73x128xf32, #tpu.memory_space<vmem>>, vector<17x128xf32>
    %c23_380 = arith.constant 23 : index
    %c0_381 = arith.constant 0 : index
    %554 = vector.load %arg28[%c23_380, %c0_381] : memref<29x128xf32, #tpu.memory_space<vmem>>, vector<1x128xf32>
    %555 = vector.broadcast %554 : vector<1x128xf32> to vector<17x128xf32>
    %556 = arith.mulf %553, %555 : vector<17x128xf32>
    %557 = arith.addf %552, %556 : vector<17x128xf32>
    %c48 = arith.constant 48 : index
    %c0_382 = arith.constant 0 : index
    %558 = vector.load %arg39[%c48, %c0_382] : memref<73x128xf32, #tpu.memory_space<vmem>>, vector<17x128xf32>
    %c24_383 = arith.constant 24 : index
    %c0_384 = arith.constant 0 : index
    %559 = vector.load %arg28[%c24_383, %c0_384] : memref<29x128xf32, #tpu.memory_space<vmem>>, vector<1x128xf32>
    %560 = vector.broadcast %559 : vector<1x128xf32> to vector<17x128xf32>
    %561 = arith.mulf %558, %560 : vector<17x128xf32>
    %562 = arith.addf %557, %561 : vector<17x128xf32>
    %c50 = arith.constant 50 : index
    %c0_385 = arith.constant 0 : index
    %563 = vector.load %arg39[%c50, %c0_385] : memref<73x128xf32, #tpu.memory_space<vmem>>, vector<17x128xf32>
    %c25_386 = arith.constant 25 : index
    %c0_387 = arith.constant 0 : index
    %564 = vector.load %arg28[%c25_386, %c0_387] : memref<29x128xf32, #tpu.memory_space<vmem>>, vector<1x128xf32>
    %565 = vector.broadcast %564 : vector<1x128xf32> to vector<17x128xf32>
    %566 = arith.mulf %563, %565 : vector<17x128xf32>
    %567 = arith.addf %562, %566 : vector<17x128xf32>
    %c52 = arith.constant 52 : index
    %c0_388 = arith.constant 0 : index
    %568 = vector.load %arg39[%c52, %c0_388] : memref<73x128xf32, #tpu.memory_space<vmem>>, vector<17x128xf32>
    %c26_389 = arith.constant 26 : index
    %c0_390 = arith.constant 0 : index
    %569 = vector.load %arg28[%c26_389, %c0_390] : memref<29x128xf32, #tpu.memory_space<vmem>>, vector<1x128xf32>
    %570 = vector.broadcast %569 : vector<1x128xf32> to vector<17x128xf32>
    %571 = arith.mulf %568, %570 : vector<17x128xf32>
    %572 = arith.addf %567, %571 : vector<17x128xf32>
    %c54 = arith.constant 54 : index
    %c0_391 = arith.constant 0 : index
    %573 = vector.load %arg39[%c54, %c0_391] : memref<73x128xf32, #tpu.memory_space<vmem>>, vector<17x128xf32>
    %c27 = arith.constant 27 : index
    %c0_392 = arith.constant 0 : index
    %574 = vector.load %arg28[%c27, %c0_392] : memref<29x128xf32, #tpu.memory_space<vmem>>, vector<1x128xf32>
    %575 = vector.broadcast %574 : vector<1x128xf32> to vector<17x128xf32>
    %576 = arith.mulf %573, %575 : vector<17x128xf32>
    %577 = arith.addf %572, %576 : vector<17x128xf32>
    %c56 = arith.constant 56 : index
    %c0_393 = arith.constant 0 : index
    %578 = vector.load %arg39[%c56, %c0_393] : memref<73x128xf32, #tpu.memory_space<vmem>>, vector<17x128xf32>
    %c28_394 = arith.constant 28 : index
    %c0_395 = arith.constant 0 : index
    %579 = vector.load %arg28[%c28_394, %c0_395] : memref<29x128xf32, #tpu.memory_space<vmem>>, vector<1x128xf32>
    %580 = vector.broadcast %579 : vector<1x128xf32> to vector<17x128xf32>
    %581 = arith.mulf %578, %580 : vector<17x128xf32>
    %582 = arith.addf %577, %581 : vector<17x128xf32>
    %583 = arith.mulf %582, %431 : vector<17x128xf32>
    %584 = arith.truncf %583 : vector<17x128xf32> to vector<17x128xbf16>
    %c0_396 = arith.constant 0 : index
    %c0_397 = arith.constant 0 : index
    %585 = vector.load %arg29[%c0_396, %c0_397] : memref<128x128xbf16, #tpu.memory_space<vmem>>, vector<128x128xbf16>
    %cst_398 = arith.constant dense<0.000000e+00> : vector<17x128xf32>
    %586 = tpu.matmul %584, %585, %cst_398 {dimension_numbers = #tpu.dot_dimension_numbers<[1], [0], [0], [1], [0, 0, 1, 1], [], []>} : vector<17x128xbf16>, vector<128x128xbf16>, vector<17x128xf32> -> vector<17x128xf32>
    %c0_399 = arith.constant 0 : index
    %c0_400 = arith.constant 0 : index
    %587 = vector.load %arg30[%c0_399, %c0_400] : memref<1x128xf32, #tpu.memory_space<vmem>>, vector<1x128xf32>
    %588 = vector.broadcast %587 : vector<1x128xf32> to vector<17x128xf32>
    %589 = arith.mulf %586, %588 : vector<17x128xf32>
    %c0_401 = arith.constant 0 : index
    %c0_402 = arith.constant 0 : index
    %590 = vector.load %arg31[%c0_401, %c0_402] : memref<1x128xf32, #tpu.memory_space<vmem>>, vector<1x128xf32>
    %591 = vector.broadcast %590 : vector<1x128xf32> to vector<17x128xf32>
    %592 = arith.addf %589, %591 : vector<17x128xf32>
    %cst_403 = arith.constant 0.000000e+00 : f32
    %593 = vector.broadcast %cst_403 : f32 to vector<17x128xf32>
    %594 = arith.maximumf %592, %593 : vector<17x128xf32>
    %c0_i32 = arith.constant 0 : i32
    %595 = arith.addi %427, %c0_i32 : i32
    %c0_i32_404 = arith.constant 0 : i32
    %596 = arith.subi %595, %c0_i32_404 : i32
    %597 = vector.broadcast %596 : i32 to vector<17x128xi32>
    %598 = arith.cmpi slt, %2, %597 : vector<17x128xi32>
    %599 = arith.extui %598 : vector<17x128xi1> to vector<17x128xi32>
    %600 = arith.sitofp %599 : vector<17x128xi32> to vector<17x128xf32>
    %601 = arith.mulf %594, %600 : vector<17x128xf32>
    %c0_405 = arith.constant 0 : index
    %c0_406 = arith.constant 0 : index
    %602 = vector.load %arg32[%c0_405, %c0_406] : memref<1x128xf32, #tpu.memory_space<vmem>>, vector<1x128xf32>
    %603 = vector.broadcast %602 : vector<1x128xf32> to vector<17x128xf32>
    %604 = arith.mulf %601, %603 : vector<17x128xf32>
    %605 = arith.mulf %604, %600 : vector<17x128xf32>
    %606 = arith.truncf %605 : vector<17x128xf32> to vector<17x128xbf16>
    %c0_407 = arith.constant 0 : index
    %c0_408 = arith.constant 0 : index
    %607 = vector.load %arg33[%c0_407, %c0_408] : memref<128x128xbf16, #tpu.memory_space<vmem>>, vector<128x128xbf16>
    %cst_409 = arith.constant dense<0.000000e+00> : vector<17x128xf32>
    %608 = tpu.matmul %606, %607, %cst_409 {dimension_numbers = #tpu.dot_dimension_numbers<[1], [0], [0], [1], [0, 0, 1, 1], [], []>} : vector<17x128xbf16>, vector<128x128xbf16>, vector<17x128xf32> -> vector<17x128xf32>
    %c0_410 = arith.constant 0 : index
    %c0_411 = arith.constant 0 : index
    %609 = vector.load %arg34[%c0_410, %c0_411] : memref<1x128xf32, #tpu.memory_space<vmem>>, vector<1x128xf32>
    %610 = vector.broadcast %609 : vector<1x128xf32> to vector<17x128xf32>
    %611 = arith.mulf %608, %610 : vector<17x128xf32>
    %c0_412 = arith.constant 0 : index
    %c0_413 = arith.constant 0 : index
    %612 = vector.load %arg35[%c0_412, %c0_413] : memref<1x128xf32, #tpu.memory_space<vmem>>, vector<1x128xf32>
    %613 = vector.broadcast %612 : vector<1x128xf32> to vector<17x128xf32>
    %614 = arith.addf %611, %613 : vector<17x128xf32>
    %cst_414 = arith.constant 0.000000e+00 : f32
    %615 = vector.broadcast %cst_414 : f32 to vector<17x128xf32>
    %616 = arith.maximumf %614, %615 : vector<17x128xf32>
    %cst_415 = arith.constant dense<0.000000e+00> : vector<128xf32>
    %617 = vector.multi_reduction <add>, %616, %cst_415 [0] : vector<17x128xf32> to vector<128xf32>
    %618 = vector.shape_cast %617 : vector<128xf32> to vector<1x128xf32>
    %cst_416 = arith.constant 1.700000e+01 : f32
    %619 = vector.broadcast %cst_416 : f32 to vector<1x128xf32>
    %620 = arith.divf %618, %619 : vector<1x128xf32>
    %621 = arith.truncf %620 : vector<1x128xf32> to vector<1x128xbf16>
    %c0_417 = arith.constant 0 : index
    %c0_418 = arith.constant 0 : index
    %622 = vector.load %arg36[%c0_417, %c0_418] : memref<128x128xbf16, #tpu.memory_space<vmem>>, vector<128x128xbf16>
    %cst_419 = arith.constant dense<0.000000e+00> : vector<1x128xf32>
    %623 = tpu.matmul %621, %622, %cst_419 {dimension_numbers = #tpu.dot_dimension_numbers<[1], [0], [0], [1], [0, 0, 1, 1], [], []>} : vector<1x128xbf16>, vector<128x128xbf16>, vector<1x128xf32> -> vector<1x128xf32>
    %c0_420 = arith.constant 0 : index
    %c0_421 = arith.constant 0 : index
    %624 = vector.load %arg37[%c0_420, %c0_421] : memref<1x128xf32, #tpu.memory_space<vmem>>, vector<1x128xf32>
    %625 = arith.addf %623, %624 : vector<1x128xf32>
    %c0_422 = arith.constant 0 : index
    %c0_423 = arith.constant 0 : index
    %c0_424 = arith.constant 0 : index
    %626 = vector.load %arg38[%c0_422, %c0_423, %c0_424] : memref<1x1x128xf32, #tpu.memory_space<vmem>>, vector<1x1x128xf32>
    %627 = vector.shape_cast %626 : vector<1x1x128xf32> to vector<1x128xf32>
    %628 = vector.shape_cast %625 : vector<1x128xf32> to vector<1x1x128xf32>
    tpu.vector_store %arg38[%c0_422, %c0_423, %c0_424], %628 {strides = array<i32>} : memref<1x1x128xf32, #tpu.memory_space<vmem>>, vector<1x1x128xf32>,
    return
  }
  func.func @transform_0(%arg0: i32, %arg1: memref<2xi32, #tpu.memory_space<smem>>) -> (i32, i32, i32) {
    %c0_i32 = arith.constant 0 : i32
    %c0_i32_0 = arith.constant 0 : i32
    %c0_i32_1 = arith.constant 0 : i32
    return %arg0, %c0_i32, %c0_i32_0 : i32, i32, i32
  }
  func.func @transform_1(%arg0: i32, %arg1: memref<2xi32, #tpu.memory_space<smem>>) -> (i32, i32) {
    %c0_i32 = arith.constant 0 : i32
    %c0_i32_0 = arith.constant 0 : i32
    %c0_i32_1 = arith.constant 0 : i32
    return %c0_i32, %c0_i32_0 : i32, i32
  }
  func.func @transform_2(%arg0: i32, %arg1: memref<2xi32, #tpu.memory_space<smem>>) -> (i32, i32) {
    %c0_i32 = arith.constant 0 : i32
    %c0_i32_0 = arith.constant 0 : i32
    %c0_i32_1 = arith.constant 0 : i32
    return %c0_i32, %c0_i32_0 : i32, i32
  }
  func.func @transform_3(%arg0: i32, %arg1: memref<2xi32, #tpu.memory_space<smem>>) -> (i32, i32) {
    %c0_i32 = arith.constant 0 : i32
    %c0_i32_0 = arith.constant 0 : i32
    %c0_i32_1 = arith.constant 0 : i32
    return %c0_i32, %c0_i32_0 : i32, i32
  }
  func.func @transform_4(%arg0: i32, %arg1: memref<2xi32, #tpu.memory_space<smem>>) -> (i32, i32) {
    %c0_i32 = arith.constant 0 : i32
    %c0_i32_0 = arith.constant 0 : i32
    %c0_i32_1 = arith.constant 0 : i32
    return %c0_i32, %c0_i32_0 : i32, i32
  }
  func.func @transform_5(%arg0: i32, %arg1: memref<2xi32, #tpu.memory_space<smem>>) -> (i32, i32) {
    %c0_i32 = arith.constant 0 : i32
    %c0_i32_0 = arith.constant 0 : i32
    %c0_i32_1 = arith.constant 0 : i32
    return %c0_i32, %c0_i32_0 : i32, i32
  }
  func.func @transform_6(%arg0: i32, %arg1: memref<2xi32, #tpu.memory_space<smem>>) -> (i32, i32) {
    %c0_i32 = arith.constant 0 : i32
    %c0_i32_0 = arith.constant 0 : i32
    %c0_i32_1 = arith.constant 0 : i32
    return %c0_i32, %c0_i32_0 : i32, i32
  }
  func.func @transform_7(%arg0: i32, %arg1: memref<2xi32, #tpu.memory_space<smem>>) -> (i32, i32) {
    %c0_i32 = arith.constant 0 : i32
    %c0_i32_0 = arith.constant 0 : i32
    %c0_i32_1 = arith.constant 0 : i32
    return %c0_i32, %c0_i32_0 : i32, i32
  }
  func.func @transform_8(%arg0: i32, %arg1: memref<2xi32, #tpu.memory_space<smem>>) -> (i32, i32) {
    %c0_i32 = arith.constant 0 : i32
    %c0_i32_0 = arith.constant 0 : i32
    %c0_i32_1 = arith.constant 0 : i32
    return %c0_i32, %c0_i32_0 : i32, i32
  }
  func.func @transform_9(%arg0: i32, %arg1: memref<2xi32, #tpu.memory_space<smem>>) -> (i32, i32) {
    %c0_i32 = arith.constant 0 : i32
    %c0_i32_0 = arith.constant 0 : i32
    %c0_i32_1 = arith.constant 0 : i32
    return %c0_i32, %c0_i32_0 : i32, i32
  }
  func.func @transform_10(%arg0: i32, %arg1: memref<2xi32, #tpu.memory_space<smem>>) -> (i32, i32) {
    %c0_i32 = arith.constant 0 : i32
    %c0_i32_0 = arith.constant 0 : i32
    %c0_i32_1 = arith.constant 0 : i32
    return %c0_i32, %c0_i32_0 : i32, i32
  }
  func.func @transform_11(%arg0: i32, %arg1: memref<2xi32, #tpu.memory_space<smem>>) -> (i32, i32) {
    %c0_i32 = arith.constant 0 : i32
    %c0_i32_0 = arith.constant 0 : i32
    %c0_i32_1 = arith.constant 0 : i32
    return %c0_i32, %c0_i32_0 : i32, i32
  }
  func.func @transform_12(%arg0: i32, %arg1: memref<2xi32, #tpu.memory_space<smem>>) -> (i32, i32) {
    %c0_i32 = arith.constant 0 : i32
    %c0_i32_0 = arith.constant 0 : i32
    %c0_i32_1 = arith.constant 0 : i32
    return %c0_i32, %c0_i32_0 : i32, i32
  }
  func.func @transform_13(%arg0: i32, %arg1: memref<2xi32, #tpu.memory_space<smem>>) -> (i32, i32) {
    %c0_i32 = arith.constant 0 : i32
    %c0_i32_0 = arith.constant 0 : i32
    %c0_i32_1 = arith.constant 0 : i32
    return %c0_i32, %c0_i32_0 : i32, i32
  }
  func.func @transform_14(%arg0: i32, %arg1: memref<2xi32, #tpu.memory_space<smem>>) -> (i32, i32) {
    %c0_i32 = arith.constant 0 : i32
    %c0_i32_0 = arith.constant 0 : i32
    %c0_i32_1 = arith.constant 0 : i32
    return %c0_i32, %c0_i32_0 : i32, i32
  }
  func.func @transform_15(%arg0: i32, %arg1: memref<2xi32, #tpu.memory_space<smem>>) -> (i32, i32) {
    %c0_i32 = arith.constant 0 : i32
    %c0_i32_0 = arith.constant 0 : i32
    %c0_i32_1 = arith.constant 0 : i32
    return %c0_i32, %c0_i32_0 : i32, i32
  }
  func.func @transform_16(%arg0: i32, %arg1: memref<2xi32, #tpu.memory_space<smem>>) -> (i32, i32) {
    %c0_i32 = arith.constant 0 : i32
    %c0_i32_0 = arith.constant 0 : i32
    %c0_i32_1 = arith.constant 0 : i32
    return %c0_i32, %c0_i32_0 : i32, i32
  }
  func.func @transform_17(%arg0: i32, %arg1: memref<2xi32, #tpu.memory_space<smem>>) -> (i32, i32) {
    %c0_i32 = arith.constant 0 : i32
    %c0_i32_0 = arith.constant 0 : i32
    %c0_i32_1 = arith.constant 0 : i32
    return %c0_i32, %c0_i32_0 : i32, i32
  }
  func.func @transform_18(%arg0: i32, %arg1: memref<2xi32, #tpu.memory_space<smem>>) -> (i32, i32) {
    %c0_i32 = arith.constant 0 : i32
    %c0_i32_0 = arith.constant 0 : i32
    %c0_i32_1 = arith.constant 0 : i32
    return %c0_i32, %c0_i32_0 : i32, i32
  }
  func.func @transform_19(%arg0: i32, %arg1: memref<2xi32, #tpu.memory_space<smem>>) -> (i32, i32) {
    %c0_i32 = arith.constant 0 : i32
    %c0_i32_0 = arith.constant 0 : i32
    %c0_i32_1 = arith.constant 0 : i32
    return %c0_i32, %c0_i32_0 : i32, i32
  }
  func.func @transform_20(%arg0: i32, %arg1: memref<2xi32, #tpu.memory_space<smem>>) -> (i32, i32) {
    %c0_i32 = arith.constant 0 : i32
    %c0_i32_0 = arith.constant 0 : i32
    %c0_i32_1 = arith.constant 0 : i32
    return %c0_i32, %c0_i32_0 : i32, i32
  }
  func.func @transform_21(%arg0: i32, %arg1: memref<2xi32, #tpu.memory_space<smem>>) -> (i32, i32) {
    %c0_i32 = arith.constant 0 : i32
    %c0_i32_0 = arith.constant 0 : i32
    %c0_i32_1 = arith.constant 0 : i32
    return %c0_i32, %c0_i32_0 : i32, i32
  }
  func.func @transform_22(%arg0: i32, %arg1: memref<2xi32, #tpu.memory_space<smem>>) -> (i32, i32) {
    %c0_i32 = arith.constant 0 : i32
    %c0_i32_0 = arith.constant 0 : i32
    %c0_i32_1 = arith.constant 0 : i32
    return %c0_i32, %c0_i32_0 : i32, i32
  }
  func.func @transform_23(%arg0: i32, %arg1: memref<2xi32, #tpu.memory_space<smem>>) -> (i32, i32) {
    %c0_i32 = arith.constant 0 : i32
    %c0_i32_0 = arith.constant 0 : i32
    %c0_i32_1 = arith.constant 0 : i32
    return %c0_i32, %c0_i32_0 : i32, i32
  }
  func.func @transform_24(%arg0: i32, %arg1: memref<2xi32, #tpu.memory_space<smem>>) -> (i32, i32) {
    %c0_i32 = arith.constant 0 : i32
    %c0_i32_0 = arith.constant 0 : i32
    %c0_i32_1 = arith.constant 0 : i32
    return %c0_i32, %c0_i32_0 : i32, i32
  }
  func.func @transform_25(%arg0: i32, %arg1: memref<2xi32, #tpu.memory_space<smem>>) -> (i32, i32) {
    %c0_i32 = arith.constant 0 : i32
    %c0_i32_0 = arith.constant 0 : i32
    %c0_i32_1 = arith.constant 0 : i32
    return %c0_i32, %c0_i32_0 : i32, i32
  }
  func.func @transform_26(%arg0: i32, %arg1: memref<2xi32, #tpu.memory_space<smem>>) -> (i32, i32) {
    %c0_i32 = arith.constant 0 : i32
    %c0_i32_0 = arith.constant 0 : i32
    %c0_i32_1 = arith.constant 0 : i32
    return %c0_i32, %c0_i32_0 : i32, i32
  }
  func.func @transform_27(%arg0: i32, %arg1: memref<2xi32, #tpu.memory_space<smem>>) -> (i32, i32) {
    %c0_i32 = arith.constant 0 : i32
    %c0_i32_0 = arith.constant 0 : i32
    %c0_i32_1 = arith.constant 0 : i32
    return %c0_i32, %c0_i32_0 : i32, i32
  }
  func.func @transform_28(%arg0: i32, %arg1: memref<2xi32, #tpu.memory_space<smem>>) -> (i32, i32) {
    %c0_i32 = arith.constant 0 : i32
    %c0_i32_0 = arith.constant 0 : i32
    %c0_i32_1 = arith.constant 0 : i32
    return %c0_i32, %c0_i32_0 : i32, i32
  }
  func.func @transform_29(%arg0: i32, %arg1: memref<2xi32, #tpu.memory_space<smem>>) -> (i32, i32) {
    %c0_i32 = arith.constant 0 : i32
    %c0_i32_0 = arith.constant 0 : i32
    %c0_i32_1 = arith.constant 0 : i32
    return %c0_i32, %c0_i32_0 : i32, i32
  }
  func.func @transform_30(%arg0: i32, %arg1: memref<2xi32, #tpu.memory_space<smem>>) -> (i32, i32) {
    %c0_i32 = arith.constant 0 : i32
    %c0_i32_0 = arith.constant 0 : i32
    %c0_i32_1 = arith.constant 0 : i32
    return %c0_i32, %c0_i32_0 : i32, i32
  }
  func.func @transform_31(%arg0: i32, %arg1: memref<2xi32, #tpu.memory_space<smem>>) -> (i32, i32) {
    %c0_i32 = arith.constant 0 : i32
    %c0_i32_0 = arith.constant 0 : i32
    %c0_i32_1 = arith.constant 0 : i32
    return %c0_i32, %c0_i32_0 : i32, i32
  }
  func.func @transform_32(%arg0: i32, %arg1: memref<2xi32, #tpu.memory_space<smem>>) -> (i32, i32) {
    %c0_i32 = arith.constant 0 : i32
    %c0_i32_0 = arith.constant 0 : i32
    %c0_i32_1 = arith.constant 0 : i32
    return %c0_i32, %c0_i32_0 : i32, i32
  }
  func.func @transform_33(%arg0: i32, %arg1: memref<2xi32, #tpu.memory_space<smem>>) -> (i32, i32) {
    %c0_i32 = arith.constant 0 : i32
    %c0_i32_0 = arith.constant 0 : i32
    %c0_i32_1 = arith.constant 0 : i32
    return %c0_i32, %c0_i32_0 : i32, i32
  }
  func.func @transform_34(%arg0: i32, %arg1: memref<2xi32, #tpu.memory_space<smem>>) -> (i32, i32) {
    %c0_i32 = arith.constant 0 : i32
    %c0_i32_0 = arith.constant 0 : i32
    %c0_i32_1 = arith.constant 0 : i32
    return %c0_i32, %c0_i32_0 : i32, i32
  }
  func.func @transform_35(%arg0: i32, %arg1: memref<2xi32, #tpu.memory_space<smem>>) -> (i32, i32) {
    %c0_i32 = arith.constant 0 : i32
    %c0_i32_0 = arith.constant 0 : i32
    %c0_i32_1 = arith.constant 0 : i32
    return %c0_i32, %c0_i32_0 : i32, i32
  }
  func.func @transform_36(%arg0: i32, %arg1: memref<2xi32, #tpu.memory_space<smem>>) -> (i32, i32, i32) {
    %c0_i32 = arith.constant 0 : i32
    %c0_i32_0 = arith.constant 0 : i32
    %c0_i32_1 = arith.constant 0 : i32
    return %arg0, %c0_i32, %c0_i32_0 : i32, i32, i32
  }
}

</mosaic_0001>

<bundles_post_ra>
// kernel: enc_dec_classification_forward.1
= control target key start
LH: loop header
LB: loop body
LE: loop exit
PB: predicated region body
PF: predicated region fallthrough
CT: control target
= control target key end

     0   :  { %s3880_s6 = smov 1   ;;  %s3881_s10 = smov 2   ;;  %s4913_s0 = inlined_call_operand.smem [shape: u32[38], index: -1, kind: input, shape index: {}] }
   0x1   :  { %s3928_s5 = sld [smem:[%s4913_s0]]   ;;  %s3882_s14 = smov 3  }
   0x2   :  { %s3933_s9 = sld [smem:[%s4913_s0 + %s3880_s6]]   ;;  %s3883_s18 = smov 4  }
   0x3   :  { %s3938_s13 = sld [smem:[%s4913_s0 + %s3881_s10]]   ;;  %s3884_s22 = smov 5  }
   0x4   :  { %s3943_s17 = sld [smem:[%s4913_s0 + %s3882_s14]]   ;;  %s3885_s26 = smov 6  }
   0x5   :  { %s3948_s21 = sld [smem:[%s4913_s0 + %s3883_s18]]   ;;  %s3886_s30 = smov 7  }
   0x6   :  { %s3953_s25 = sld [smem:[%s4913_s0 + %s3884_s22]]   ;;  %s3887_s4 = smov 8  }
   0x7   :  { %s3958_s29 = sld [smem:[%s4913_s0 + %s3885_s26]]   ;;  %s3888_s10 = smov 9  }
   0x8   :  { %4929 = sst [smem:[#allocation9_spill]] %s3933_s9  ;;  %s3889_s15 = smov 10  }
   0x9   :  { %s3963_s3 = sld [smem:[%s4913_s0 + %s3886_s30]]   ;;  %s3890_s20 = smov 11  }
   0xa   :  { %s3968_s8 = sld [smem:[%s4913_s0 + %s3887_s4]]   ;;  %s3891_s26 = smov 12  }
   0xb   :  { %s3973_s14 = sld [smem:[%s4913_s0 + %s3888_s10]]   ;;  %s3892_s1 = smov 13  }
   0xc   :  { %s3978_s19 = sld [smem:[%s4913_s0 + %s3889_s15]]   ;;  %s3893_s7 = smov 14  }
   0xd   :  { %s3983_s24 = sld [smem:[%s4913_s0 + %s3890_s20]]   ;;  %s3894_s15 = smov 15  }
   0xe   :  { %s3988_s30 = sld [smem:[%s4913_s0 + %s3891_s26]]   ;;  %s3895_s22 = smov 16  }
   0xf   :  { %4930 = sst [smem:[#allocation10_spill]] %s3963_s3  ;;  %s3896_s28 = smov 17  }
  0x10   :  { %4931 = sst [smem:[#allocation11_spill]] %s3968_s8  ;;  %s3915_s26 = smov 36  }
  0x11   :  { %s3993_s6 = sld [smem:[%s4913_s0 + %s3892_s1]]   ;;  %s3916_s2 = smov 37  }
  0x12   :  { %s3998_s12 = sld [smem:[%s4913_s0 + %s3893_s7]]   ;;  %s3897_s7 = smov 18  }
  0x13   :  { %s4003_s20 = sld [smem:[%s4913_s0 + %s3894_s15]]   ;;  %s3898_s15 = smov 19  }
  0x14   :  { %4932 = sst [smem:[#allocation12_spill]] %s3988_s30 }
  0x15   :  { %s4008_s27 = sld [smem:[%s4913_s0 + %s3895_s22]]   ;;  %s3899_s22 = smov 20  }
  0x16   :  { %s4013_s4 = sld [smem:[%s4913_s0 + %s3896_s28]]   ;;  %s3900_s28 = smov 21  }
  0x17   :  { %4933 = sst [smem:[#allocation13_spill]] %s3993_s6 }
  0x18   :  { %4934 = sst [smem:[#allocation14_spill]] %s3998_s12 }
  0x19   :  { %4935 = sst [smem:[#allocation15_spill]] %s4003_s20 }
  0x1a   :  { %s4018_s6 = sld [smem:[%s4913_s0 + %s3897_s7]]   ;;  %s3901_s7 = smov 22  }
  0x1b   :  { %4936 = sst [smem:[#allocation16_spill]] %s4008_s27 }
  0x1c   :  { %4937 = sst [smem:[#allocation17_spill]] %s4013_s4 }
  0x1d   :  { %s4023_s20 = sld [smem:[%s4913_s0 + %s3898_s15]]   ;;  %s3902_s15 = smov 23  }
  0x1e   :  { %s4028_s27 = sld [smem:[%s4913_s0 + %s3899_s22]]   ;;  %s3903_s22 = smov 24  }
  0x1f   :  { %s4033_s30 = sld [smem:[%s4913_s0 + %s3900_s28]]   ;;  %s3904_s28 = smov 25  }
  0x20   :  { %4938 = sst [smem:[#allocation18_spill]] %s4018_s6 }
  0x21   :  { %s4038_s6 = sld [smem:[%s4913_s0 + %s3901_s7]]   ;;  %s3905_s7 = smov 26  }
  0x23   :  { %4939 = sst [smem:[#allocation19_spill]] %s4023_s20 }
  0x24   :  { %4940 = sst [smem:[#allocation20_spill]] %s4028_s27 }
  0x25   :  { %4941 = sst [smem:[#allocation21_spill]] %s4033_s30 }
  0x26   :  { %s4043_s20 = sld [smem:[%s4913_s0 + %s3902_s15]]   ;;  %s3906_s15 = smov 27  }
  0x27   :  { %4942 = sst [smem:[#allocation22_spill]] %s4038_s6 }
  0x28   :  { %s4048_s27 = sld [smem:[%s4913_s0 + %s3903_s22]]   ;;  %s3907_s22 = smov 28  }
  0x29   :  { %s4053_s30 = sld [smem:[%s4913_s0 + %s3904_s28]]   ;;  %s3908_s28 = smov 29  }
  0x2a   :  { %s4058_s6 = sld [smem:[%s4913_s0 + %s3905_s7]]   ;;  %s3909_s7 = smov 30  }
  0x2b   :  { %s4068_s1 = sld [smem:[%s4913_s0 + %s3907_s22]]   ;;  %s3911_s22 = smov 32  }
  0x2c   :  { %4943 = sst [smem:[#allocation23_spill]] %s4043_s20 }
  0x2d   :  { %s4063_s20 = sld [smem:[%s4913_s0 + %s3906_s15]]   ;;  %s3910_s15 = smov 31  }
  0x2e   :  { %4944 = sst [smem:[#allocation24_spill]] %s4048_s27 }
  0x2f   :  { %4945 = sst [smem:[#allocation25_spill]] %s4053_s30  ;;  %s3912_s30 = smov 33  }
  0x30   :  { %4946 = sst [smem:[#allocation26_spill]] %s4058_s6 }
  0x31   :  { %4948 = sst [smem:[#allocation28_spill]] %s4068_s1 }
  0x32   :  { %s4073_s10 = sld [smem:[%s4913_s0 + %s3908_s28]]  }
  0x33   :  { %4947 = sst [smem:[#allocation27_spill]] %s4063_s20 }
  0x34   :  { %s4078_s16 = sld [smem:[%s4913_s0 + %s3909_s7]]   ;;  %s3913_s7 = smov 34  }
  0x35   :  { %s4083_s23 = sld [smem:[%s4913_s0 + %s3910_s15]]   ;;  %s3914_s15 = smov 35  }
  0x36   :  { %s4088_s27 = sld [smem:[%s4913_s0 + %s3911_s22]]   ;;  %s81_s22 = sshll.u32 %s3928_s5, 4  ;;  %s82_s22 = int_to_ptr.vmem [resolvable:$true] %s81_s22 }
  0x37   :  { %s4093_s6 = sld [smem:[%s4913_s0 + %s3912_s30]]  }
  0x38   :  { %4949 = sst [smem:[#allocation29_spill]] %s4073_s10 }
  0x39   :  { %s4098_s20 = sld [smem:[%s4913_s0 + %s3913_s7]]   ;;  %s3802_s7 = sshra.s32 %s82_s22, 4  ;;  %s3803_s7 = int_to_ptr.vmem [resolvable:$true] %s3802_s7 }
  0x3a   :  { %4950 = sst [smem:[#allocation30_spill]] %s4078_s16  ;;  %s3804_s11 = scalar_lea.vmem %s3803_s7, 1 }
  0x3b   :  { %4951 = sst [smem:[#allocation31_spill]] %s4083_s23  ;;  %p3805_p0 = scmp.ne.s32.totalorder %s3803_s7, %s3804_s11 }
  0x3c   :  { %4952 = sst [smem:[#allocation32_spill]] %s4088_s27  ;;  %s3806_s23 = scalar_lea.vmem %s3928_s5, 1 }
  0x3d   :  { %4953 = sst [smem:[#allocation33_spill]] %s4093_s6  ;;  %p3807_p1 = scmp.lt.s32.totalorder %s3803_s7, %s3928_s5 }
  0x3e   :  { %s4103_s1 = sld [smem:[%s4913_s0 + %s3914_s15]]   ;;  %p3808_p2 = scmp.lt.s32.totalorder %s3806_s23, %s3804_s11 }
  0x3f   :  { %s4109_s30 = sld [smem:[%s4913_s0 + %s3915_s26]]  }
  0x40   :  { %s4114_s16 = sld [smem:[%s4913_s0 + %s3916_s2]]   ;;  %p3809_p3 = por %p3808_p2, %p3807_p1 }
  0x42   :  { %p3810_p4 = pnand %p3809_p3, %p3805_p0 }
  0x44   :  { %4954 = sst [smem:[#allocation34_spill]] %s4103_s1 }
  0x45   :  { %3813 = shalt.err (!%p3810_p4)  }
  0x46   :  { %s3917_s10 = smov [#allocation4]  }
  0x47   :  { %84 = dma.vmem_to_smem %s82_s22, 16, %s3917_s10, [#allocation3] }
  0x48   :  { %3858 = dma.done.wait [#allocation3], 16 }
  0x49   :  { %3859 = vsyncadd [#allocation3], 4294967280 }
  0x4a   :  { %87 = sfence }
  0x4b   :  { %88 = vsyncpa [#allocation6], 0 }
  0x4c   :  { %90 = vsyncpa [#allocation6 + $0x1], 0  ;;  %s4118_s27 = smov 0   ;;  %s4120_s0 = smov 0  }
  0x4d   :  { %s4122_s6 = smov 0   ;;  %s4124_s15 = smov 0  }
  0x4e LB: > { %s4955_s12 = sld [smem:[#allocation14_spill]]  ;;  %s4139_s5 = sadd.s32 4294967295, %s3878_s15   ;;  %s3878_s15 = sphi %s4124_s15, %s4986_s15   ;;  %s3874_s6 = sphi %s4122_s6, %s4985_s6   ;;  %s3870_s0 = sphi %s4120_s0, %s4984_s0   ;;  %s3866_s27 = sphi %s4118_s27, %s4983_s27  }
  0x4f   : > { %s4956_s1 = sld [smem:[#allocation34_spill]]  ;;  %s3197_s18 = sadd.s32 4294967294, %s3878_s15  }
  0x50   : > { %s4957_s4 = sld [smem:[#allocation17_spill]]  ;;  %s4143_s22 = sadd.s32 1, %s3878_s15  }
  0x51   : > { %s4958_s3 = sld [smem:[#allocation10_spill]]  ;;  %s864_s26 = sadd.s32 1, %s3874_s6 }
  0x52   : > { %s861_s28 = ssub.s32 %s3878_s15, %s4143_s22  ;;  %p874_p5 = scmp.ne.s32.totalorder %s3874_s6, %s3870_s0 }
  0x53   : > { %p862_p6 = scmp.eq.s32.totalorder %s861_s28, 0  ;;  %p875_p7 = scmp.eq.s32.totalorder %s4139_s5, 1 }
  0x54   : > { %p880_p8 = scmp.ne.s32.totalorder %s3870_s0, %s3866_s27  ;;  %p881_p9 = scmp.eq.s32.totalorder %s3197_s18, 1 }
  0x55   : > { %s4154_s2 = scalar_select %p862_p6, %s3874_s6, %s864_s26  }
  0x56   : > { %p4156_p10 = por %p875_p7, %p874_p5  ;;  %p4160_p11 = por %p881_p9, %p880_p8 }
  0x57   : > { %p3200_p12 = scmp.ge.s32.totalorder %s3878_s15, 1  ;;  %p1012_p13 = scmp.lt.s32.totalorder %s3878_s15, 3 }
  0x59   : > { %p1013_p0 = pnand %p3200_p12, %p1012_p13 }
  0x5a   : > { %p1101_p1 = scmp.lt.s32.totalorder (!%p1013_p0), %s4139_s5, 1  ;;  %s4961_s9 = sld [smem:[#allocation9_spill]] (!%p1013_p0) }
  0x5b   : > { %1016 = sbr.rel (%p1013_p0) target bundleno = 1359 (0x54f), region = 164  ;;  %s1106_s23 = sld [smem:[#allocation4 + %s4139_s5]] (!%p1013_p0) }
  0x5c   : > { %s4962_s8 = sld [smem:[#allocation11_spill]] (!%p1013_p0) }
  0x5d   : > { %s4963_s28 = sld [smem:[#allocation12_spill]] (!%p1013_p0) }
  0x60   : > { %v3534_v0 = vld [vmem:[%s3943_s17 + $0x38] sm:$0xff]  ;;  %v1107_v1 = vlaneseq  ;;  %v3918_v2 = vmov 0.0   ;;  %v3533_v3 = vld [vmem:[%s3943_s17 + $0x30] sm:$0xff]  ;;  %s1102_s10 = scalar_select %p1101_p1, %s4139_s5, 1  ;;  %v3532_v7 = vld [vmem:[%s3943_s17 + $0x28] sm:$0xff]  ;;  %vm2995_vm3 = vcmask 1040384  }
  0x61   : > { %1127 = vst [vmem:[#allocation2] sm:$0x1f] %v3918_v2  ;;  %1319 = vmatpush.bf16.msra.mxu0 %v3534_v0  ;;  %v1114_v8 = vstv %s1106_s23  ;;  %v3531_v18 = vld [vmem:[%s3943_s17 + $0x20] sm:$0xff]  ;;  %v3530_v19 = vld [vmem:[%s3943_s17 + $0x18] sm:$0xff]  ;;  %v3529_v24 = vld [vmem:[%s3943_s17 + $0x10] sm:$0xff]  ;;  %s4964_s23 = sld [smem:[#allocation13_spill]] }
  0x62   : > { %v1108_v4 = vshrl.u32 %v1107_v1, 7  ;;  %1128 = vst [vmem:[#allocation2 + $0x16] sm:$0x1f] %v3918_v2  ;;  %s3615_s18 = smul.u32 24, %s1102_s10  ;;  %v3695_v20 = vld [vmem:[%s3938_s13] ss:$0 sm:$0xff] }
  0x63   : > { %2474 = vst [vmem:[#allocation2 + $0x2d] sm:$0xff] %v3918_v2  ;;  %v3696_v21 = vld [vmem:[%s3938_s13 + $0x1] ss:$0 sm:$0xff]  ;;  %v3697_v22 = vld [vmem:[%s3938_s13 + $0x2] ss:$0 sm:$0xff]  ;;  %v3528_v42 = vld [vmem:[%s3943_s17 + $0x8] sm:$0xff] }
  0x64   : > { %v1109_v5 = vadd.s32 8, %v1108_v4  ;;  %v1110_v6 = vadd.s32 16, %v1108_v4  ;;  %s1105_s26 = scalar_lea.vmem %s4961_s9, %s3615_s18  ;;  %vm1115_vm0 = vcmp.lt.s32.totalorder %v1108_v4, %v1114_v8  ;;  %2475 = vst [vmem:[#allocation2 + $0x35] sm:$0xff] %v3918_v2  ;;  %v4203_v23 = vld [vmem:[%s3938_s13 + $0x3] ss:$0 sm:$0xff]  ;;  %s4965_s10 = sld [smem:[#allocation24_spill]] }
  0x65   : > { %1320 = vmatpush.bf16.msra.mxu0 %v3533_v3  ;;  %v1111_v9 = vld [vmem:[%s1105_s26] sm:$0xff]  ;;  %v1112_v10 = vld [vmem:[%s1105_s26 + $0x8] sm:$0xff]  ;;  %v1113_v11 = vld [vmem:[%s1105_s26 + $0x10] sm:$0x1]  ;;  %v4178_v12 = vsel %vm1115_vm0, 1.0, %v3918_v2  ;;  %2476 = vst [vmem:[#allocation2 + $0x3d] sm:$0xff] %v3918_v2 }
  0x66   : > { %vm1116_vm1 = vcmp.lt.s32.totalorder %v1109_v5, %v1114_v8  ;;  %vm1117_vm2 = vcmp.lt.s32.totalorder %v1110_v6, %v1114_v8  ;;  %v4188_v15 = vmul.f32 %v4178_v12, %v1111_v9  ;;  %2477 = vst [vmem:[#allocation2 + $0x45] sm:$0xf] %v3918_v2  ;;  %v4207_v25 = vld [vmem:[%s3938_s13 + $0x4] ss:$0 sm:$0xff]  ;;  %v4216_v35 = vld [vmem:[%s3938_s13 + $0x5] ss:$0 sm:$0xff] }
  0x67   : > { %v4181_v13 = vsel %vm1116_vm1, 1.0, %v3918_v2  ;;  %v4184_v14 = vsel %vm1117_vm2, 1.0, %v3918_v2  ;;  %v4224_v46 = vld [vmem:[%s3938_s13 + $0x6] ss:$0 sm:$0xff]  ;;  %v3702_v58 = vld [vmem:[%s3938_s13 + $0x7] ss:$0 sm:$0xff] }
  0x68   : > { %v4191_v16 = vmul.f32 %v4181_v13, %v1112_v10  ;;  %v1126_v17 = vmul.f32 %v4184_v14, %v1113_v11  ;;  %1129 = vst [vmem:[#allocation2 + $0x5] sm:$0xff] %v4188_v15  ;;  %v3527_v62 = vld [vmem:[%s3943_s17] sm:$0xff]  ;;  %v1192_v6 = vmul.f32 %v4216_v35, %v4188_v15  ;;  %v3703_v9 = vld [vmem:[%s3938_s13 + $0x8] ss:$0 sm:$0xff]  ;;  %s4966_s18 = sld [smem:[#allocation21_spill]] }
  0x69   : > { %1321 = vmatpush.bf16.msra.mxu0 %v3532_v7  ;;  %v4228_v51 = vld [vmem:[#allocation2 + $0x17] sm:$0x1]  ;;  %v4230_v52 = vld [vmem:[#allocation2 + $0x18] sm:$0x1]  ;;  %v4232_v53 = vld [vmem:[#allocation2 + $0x19] sm:$0x1] }
  0x6a   : > { %1130 = vst [vmem:[#allocation2 + $0xd] sm:$0xff] %v4191_v16  ;;  %v4234_v54 = vld [vmem:[#allocation2 + $0x1a] sm:$0x1]  ;;  %s4967_s26 = sld [smem:[#allocation15_spill]] }
  0x6b   : > { %1131 = vst [vmem:[#allocation2 + $0x15] sm:$0x1] %v1126_v17  ;;  %s4977_s9 = sld [smem:[#allocation26_spill]] }
  0x6d   : > { %1322 = vmatpush.bf16.msra.mxu0 %v3531_v18 }
  0x6f   : > { %v1132_v26 = vld [vmem:[#allocation2] sm:$0xff] }
  0x70   : > { %v1143_v27 = vld [vmem:[#allocation2 + $0x1] sm:$0xff]  ;;  %v1137_v30 = vmul.f32 %v3695_v20, %v1132_v26 }
  0x71   : > { %1323 = vmatpush.bf16.msra.mxu0 %v3530_v19  ;;  %v1154_v28 = vld [vmem:[#allocation2 + $0x2] sm:$0xff]  ;;  %v1148_v32 = vmul.f32 %v3696_v21, %v1143_v27  ;;  %v4213_v33 = vld [vmem:[#allocation2 + $0xa] sm:$0xff]  ;;  %v1156_v3 = vld [vmem:[#allocation2 + $0x12] sm:$0x1]  ;;  %v1193_v19 = vmul.f32 %v4216_v35, %v4191_v16 }
  0x72   : > { %v4209_v29 = vld [vmem:[#allocation2 + $0x8] sm:$0xff]  ;;  %v1159_v34 = vmul.f32 %v3697_v22, %v1154_v28  ;;  %v1160_v38 = vmul.f32 %v3697_v22, %v4213_v33  ;;  %v1220_v50 = vld [vmem:[#allocation2 + $0x10] sm:$0xff] }
  0x73   : > { %v4211_v31 = vld [vmem:[#allocation2 + $0x9] sm:$0xff]  ;;  %v1138_v36 = vmul.f32 %v3695_v20, %v4209_v29  ;;  %v1151_v43 = vadd.f32 %v1148_v32, %v1137_v30  ;;  %v1230_v59 = vld [vmem:[#allocation2 + $0x11] sm:$0xff] }
  0x74   : > { %v1149_v37 = vmul.f32 %v3696_v21, %v4211_v31  ;;  %v1165_v39 = vld [vmem:[#allocation2 + $0x3] sm:$0xff]  ;;  %v1166_v40 = vld [vmem:[#allocation2 + $0xb] sm:$0xff]  ;;  %v1167_v4 = vld [vmem:[#allocation2 + $0x13] sm:$0x1] }
  0x75   : > { %v1176_v41 = vld [vmem:[#allocation2 + $0x4] sm:$0xff]  ;;  %v1170_v44 = vmul.f32 %v4203_v23, %v1165_v39  ;;  %v1177_v45 = vld [vmem:[#allocation2 + $0xc] sm:$0xff]  ;;  %1324 = vmatpush.bf16.msra.mxu0 %v3529_v24  ;;  %v1171_v48 = vmul.f32 %v4203_v23, %v1166_v40  ;;  %v1162_v55 = vadd.f32 %v1159_v34, %v1151_v43  ;;  %v1178_v17 = vld [vmem:[#allocation2 + $0x14] sm:$0x1]  ;;  %v1161_v24 = vmul.f32 %v3697_v22, %v1156_v3 }
  0x76   : > { %1357 = vst [vmem:[#allocation2] sm:$0x3f] %v3918_v2  ;;  %v1152_v47 = vadd.f32 %v1149_v37, %v1138_v36  ;;  %v1198_v49 = vld [vmem:[#allocation2 + $0x6] sm:$0xff]  ;;  %v1181_v56 = vmul.f32 %v4207_v25, %v1176_v41  ;;  %v1199_v57 = vld [vmem:[#allocation2 + $0xe] sm:$0xff]  ;;  %v1182_v0 = vmul.f32 %v4207_v25, %v1177_v45  ;;  %v1183_v16 = vmul.f32 %v4207_v25, %v1178_v17  ;;  %v1200_v40 = vld [vmem:[#allocation2 + $0x16] sm:$0x1] }
  0x77   : > { %v1240_v60 = vld [vmem:[#allocation2 + $0x12] sm:$0xff]  ;;  %v1134_v61 = vld [vmem:[#allocation2 + $0x10] sm:$0x1]  ;;  %v1145_v1 = vld [vmem:[#allocation2 + $0x11] sm:$0x1]  ;;  %v1173_v5 = vadd.f32 %v1170_v44, %v1162_v55  ;;  %v1203_v15 = vmul.f32 %v4224_v46, %v1198_v49  ;;  %v1204_v32 = vmul.f32 %v4224_v46, %v1199_v57  ;;  %v1224_v44 = vmul.f32 %v3703_v9, %v4209_v29 }
  0x78   : > { %v1163_v63 = vadd.f32 %v1160_v38, %v1152_v47  ;;  %v1209_v7 = vld [vmem:[#allocation2 + $0x7] sm:$0xff]  ;;  %v1210_v8 = vld [vmem:[#allocation2 + $0xf] sm:$0xff]  ;;  %v1139_v10 = vmul.f32 %v3695_v20, %v1134_v61  ;;  %v1150_v11 = vmul.f32 %v3696_v21, %v1145_v1  ;;  %1358 = vst [vmem:[#allocation2 + $0x17] sm:$0x3f] %v3918_v2  ;;  %v1172_v20 = vmul.f32 %v4203_v23, %v1167_v4  ;;  %v3550_v41 = vld [vmem:[%s3978_s19 + $0x38] sm:$0xff] }
  0x79   : > { %1325 = vmatpush.bf16.msra.mxu0 %v3528_v42  ;;  %v1189_v26 = vld [vmem:[#allocation2 + $0x15] sm:$0x1]  ;;  %v1184_v27 = vadd.f32 %v1181_v56, %v1173_v5  ;;  %v3704_v28 = vld [vmem:[%s3938_s13 + $0x9] ss:$0 sm:$0xff]  ;;  %v1214_v36 = vmul.f32 %v3702_v58, %v1209_v7  ;;  %v3705_v37 = vld [vmem:[%s3938_s13 + $0xa] ss:$0 sm:$0xff]  ;;  %v1215_v39 = vmul.f32 %v3702_v58, %v1210_v8  ;;  %1667 = vmatpush.bf16.msra.mxu2 %v3550_v41 }
  0x7a   : > { %v1174_v18 = vadd.f32 %v1171_v48, %v1163_v63  ;;  %v1153_v30 = vadd.f32 %v1150_v11, %v1139_v10  ;;  %v3549_v42 = vld [vmem:[%s3978_s19 + $0x30] sm:$0xff]  ;;  %v1194_v45 = vmul.f32 %v4216_v35, %v1189_v26  ;;  %v1225_v48 = vmul.f32 %v3703_v9, %v1220_v50  ;;  %v3547_v17 = vld [vmem:[%s3978_s19 + $0x20] sm:$0xff] }
  0x7b   : > { %v1195_v34 = vadd.f32 %v1192_v6, %v1184_v27  ;;  %v1234_v55 = vmul.f32 %v3704_v28, %v4211_v31  ;;  %v1205_v56 = vmul.f32 %v4224_v46, %v1200_v40  ;;  %v1235_v61 = vmul.f32 %v3704_v28, %v1230_v59  ;;  %v3541_v26 = vld [vmem:[%s4958_s3 + $0x30] sm:$0xff]  ;;  %v3540_v27 = vld [vmem:[%s4958_s3 + $0x28] sm:$0xff] }
  0x7c   : > { %v1185_v21 = vadd.f32 %v1182_v0, %v1174_v18  ;;  %v1164_v38 = vadd.f32 %v1161_v24, %v1153_v30  ;;  %v1244_v0 = vmul.f32 %v3705_v37, %v4213_v33  ;;  %v1216_v29 = vmul.f32 %v3702_v58, %v4228_v51  ;;  %v3546_v18 = vld [vmem:[%s3978_s19 + $0x18] sm:$0xff]  ;;  %v3536_v40 = vld [vmem:[%s4958_s3 + $0x8] sm:$0xff] }
  0x7d   : > { %1326 = vmatpush.bf16.msra.mxu0 %v3527_v62  ;;  %v1206_v43 = vadd.f32 %v1203_v15, %v1195_v34  ;;  %v3548_v62 = vld [vmem:[%s3978_s19 + $0x28] sm:$0xff]  ;;  %v1245_v35 = vmul.f32 %v3705_v37, %v1240_v60  ;;  %1668 = vmatpush.bf16.msra.mxu2 %v3549_v42  ;;  %v1226_v31 = vmul.f32 %v3703_v9, %v4230_v52  ;;  %v3542_v24 = vld [vmem:[%s4958_s3 + $0x38] sm:$0xff]  ;;  %v3706_v15 = vld [vmem:[%s3948_s21] ss:$0 sm:$0xff] }
  0x7e   : > { %v1196_v22 = vadd.f32 %v1193_v19, %v1185_v21  ;;  %v1175_v23 = vadd.f32 %v1172_v20, %v1164_v38  ;;  %v1236_v58 = vmul.f32 %v3704_v28, %v4232_v53  ;;  %v1246_v52 = vmul.f32 %v3705_v37, %v4234_v54  ;;  %v3545_v53 = vld [vmem:[%s3978_s19 + $0x10] sm:$0xff]  ;;  %v3544_v19 = vld [vmem:[%s3978_s19 + $0x8] sm:$0xff]  ;;  %v3543_v54 = vld [vmem:[%s3978_s19] sm:$0xff]  ;;  %1569 = vmatpush.bf16.msra.mxu1 %v3542_v24 }
  0x7f   : > { %v1217_v49 = vadd.f32 %v1214_v36, %v1206_v43  ;;  %v3707_v28 = vld [vmem:[%s3953_s25] ss:$0 sm:$0xff]  ;;  %v3538_v34 = vld [vmem:[%s4958_s3 + $0x18] sm:$0xff]  ;;  %v3709_v43 = vld [vmem:[%s3958_s29 + $0x1] ss:$0 sm:$0xff] }
  0x80   : > { %v1207_v47 = vadd.f32 %v1204_v32, %v1196_v22  ;;  %v1186_v25 = vadd.f32 %v1183_v16, %v1175_v23  ;;  %v3539_v21 = vld [vmem:[%s4958_s3 + $0x20] sm:$0xff]  ;;  %v3537_v16 = vld [vmem:[%s4958_s3 + $0x10] sm:$0xff] }
  0x81   : > { %v1227_v63 = vadd.f32 %v1224_v44, %v1217_v49  ;;  %1669 = vmatpush.bf16.msra.mxu2 %v3548_v62  ;;  %v3708_v42 = vld [vmem:[%s3958_s29] ss:$0 sm:$0xff] }
  0x82   : > { %v1218_v57 = vadd.f32 %v1215_v39, %v1207_v47  ;;  %v1197_v1 = vadd.f32 %v1194_v45, %v1186_v25  ;;  %1570 = vmatpush.bf16.msra.mxu1 %v3541_v26  ;;  %v3535_v23 = vld [vmem:[%s4958_s3] sm:$0xff]  ;;  %s4969_s3 = sld [smem:[#allocation16_spill]] }
  0x83   : > { %v1237_v50 = vadd.f32 %v1234_v55, %v1227_v63  ;;  %v4289_v45 = vld [vmem:[%s3958_s29 + $0x2] ss:$0 sm:$0xff]  ;;  %v4292_v47 = vld [vmem:[%s3958_s29 + $0x3] ss:$0 sm:$0xff] }
  0x84   : > { %v1228_v3 = vadd.f32 %v1225_v48, %v1218_v57  ;;  %v1208_v4 = vadd.f32 %v1205_v56, %v1197_v1 }
  0x85   : > { %v1247_v6 = vadd.f32 %v1244_v0, %v1237_v50  ;;  %1670 = vmatpush.bf16.msra.mxu2 %v3547_v17  ;;  %v4299_v50 = vld [vmem:[%s3958_s29 + $0x4] ss:$0 sm:$0xff] }
  0x86   : > { %v1238_v5 = vadd.f32 %v1235_v61, %v1228_v3  ;;  %v1219_v46 = vadd.f32 %v1216_v29, %v1208_v4  ;;  %1571 = vmatpush.bf16.msra.mxu1 %v3540_v27 }
  0x87   : > { %v1250_v59 = vmul.f32 %v4178_v12, %v1247_v6  ;;  %v4303_v6 = vld [vmem:[%s3958_s29 + $0x5] ss:$0 sm:$0xff] }
  0x88   : > { %v1248_v7 = vadd.f32 %v1245_v35, %v1238_v5  ;;  %v1229_v51 = vadd.f32 %v1226_v31, %v1219_v46 }
  0x89   : > { %1671 = vmatpush.bf16.msra.mxu2 %v3546_v18 }
  0x8a   : > { %v1251_v33 = vmul.f32 %v4181_v13, %v1248_v7  ;;  %v1239_v8 = vadd.f32 %v1236_v58, %v1229_v51  ;;  %1572 = vmatpush.bf16.msra.mxu1 %v3539_v21 }
  0x8c   : > { %v1253_v60 = vpack.c.bf16 %v1251_v33, %v1250_v59  ;;  %v1249_v9 = vadd.f32 %v1246_v52, %v1239_v8  ;;  %v4307_v59 = vld [vmem:[%s3958_s29 + $0x6] ss:$0 sm:$0xff] }
  0x8d   : > { %1672 = vmatpush.bf16.msra.mxu2 %v3545_v53 }
  0x8e   : > { %1327 = vmatmul.bf16.vlgmr.msra.gmra.mxu0 %v1253_v60  ;;  %v1252_v10 = vmul.f32 %v4184_v14, %v1249_v9  ;;  %1573 = vmatpush.bf16.msra.mxu1 %v3538_v34 }
  0x90   : > { %v1254_v11 = vpack.c.bf16 %v1252_v10, %v1252_v10  ;;  %v4311_v10 = vld [vmem:[%s3958_s29 + $0x7] ss:$0 sm:$0xff] }
  0x91   : > { %1673 = vmatpush.bf16.msra.mxu2 %v3544_v19 }
  0x92   : > { %1574 = vmatpush.bf16.msra.mxu1 %v3537_v16 }
  0x95   : > { %1674 = vmatpush.bf16.msra.mxu2 %v3543_v54 }
  0x96   : > { %1575 = vmatpush.bf16.msra.mxu1 %v3536_v40 }
  0x9a   : > { %1576 = vmatpush.bf16.msra.mxu1 %v3535_v23 }
  0x9e   : > { %1332 = vmatmul.bf16.gmra.mxu0 %v1254_v11 }
 0x10b   : > { %v1328_v30 = vpop.f32.mrf.mxu0 }
 0x10c   : > { %v1341_v20 = vmul.f32 %v3706_v15, %v1328_v30  ;;  %v4321_v30 = vld [vmem:[%s3958_s29 + $0x8] ss:$0 sm:$0xff] }
 0x10e   : > { %v1348_v32 = vadd.f32 %v3707_v28, %v1341_v20 }
 0x110   : > { %v1351_v36 = vmax.f32 %v1348_v32, 0.0  ;;  %v4326_v32 = vld [vmem:[%s3958_s29 + $0x9] ss:$0 sm:$0xff] }
 0x112   : > { %v1354_v37 = vmul.f32 %v4178_v12, %v1351_v36 }
 0x113   : > { %v1330_v38 = vpop.f32.mrf.mxu0 }
 0x114   : > { %v1342_v22 = vmul.f32 %v3706_v15, %v1330_v38  ;;  %1359 = vst [vmem:[#allocation2 + $0x6] sm:$0xff] %v1354_v37 }
 0x116   : > { %v1349_v39 = vadd.f32 %v3707_v28, %v1342_v22 }
 0x118   : > { %v1352_v41 = vmax.f32 %v1349_v39, 0.0  ;;  %v4330_v39 = vld [vmem:[%s3958_s29 + $0xa] ss:$0 sm:$0xff] }
 0x11a   : > { %v4285_v44 = vmul.f32 %v4181_v13, %v1352_v41 }
 0x11b   : > { %v1333_v48 = vpop.f32.mrf.mxu0  ;;  %v1362_v49 = vld [vmem:[#allocation2] sm:$0xff] }
 0x11c   : > { %v1373_v55 = vld [vmem:[#allocation2 + $0x1] sm:$0xff]  ;;  %v1343_v56 = vmul.f32 %v3706_v15, %v1333_v48  ;;  %v1601_v57 = vpack.c.bf16 %v4285_v44, %v1354_v37  ;;  %1360 = vst [vmem:[#allocation2 + $0xe] sm:$0xff] %v4285_v44  ;;  %v1367_v61 = vmul.f32 %v3708_v42, %v1362_v49  ;;  %v1451_v48 = vld [vmem:[#allocation2 + $0x18] sm:$0x1]  ;;  %v1461_v49 = vld [vmem:[#allocation2 + $0x19] sm:$0x1] }
 0x11d   : > { %v1384_v25 = vld [vmem:[#allocation2 + $0x2] sm:$0xff]  ;;  %v1378_v62 = vmul.f32 %v3709_v43, %v1373_v55  ;;  %v4334_v55 = vld [vmem:[#allocation2 + $0x1a] sm:$0x1] }
 0x11e   : > { %v1395_v63 = vld [vmem:[#allocation2 + $0x3] sm:$0xff]  ;;  %v1350_v29 = vadd.f32 %v3707_v28, %v1343_v56  ;;  %1675 = vmatmul.bf16.vlgmr.msra.gmra.mxu2 %v1601_v57  ;;  %v1389_v35 = vmul.f32 %v4289_v45, %v1384_v25  ;;  %v1433_v28 = vmul.f32 %v4307_v59, %v1354_v37  ;;  %v4336_v25 = vld [vmem:[#allocation2 + $0x1b] sm:$0x1] }
 0x11f   : > { %v1406_v0 = vld [vmem:[#allocation2 + $0x4] sm:$0xff]  ;;  %v1381_v3 = vadd.f32 %v1378_v62, %v1367_v61  ;;  %v1400_v31 = vmul.f32 %v4292_v47, %v1395_v63  ;;  %v4339_v61 = vld [vmem:[#allocation2 + $0x1c] sm:$0x1] }
 0x120   : > { %v1417_v1 = vld [vmem:[#allocation2 + $0x5] sm:$0xff]  ;;  %v1353_v4 = vmax.f32 %v1350_v29, 0.0  ;;  %v1411_v8 = vmul.f32 %v4299_v50, %v1406_v0 }
 0x121   : > { %1708 = vst [vmem:[#allocation2] sm:$0x7f] %v3918_v2  ;;  %v1392_v5 = vadd.f32 %v1389_v35, %v1381_v3  ;;  %v1422_v18 = vmul.f32 %v4303_v6, %v1417_v1 }
 0x122   : > { %v1356_v46 = vmul.f32 %v4184_v14, %v1353_v4 }
 0x123   : > { %v1403_v7 = vadd.f32 %v1400_v31, %v1392_v5  ;;  %v1335_v33 = vpop.f32.mrf.mxu0  ;;  %v1363_v51 = vld [vmem:[#allocation2 + $0x8] sm:$0xff]  ;;  %v1364_v53 = vld [vmem:[#allocation2 + $0x10] sm:$0x1]  ;;  %v1375_v19 = vld [vmem:[#allocation2 + $0x11] sm:$0x1] }
 0x124   : > { %v1374_v58 = vld [vmem:[#allocation2 + $0x9] sm:$0xff]  ;;  %1361 = vst [vmem:[#allocation2 + $0x16] sm:$0x1] %v1356_v46  ;;  %v1368_v52 = vmul.f32 %v3708_v42, %v1363_v51  ;;  %v1369_v34 = vmul.f32 %v3708_v42, %v1364_v53  ;;  %v1380_v36 = vmul.f32 %v3709_v43, %v1375_v19  ;;  %v1386_v40 = vld [vmem:[#allocation2 + $0x12] sm:$0x1]  ;;  %v1602_v62 = vpack.c.bf16 %v1356_v46, %v1356_v46 }
 0x125   : > { %v1385_v60 = vld [vmem:[#allocation2 + $0xa] sm:$0xff]  ;;  %v1379_v9 = vmul.f32 %v3709_v43, %v1374_v58  ;;  %v1414_v17 = vadd.f32 %v1411_v8, %v1403_v7  ;;  %v1454_v43 = vmul.f32 %v4321_v30, %v1363_v51  ;;  %v1397_v57 = vld [vmem:[#allocation2 + $0x13] sm:$0x1]  ;;  %v1391_v35 = vmul.f32 %v4289_v45, %v1386_v40  ;;  %v1408_v7 = vld [vmem:[#allocation2 + $0x14] sm:$0x1] }
 0x126   : > { %v4313_v11 = vld [vmem:[#allocation2 + $0xb] sm:$0xff]  ;;  %v1390_v24 = vmul.f32 %v4289_v45, %v1385_v60  ;;  %v1383_v23 = vadd.f32 %v1380_v36, %v1369_v34  ;;  %v1464_v31 = vmul.f32 %v4326_v32, %v1374_v58  ;;  %v1434_v46 = vmul.f32 %v4307_v59, %v4285_v44 }
 0x127   : > { %v1382_v54 = vadd.f32 %v1379_v9, %v1368_v52  ;;  %v1439_v26 = vld [vmem:[#allocation2 + $0x7] sm:$0xff]  ;;  %v1425_v15 = vadd.f32 %v1422_v18, %v1414_v17  ;;  %v1401_v21 = vmul.f32 %v4292_v47, %v4313_v11  ;;  %v1402_v52 = vmul.f32 %v4292_v47, %v1397_v57  ;;  %v1419_v9 = vld [vmem:[#allocation2 + $0x15] sm:$0x1] }
 0x128   : > { %v4317_v27 = vld [vmem:[#allocation2 + $0xc] sm:$0xff]  ;;  %v1444_v22 = vmul.f32 %v4311_v10, %v1439_v26  ;;  %v1394_v8 = vadd.f32 %v1391_v35, %v1383_v23  ;;  %v1474_v45 = vmul.f32 %v4330_v39, %v1385_v60  ;;  %v3719_v19 = vld [vmem:[%s3958_s29 + $0xb] ss:$0 sm:$0xff]  ;;  %v1424_v26 = vmul.f32 %v4303_v6, %v1419_v9 }
 0x129   : > { %v1393_v20 = vadd.f32 %v1390_v24, %v1382_v54  ;;  %v1418_v38 = vld [vmem:[#allocation2 + $0xd] sm:$0xff]  ;;  %v1436_v16 = vadd.f32 %v1433_v28, %v1425_v15  ;;  %v1412_v37 = vmul.f32 %v4299_v50, %v4317_v27  ;;  %v1413_v54 = vmul.f32 %v4299_v50, %v1408_v7  ;;  %v1441_v24 = vld [vmem:[#allocation2 + $0x17] sm:$0x1]  ;;  %v3562_v7 = vld [vmem:[%s4957_s4 + $0x18] sm:$0xff] }
 0x12a   : > { %v1423_v0 = vmul.f32 %v4303_v6, %v1418_v38  ;;  %v1446_v60 = vmul.f32 %v4311_v10, %v1441_v24  ;;  %v1484_v36 = vmul.f32 %v3719_v19, %v4313_v11  ;;  %v3720_v38 = vld [vmem:[%s3958_s29 + $0xc] ss:$0 sm:$0xff]  ;;  %v1456_v50 = vmul.f32 %v4321_v30, %v1451_v48  ;;  %v3724_v24 = vld [vmem:[%s4963_s28] ss:$0 sm:$0xff]  ;;  %s4968_s28 = sld [smem:[#allocation18_spill]] }
 0x12b   : > { %v1404_v41 = vadd.f32 %v1401_v21, %v1393_v20  ;;  %v1447_v42 = vadd.f32 %v1444_v22, %v1436_v16  ;;  %v1460_v56 = vld [vmem:[#allocation2 + $0x11] sm:$0xff] }
 0x12c   : > { %v1470_v1 = vld [vmem:[#allocation2 + $0x12] sm:$0xff]  ;;  %v1465_v34 = vmul.f32 %v4326_v32, %v1460_v56 }
 0x12d   : > { %v1415_v63 = vadd.f32 %v1412_v37, %v1404_v41  ;;  %v1480_v29 = vld [vmem:[#allocation2 + $0x13] sm:$0xff]  ;;  %v1457_v5 = vadd.f32 %v1454_v43, %v1447_v42  ;;  %v1475_v40 = vmul.f32 %v4330_v39, %v1470_v1  ;;  %v1466_v37 = vmul.f32 %v4326_v32, %v1461_v49 }
 0x12e   : > { %v1490_v3 = vld [vmem:[#allocation2 + $0x14] sm:$0xff]  ;;  %1680 = vmatmul.bf16.gmra.mxu2 %v1602_v62 }
 0x12f   : > { %v1440_v4 = vld [vmem:[#allocation2 + $0xf] sm:$0xff]  ;;  %1709 = vst [vmem:[#allocation2 + $0x18] sm:$0x7f] %v3918_v2  ;;  %v1426_v33 = vadd.f32 %v1423_v0, %v1415_v63  ;;  %v1467_v17 = vadd.f32 %v1464_v31, %v1457_v5  ;;  %v1405_v2 = vadd.f32 %v1402_v52, %v1394_v8  ;;  %v1495_v56 = vmul.f32 %v3720_v38, %v1490_v3  ;;  %v3563_v31 = vld [vmem:[%s4957_s4 + $0x20] sm:$0xff]  ;;  %v3558_v52 = vld [vmem:[%s4955_s12 + $0x38] sm:$0xff] }
 0x130   : > { %v1450_v51 = vld [vmem:[#allocation2 + $0x10] sm:$0xff]  ;;  %v1445_v58 = vmul.f32 %v4311_v10, %v1440_v4  ;;  %v1494_v10 = vmul.f32 %v3720_v38, %v4317_v27  ;;  %v1486_v27 = vmul.f32 %v3719_v19, %v4336_v25  ;;  %v3564_v25 = vld [vmem:[%s4957_s4 + $0x28] sm:$0xff]  ;;  %v3559_v8 = vld [vmem:[%s4957_s4] sm:$0xff]  ;;  %1940 = vmatpush.bf16.msra.mxu3 %v3558_v52 }
 0x131   : > { %v1430_v18 = vld [vmem:[#allocation2 + $0x16] sm:$0x1]  ;;  %v1437_v53 = vadd.f32 %v1434_v46, %v1426_v33  ;;  %v1455_v44 = vmul.f32 %v4321_v30, %v1450_v51  ;;  %v1477_v47 = vadd.f32 %v1474_v45, %v1467_v17  ;;  %v1416_v28 = vadd.f32 %v1413_v54, %v1405_v2  ;;  %v3560_v51 = vld [vmem:[%s4957_s4 + $0x8] sm:$0xff]  ;;  %v3722_v45 = vld [vmem:[%s4962_s8] ss:$0 sm:$0xff]  ;;  %s4971_s8 = sld [smem:[#allocation20_spill]] }
 0x132   : > { %v1435_v20 = vmul.f32 %v4307_v59, %v1430_v18  ;;  %v1485_v59 = vmul.f32 %v3719_v19, %v1480_v29  ;;  %v1476_v30 = vmul.f32 %v4330_v39, %v4334_v55  ;;  %v1496_v29 = vmul.f32 %v3720_v38, %v4339_v61  ;;  %v3566_v55 = vld [vmem:[%s4957_s4 + $0x38] sm:$0xff]  ;;  %v3565_v4 = vld [vmem:[%s4957_s4 + $0x30] sm:$0xff]  ;;  %v3721_v18 = vld [vmem:[%s3983_s24] ss:$0 sm:$0xff] }
 0x133   : > { %v1448_v15 = vadd.f32 %v1445_v58, %v1437_v53  ;;  %v1427_v16 = vadd.f32 %v1424_v26, %v1416_v28  ;;  %v1487_v6 = vadd.f32 %v1484_v36, %v1477_v47  ;;  %2038 = vmatpush.bf16.msrb.mxu0 %v3566_v55  ;;  %v3561_v33 = vld [vmem:[%s4957_s4 + $0x10] sm:$0xff]  ;;  %v3723_v53 = vld [vmem:[%s3973_s14] ss:$0 sm:$0xff]  ;;  %s4970_s4 = sld [smem:[#allocation19_spill]] }
 0x134   : > { %v3557_v17 = vld [vmem:[%s4955_s12 + $0x30] sm:$0xff] }
 0x135   : > { %v1458_v21 = vadd.f32 %v1455_v44, %v1448_v15  ;;  %v1438_v41 = vadd.f32 %v1435_v20, %v1427_v16  ;;  %v1497_v57 = vadd.f32 %v1494_v10, %v1487_v6  ;;  %1941 = vmatpush.bf16.msra.mxu3 %v3557_v17  ;;  %v3556_v15 = vld [vmem:[%s4955_s12 + $0x28] sm:$0xff]  ;;  %v3554_v16 = vld [vmem:[%s4955_s12 + $0x18] sm:$0xff] }
 0x137   : > { %v1468_v22 = vadd.f32 %v1465_v34, %v1458_v21  ;;  %v1449_v42 = vadd.f32 %v1446_v60, %v1438_v41  ;;  %v1500_v48 = vmul.f32 %v4178_v12, %v1497_v57  ;;  %2039 = vmatpush.bf16.msrb.mxu0 %v3565_v4  ;;  %v3555_v60 = vld [vmem:[%s4955_s12 + $0x20] sm:$0xff]  ;;  %v3553_v41 = vld [vmem:[%s4955_s12 + $0x10] sm:$0xff] }
 0x138   : > { %v4402_v57 = vld [vmem:[%s4964_s23 + $0x2] ss:$0 sm:$0xff]  ;;  %v4415_v4 = vld [vmem:[%s4964_s23 + $0x4] ss:$0 sm:$0xff] }
 0x139   : > { %v1478_v23 = vadd.f32 %v1475_v40, %v1468_v22  ;;  %v1459_v11 = vadd.f32 %v1456_v50, %v1449_v42  ;;  %1942 = vmatpush.bf16.msra.mxu3 %v3556_v15 }
 0x13b   : > { %v1488_v43 = vadd.f32 %v1485_v59, %v1478_v23  ;;  %v1469_v63 = vadd.f32 %v1466_v37, %v1459_v11  ;;  %2040 = vmatpush.bf16.msrb.mxu0 %v3564_v25  ;;  %v4393_v37 = vld [vmem:[%s4964_s23] ss:$0 sm:$0xff]  ;;  %v4396_v23 = vld [vmem:[%s4964_s23 + $0x1] ss:$0 sm:$0xff] }
 0x13d   : > { %v1498_v62 = vadd.f32 %v1495_v56, %v1488_v43  ;;  %v1479_v0 = vadd.f32 %v1476_v30, %v1469_v63  ;;  %1943 = vmatpush.bf16.msra.mxu3 %v3555_v60  ;;  %v3552_v63 = vld [vmem:[%s4955_s12 + $0x8] sm:$0xff] }
 0x13e   : > { %v4443_v60 = vld [vmem:[%s4964_s23 + $0x8] ss:$0 sm:$0xff] }
 0x13f   : > { %v1501_v32 = vmul.f32 %v4181_v13, %v1498_v62  ;;  %v1489_v1 = vadd.f32 %v1486_v27, %v1479_v0  ;;  %2041 = vmatpush.bf16.msrb.mxu0 %v3563_v31  ;;  %v4411_v0 = vld [vmem:[%s4964_s23 + $0x3] ss:$0 sm:$0xff] }
 0x140   : > { %v3551_v31 = vld [vmem:[%s4955_s12] sm:$0xff] }
 0x141   : > { %v1503_v49 = vpack.c.bf16 %v1501_v32, %v1500_v48  ;;  %v1499_v3 = vadd.f32 %v1496_v29, %v1489_v1  ;;  %1944 = vmatpush.bf16.msra.mxu3 %v3554_v16 }
 0x143   : > { %1577 = vmatmul.bf16.vlgmr.msra.gmra.mxu1 %v1503_v49  ;;  %v1502_v35 = vmul.f32 %v4184_v14, %v1499_v3  ;;  %2042 = vmatpush.bf16.msrb.mxu0 %v3562_v7 }
 0x145   : > { %v1504_v39 = vpack.c.bf16 %v1502_v35, %v1502_v35  ;;  %1945 = vmatpush.bf16.msra.mxu3 %v3553_v41 }
 0x147   : > { %2043 = vmatpush.bf16.msrb.mxu0 %v3561_v33  ;;  %v4423_v33 = vld [vmem:[%s4964_s23 + $0x5] ss:$0 sm:$0xff] }
 0x149   : > { %1946 = vmatpush.bf16.msra.mxu3 %v3552_v63  ;;  %v4465_v63 = vld [vmem:[%s4964_s23 + $0xb] ss:$0 sm:$0xff] }
 0x14b   : > { %2044 = vmatpush.bf16.msrb.mxu0 %v3560_v51  ;;  %v4427_v51 = vld [vmem:[%s4964_s23 + $0x6] ss:$0 sm:$0xff] }
 0x14d   : > { %1947 = vmatpush.bf16.msra.mxu3 %v3551_v31 }
 0x14f   : > { %2045 = vmatpush.bf16.msrb.mxu0 %v3559_v8 }
 0x153   : > { %1582 = vmatmul.bf16.gmra.mxu1 %v1504_v39 }
 0x1a1   : > { %v1676_v5 = vpop.f32.mrf.mxu2 }
 0x1a2   : > { %v1689_v2 = vmul.f32 %v3721_v18, %v1676_v5  ;;  %v4417_v5 = vld [vmem:[#allocation2 + $0x2d] sm:$0xff] }
 0x1a9   : > { %v1678_v61 = vpop.f32.mrf.mxu2 }
 0x1aa   : > { %v1690_v21 = vmul.f32 %v3721_v18, %v1678_v61 }
 0x1b1   : > { %v1681_v46 = vpop.f32.mrf.mxu2 }
 0x1b2   : > { %v1691_v59 = vmul.f32 %v3721_v18, %v1681_v46 }
 0x1b9   : > { %v1683_v9 = vpop.f32.mrf.mxu2 }
 0x1c0   : > { %v1578_v58 = vpop.f32.mrf.mxu1 }
 0x1c1   : > { %v1591_v19 = vmul.f32 %v3722_v45, %v1578_v58 }
 0x1c3   : > { %v1598_v54 = vadd.f32 %v3723_v53, %v1591_v19 }
 0x1c5   : > { %v1692_v44 = vadd.f32 %v1689_v2, %v1598_v54  ;;  %v4436_v54 = vld [vmem:[%s4964_s23 + $0x7] ss:$0 sm:$0xff] }
 0x1c7   : > { %v1699_v26 = vadd.f32 %v3724_v24, %v1692_v44 }
 0x1c8   : > { %v1580_v47 = vpop.f32.mrf.mxu1 }
 0x1c9   : > { %v1702_v28 = vmax.f32 %v1699_v26, 0.0  ;;  %v1592_v20 = vmul.f32 %v3722_v45, %v1580_v47 }
 0x1cb   : > { %v1599_v34 = vadd.f32 %v3723_v53, %v1592_v20  ;;  %v4387_v36 = vmul.f32 %v4178_v12, %v1702_v28 }
 0x1cd   : > { %v1693_v38 = vadd.f32 %v1690_v21, %v1599_v34  ;;  %1710 = vst [vmem:[#allocation2 + $0x7] sm:$0xff] %v4387_v36 }
 0x1cf   : > { %v1700_v50 = vadd.f32 %v3724_v24, %v1693_v38 }
 0x1d0   : > { %v1583_v22 = vpop.f32.mrf.mxu1 }
 0x1d1   : > { %v1703_v40 = vmax.f32 %v1700_v50, 0.0  ;;  %v1593_v6 = vmul.f32 %v3722_v45, %v1583_v22  ;;  %v1795_v50 = vmul.f32 %v4436_v54, %v4387_v36  ;;  %v4452_v22 = vld [vmem:[%s4964_s23 + $0x9] ss:$0 sm:$0xff] }
 0x1d3   : > { %v1600_v10 = vadd.f32 %v3723_v53, %v1593_v6  ;;  %v4399_v42 = vmul.f32 %v4181_v13, %v1703_v40 }
 0x1d4   : > { %v1713_v43 = vld [vmem:[#allocation2] sm:$0xff] }
 0x1d5   : > { %v1724_v56 = vld [vmem:[#allocation2 + $0x1] sm:$0xff]  ;;  %v1694_v11 = vadd.f32 %v1691_v59, %v1600_v10  ;;  %v1972_v62 = vpack.c.bf16 %v4399_v42, %v4387_v36  ;;  %1711 = vst [vmem:[#allocation2 + $0xf] sm:$0xff] %v4399_v42  ;;  %v1718_v30 = vmul.f32 %v4393_v37, %v1713_v43  ;;  %v4459_v43 = vld [vmem:[%s4964_s23 + $0xa] ss:$0 sm:$0xff] }
 0x1d6   : > { %v1735_v48 = vld [vmem:[#allocation2 + $0x2] sm:$0xff]  ;;  %v1729_v32 = vmul.f32 %v4396_v23, %v1724_v56 }
 0x1d7   : > { %v1746_v49 = vld [vmem:[#allocation2 + $0x3] sm:$0xff]  ;;  %2046 = vmatmul.bf16.vlgmr.msrb.gmra.mxu0 %v1972_v62  ;;  %v1701_v27 = vadd.f32 %v3724_v24, %v1694_v11  ;;  %v1740_v55 = vmul.f32 %v4402_v57, %v1735_v48 }
 0x1d8   : > { %v1757_v1 = vld [vmem:[#allocation2 + $0x4] sm:$0xff]  ;;  %v1585_v35 = vpop.f32.mrf.mxu1  ;;  %v1732_v39 = vadd.f32 %v1729_v32, %v1718_v30  ;;  %v1751_v7 = vmul.f32 %v4411_v0, %v1746_v49 }
 0x1d9   : > { %v1768_v29 = vld [vmem:[#allocation2 + $0x5] sm:$0xff]  ;;  %v1704_v25 = vmax.f32 %v1701_v27, 0.0  ;;  %v1762_v45 = vmul.f32 %v4415_v4, %v1757_v1  ;;  %v1812_v27 = vld [vmem:[#allocation2 + $0x19] sm:$0x1]  ;;  %v1822_v1 = vld [vmem:[#allocation2 + $0x1a] sm:$0x1] }
 0x1da   : > { %v1779_v3 = vld [vmem:[#allocation2 + $0x6] sm:$0xff]  ;;  %v1743_v61 = vadd.f32 %v1740_v55, %v1732_v39  ;;  %v1773_v2 = vmul.f32 %v4423_v33, %v1768_v29  ;;  %v1832_v29 = vld [vmem:[#allocation2 + $0x1b] sm:$0x1]  ;;  %v4472_v35 = vld [vmem:[#allocation2 + $0x1d] sm:$0x1] }
 0x1db   : > { %2079 = vst [vmem:[#allocation2] sm:$0xff] %v4417_v5  ;;  %v1707_v46 = vmul.f32 %v4184_v14, %v1704_v25  ;;  %v1784_v20 = vmul.f32 %v4427_v51, %v1779_v3  ;;  %v4470_v3 = vld [vmem:[#allocation2 + $0x1c] sm:$0x1] }
 0x1dc   : > { %v1714_v8 = vld [vmem:[#allocation2 + $0x8] sm:$0xff]  ;;  %v1754_v17 = vadd.f32 %v1751_v7, %v1743_v61  ;;  %v1715_v26 = vld [vmem:[#allocation2 + $0x10] sm:$0x1]  ;;  %v1726_v15 = vld [vmem:[#allocation2 + $0x11] sm:$0x1] }
 0x1dd   : > { %v1725_v52 = vld [vmem:[#allocation2 + $0x9] sm:$0xff]  ;;  %1712 = vst [vmem:[#allocation2 + $0x17] sm:$0x1] %v1707_v46  ;;  %v1719_v18 = vmul.f32 %v4393_v37, %v1714_v8  ;;  %v1720_v40 = vmul.f32 %v4393_v37, %v1715_v26  ;;  %v1731_v6 = vmul.f32 %v4396_v23, %v1726_v15  ;;  %v1737_v41 = vld [vmem:[#allocation2 + $0x12] sm:$0x1]  ;;  %v1805_v62 = vmul.f32 %v4443_v60, %v1714_v8 }
 0x1de   : > { %v1736_v9 = vld [vmem:[#allocation2 + $0xa] sm:$0xff]  ;;  %v1730_v53 = vmul.f32 %v4396_v23, %v1725_v52  ;;  %v1765_v19 = vadd.f32 %v1762_v45, %v1754_v17  ;;  %v1748_v30 = vld [vmem:[#allocation2 + $0x13] sm:$0x1]  ;;  %v1973_v48 = vpack.c.bf16 %v1707_v46, %v1707_v46  ;;  %v1742_v32 = vmul.f32 %v4402_v57, %v1737_v41  ;;  %v1759_v49 = vld [vmem:[#allocation2 + $0x14] sm:$0x1] }
 0x1df   : > { %v4432_v58 = vld [vmem:[#allocation2 + $0xb] sm:$0xff]  ;;  %v1741_v44 = vmul.f32 %v4402_v57, %v1736_v9  ;;  %v1734_v36 = vadd.f32 %v1731_v6, %v1720_v40  ;;  %v1815_v55 = vmul.f32 %v4452_v22, %v1725_v52  ;;  %v4475_v61 = vld [vmem:[#allocation2 + $0x1e] sm:$0x1]  ;;  %v1796_v26 = vmul.f32 %v4436_v54, %v4399_v42  ;;  %v1802_v6 = vld [vmem:[#allocation2 + $0x18] sm:$0x1] }
 0x1e0   : > { %v1733_v24 = vadd.f32 %v1730_v53, %v1719_v18  ;;  %v4439_v47 = vld [vmem:[#allocation2 + $0xc] sm:$0xff]  ;;  %v1776_v28 = vadd.f32 %v1773_v2, %v1765_v19  ;;  %v1752_v34 = vmul.f32 %v4411_v0, %v4432_v58  ;;  %v1753_v18 = vmul.f32 %v4411_v0, %v1748_v30 }
 0x1e1   : > { %v4447_v38 = vld [vmem:[#allocation2 + $0xd] sm:$0xff]  ;;  %v1763_v10 = vmul.f32 %v4415_v4, %v4439_v47  ;;  %v1745_v45 = vadd.f32 %v1742_v32, %v1734_v36  ;;  %v1825_v2 = vmul.f32 %v4459_v43, %v1736_v9  ;;  %v3737_v52 = vld [vmem:[%s4964_s23 + $0xc] ss:$0 sm:$0xff]  ;;  %v1835_v0 = vmul.f32 %v4465_v63, %v4432_v58 }
 0x1e2   : > { %v1744_v21 = vadd.f32 %v1741_v44, %v1733_v24  ;;  %v1787_v16 = vadd.f32 %v1784_v20, %v1776_v28  ;;  %v4461_v56 = vld [vmem:[#allocation2 + $0xe] sm:$0xff]  ;;  %v1774_v23 = vmul.f32 %v4423_v33, %v4447_v38  ;;  %v1764_v28 = vmul.f32 %v4415_v4, %v1759_v49 }
 0x1e3   : > { %v1785_v57 = vmul.f32 %v4427_v51, %v4461_v56  ;;  %v1770_v24 = vld [vmem:[#allocation2 + $0x15] sm:$0x1]  ;;  %v1756_v15 = vadd.f32 %v1753_v18, %v1745_v45  ;;  %v1845_v42 = vmul.f32 %v3737_v52, %v4439_v47  ;;  %v1807_v30 = vmul.f32 %v4443_v60, %v1802_v6  ;;  %v3574_v6 = vld [vmem:[%s4966_s18 + $0x38] sm:$0xff] }
 0x1e4   : > { %v1755_v59 = vadd.f32 %v1752_v34, %v1744_v21  ;;  %v1798_v11 = vadd.f32 %v1795_v50, %v1787_v16  ;;  %v1821_v25 = vld [vmem:[#allocation2 + $0x12] sm:$0xff]  ;;  %v1775_v40 = vmul.f32 %v4423_v33, %v1770_v24  ;;  %v1817_v47 = vmul.f32 %v4452_v22, %v1812_v27  ;;  %2331 = vmatpush.bf16.msrb.mxu1 %v3574_v6 }
 0x1e5   : > { %v1831_v31 = vld [vmem:[#allocation2 + $0x13] sm:$0xff]  ;;  %v1767_v50 = vadd.f32 %v1764_v28, %v1756_v15  ;;  %v1826_v36 = vmul.f32 %v4459_v43, %v1821_v25  ;;  %v1837_v18 = vmul.f32 %v4465_v63, %v1832_v29 }
 0x1e6   : > { %v1766_v37 = vadd.f32 %v1763_v10, %v1755_v59  ;;  %v1808_v39 = vadd.f32 %v1805_v62, %v1798_v11  ;;  %v1841_v46 = vld [vmem:[#allocation2 + $0x14] sm:$0xff]  ;;  %v3738_v11 = vld [vmem:[%s4964_s23 + $0xd] ss:$0 sm:$0xff]  ;;  %v1836_v49 = vmul.f32 %v4465_v63, %v1831_v31 }
 0x1e7   : > { %2051 = vmatmul.bf16.gmra.mxu0 %v1973_v48  ;;  %v1851_v8 = vld [vmem:[#allocation2 + $0x15] sm:$0xff]  ;;  %v1778_v62 = vadd.f32 %v1775_v40, %v1767_v50  ;;  %v1846_v25 = vmul.f32 %v3737_v52, %v1841_v46  ;;  %v3576_v50 = vld [vmem:[%s4965_s10 + $0x8] sm:$0xff]  ;;  %v3575_v40 = vld [vmem:[%s4965_s10] sm:$0xff] }
 0x1e8   : > { %v1777_v7 = vadd.f32 %v1774_v23, %v1766_v37  ;;  %v1861_v17 = vld [vmem:[#allocation2 + $0x16] sm:$0xff]  ;;  %v1818_v19 = vadd.f32 %v1815_v55, %v1808_v39  ;;  %v1855_v39 = vmul.f32 %v3738_v11, %v4447_v38  ;;  %v3739_v55 = vld [vmem:[%s4964_s23 + $0xe] ss:$0 sm:$0xff] }
 0x1e9   : > { %v1801_v53 = vld [vmem:[#allocation2 + $0x10] sm:$0xff]  ;;  %2080 = vst [vmem:[#allocation2 + $0x19] sm:$0xff] %v4417_v5 }
 0x1ea   : > { %v1788_v44 = vadd.f32 %v1785_v57, %v1777_v7  ;;  %v1811_v20 = vld [vmem:[#allocation2 + $0x11] sm:$0xff]  ;;  %v1828_v21 = vadd.f32 %v1825_v2, %v1818_v19  ;;  %v1806_v9 = vmul.f32 %v4443_v60, %v1801_v53  ;;  %v1856_v19 = vmul.f32 %v3738_v11, %v1851_v8 }
 0x1eb   : > { %v1781_v34 = vld [vmem:[#allocation2 + $0x16] sm:$0x1]  ;;  %v1792_v59 = vld [vmem:[#allocation2 + $0x17] sm:$0x1]  ;;  %v1816_v4 = vmul.f32 %v4452_v22, %v1811_v20  ;;  %v1866_v2 = vmul.f32 %v3739_v55, %v1861_v17  ;;  %v1867_v17 = vmul.f32 %v3739_v55, %v4475_v61  ;;  %v3579_v61 = vld [vmem:[%s4965_s10 + $0x20] sm:$0xff] }
 0x1ec   : > { %v1799_v16 = vadd.f32 %v1796_v26, %v1788_v44  ;;  %v1838_v41 = vadd.f32 %v1835_v0, %v1828_v21  ;;  %v1786_v58 = vmul.f32 %v4427_v51, %v1781_v34  ;;  %v1797_v23 = vmul.f32 %v4436_v54, %v1792_v59  ;;  %v3580_v0 = vld [vmem:[%s4965_s10 + $0x28] sm:$0xff]  ;;  %v3740_v59 = vld [vmem:[%s4968_s28] ss:$0 sm:$0xff]  ;;  %s4975_s28 = sld [smem:[#allocation25_spill]] }
 0x1ed   : > { %v1827_v51 = vmul.f32 %v4459_v43, %v1822_v1  ;;  %v1865_v54 = vmul.f32 %v3739_v55, %v4461_v56  ;;  %v1847_v43 = vmul.f32 %v3737_v52, %v4470_v3  ;;  %v1857_v56 = vmul.f32 %v3738_v11, %v4472_v35  ;;  %v3582_v3 = vld [vmem:[%s4965_s10 + $0x38] sm:$0xff]  ;;  %v3581_v52 = vld [vmem:[%s4965_s10 + $0x30] sm:$0xff] }
 0x1ee   : > { %v1809_v10 = vadd.f32 %v1806_v9, %v1799_v16  ;;  %v1848_v37 = vadd.f32 %v1845_v42, %v1838_v41  ;;  %v1789_v33 = vadd.f32 %v1786_v58, %v1778_v62  ;;  %2429 = vmatpush.bf16.msrb.mxu2 %v3582_v3  ;;  %v3578_v16 = vld [vmem:[%s4965_s10 + $0x18] sm:$0xff]  ;;  %v3577_v9 = vld [vmem:[%s4965_s10 + $0x10] sm:$0xff]  ;;  %v3741_v42 = vld [vmem:[%s4967_s26] ss:$0 sm:$0xff]  ;;  %s4974_s26 = sld [smem:[#allocation28_spill]] }
 0x1ef   : > { %v3573_v41 = vld [vmem:[%s4966_s18 + $0x30] sm:$0xff] }
 0x1f0   : > { %v1819_v48 = vadd.f32 %v1816_v4, %v1809_v10  ;;  %v1800_v7 = vadd.f32 %v1797_v23, %v1789_v33  ;;  %v1858_v45 = vadd.f32 %v1855_v39, %v1848_v37  ;;  %2332 = vmatpush.bf16.msrb.mxu1 %v3573_v41  ;;  %v3742_v10 = vld [vmem:[%s4969_s3] ss:$0 sm:$0xff]  ;;  %v3572_v37 = vld [vmem:[%s4966_s18 + $0x28] sm:$0xff]  ;;  %v4569_v41 = vld [vmem:[%s4971_s8 + $0x6] ss:$0 sm:$0xff]  ;;  %s4972_s3 = sld [smem:[#allocation27_spill]] }
 0x1f2   : > { %v1829_v32 = vadd.f32 %v1826_v36, %v1819_v48  ;;  %v1810_v60 = vadd.f32 %v1807_v30, %v1800_v7  ;;  %v1868_v31 = vadd.f32 %v1865_v54, %v1858_v45  ;;  %2430 = vmatpush.bf16.msrb.mxu2 %v3581_v52  ;;  %v3743_v36 = vld [vmem:[%s4970_s4] ss:$0 sm:$0xff]  ;;  %s4973_s4 = sld [smem:[#allocation22_spill]] }
 0x1f4   : > { %v1839_v57 = vadd.f32 %v1836_v49, %v1829_v32  ;;  %v1820_v22 = vadd.f32 %v1817_v47, %v1810_v60  ;;  %v1871_v1 = vmul.f32 %v4178_v12, %v1868_v31  ;;  %2333 = vmatpush.bf16.msrb.mxu1 %v3572_v37  ;;  %v3571_v32 = vld [vmem:[%s4966_s18 + $0x20] sm:$0xff] }
 0x1f5   : > { %v4544_v31 = vld [vmem:[%s4971_s8 + $0x2] ss:$0 sm:$0xff] }
 0x1f6   : > { %v1849_v53 = vadd.f32 %v1846_v25, %v1839_v57  ;;  %v1830_v24 = vadd.f32 %v1827_v51, %v1820_v22  ;;  %2431 = vmatpush.bf16.msrb.mxu2 %v3580_v0  ;;  %v3570_v51 = vld [vmem:[%s4966_s18 + $0x18] sm:$0xff] }
 0x1f8   : > { %v1859_v27 = vadd.f32 %v1856_v19, %v1849_v53  ;;  %v1840_v44 = vadd.f32 %v1837_v18, %v1830_v24  ;;  %2334 = vmatpush.bf16.msrb.mxu1 %v3571_v32  ;;  %v3569_v18 = vld [vmem:[%s4966_s18 + $0x10] sm:$0xff]  ;;  %v4533_v53 = vld [vmem:[%s4971_s8] ss:$0 sm:$0xff]  ;;  %v4536_v19 = vld [vmem:[%s4971_s8 + $0x1] ss:$0 sm:$0xff] }
 0x1fa   : > { %v1869_v38 = vadd.f32 %v1866_v2, %v1859_v27  ;;  %v1850_v29 = vadd.f32 %v1847_v43, %v1840_v44  ;;  %2432 = vmatpush.bf16.msrb.mxu2 %v3579_v61  ;;  %v2089_v2 = vmul.f32 %v4417_v5, %v4533_v53 }
 0x1fc   : > { %v1872_v46 = vmul.f32 %v4181_v13, %v1869_v38  ;;  %v1860_v8 = vadd.f32 %v1857_v56, %v1850_v29  ;;  %2335 = vmatpush.bf16.msrb.mxu1 %v3570_v51 }
 0x1fe   : > { %v1874_v63 = vpack.c.bf16 %v1872_v46, %v1871_v1  ;;  %v1870_v26 = vadd.f32 %v1867_v17, %v1860_v8  ;;  %2433 = vmatpush.bf16.msrb.mxu2 %v3578_v16  ;;  %v3568_v1 = vld [vmem:[%s4966_s18 + $0x8] sm:$0xff] }
 0x200   : > { %1948 = vmatmul.bf16.vlgmr.msra.gmra.mxu3 %v1874_v63  ;;  %v1873_v15 = vmul.f32 %v4184_v14, %v1870_v26  ;;  %2336 = vmatpush.bf16.msrb.mxu1 %v3569_v18  ;;  %v4552_v63 = vld [vmem:[%s4971_s8 + $0x3] ss:$0 sm:$0xff] }
 0x202   : > { %v1875_v28 = vpack.c.bf16 %v1873_v15, %v1873_v15  ;;  %2434 = vmatpush.bf16.msrb.mxu2 %v3577_v9 }
 0x204   : > { %2337 = vmatpush.bf16.msrb.mxu1 %v3568_v1 }
 0x206   : > { %2435 = vmatpush.bf16.msrb.mxu2 %v3576_v50 }
 0x20a   : > { %2436 = vmatpush.bf16.msrb.mxu2 %v3575_v40 }
 0x210   : > { %1953 = vmatmul.bf16.gmra.mxu3 %v1875_v28 }
 0x254   : > { %v2047_v35 = vpop.f32.mrf.mxu0 }
 0x255   : > { %v2060_v62 = vmul.f32 %v3740_v59, %v2047_v35  ;;  %v4556_v35 = vld [vmem:[%s4971_s8 + $0x4] ss:$0 sm:$0xff] }
 0x25c   : > { %v2049_v20 = vpop.f32.mrf.mxu0 }
 0x25d   : > { %v2061_v49 = vmul.f32 %v3740_v59, %v2049_v20 }
 0x264   : > { %v2052_v21 = vpop.f32.mrf.mxu0 }
 0x265   : > { %v2062_v54 = vmul.f32 %v3740_v59, %v2052_v21  ;;  %v3567_v21 = vld [vmem:[%s4966_s18] sm:$0xff] }
 0x266   : > { %2338 = vmatpush.bf16.msrb.mxu1 %v3567_v21 }
 0x26c   : > { %v2054_v34 = vpop.f32.mrf.mxu0 }
 0x26d   : > { %v4562_v34 = vld [vmem:[%s4971_s8 + $0x5] ss:$0 sm:$0xff] }
 0x283   : > { %v1949_v4 = vpop.f32.mrf.mxu3 }
 0x284   : > { %v1962_v11 = vmul.f32 %v3741_v42, %v1949_v4 }
 0x286   : > { %v1969_v58 = vadd.f32 %v3742_v10, %v1962_v11  ;;  %v4579_v11 = vld [vmem:[%s4971_s8 + $0x7] ss:$0 sm:$0xff] }
 0x288   : > { %v2063_v30 = vadd.f32 %v2060_v62, %v1969_v58 }
 0x28a   : > { %v2070_v48 = vadd.f32 %v3743_v36, %v2063_v30 }
 0x28b   : > { %v1951_v33 = vpop.f32.mrf.mxu3 }
 0x28c   : > { %v2073_v23 = vmax.f32 %v2070_v48, 0.0  ;;  %v1963_v47 = vmul.f32 %v3741_v42, %v1951_v33 }
 0x28e   : > { %v1970_v39 = vadd.f32 %v3742_v10, %v1963_v47  ;;  %v4527_v55 = vmul.f32 %v4178_v12, %v2073_v23 }
 0x290   : > { %v2064_v7 = vadd.f32 %v2061_v49, %v1970_v39  ;;  %2081 = vst [vmem:[#allocation2 + $0x8] sm:$0xff] %v4527_v55  ;;  %v4593_v39 = vld [vmem:[%s4971_s8 + $0x8] ss:$0 sm:$0xff] }
 0x292   : > { %v2071_v57 = vadd.f32 %v3743_v36, %v2064_v7 }
 0x293   : > { %v1954_v25 = vpop.f32.mrf.mxu3 }
 0x294   : > { %v2074_v45 = vmax.f32 %v2071_v57, 0.0  ;;  %v1964_v60 = vmul.f32 %v3741_v42, %v1954_v25  ;;  %v2090_v42 = vmul.f32 %v4533_v53, %v4527_v55 }
 0x296   : > { %v1971_v22 = vadd.f32 %v3742_v10, %v1964_v60  ;;  %v4539_v27 = vmul.f32 %v4181_v13, %v2074_v45  ;;  %v4599_v45 = vld [vmem:[%s4971_s8 + $0x9] ss:$0 sm:$0xff] }
 0x297   : > { %v2095_v24 = vld [vmem:[#allocation2 + $0x1] sm:$0xff] }
 0x298   : > { %v2106_v38 = vld [vmem:[#allocation2 + $0x2] sm:$0xff]  ;;  %v2065_v44 = vadd.f32 %v2062_v54, %v1971_v22  ;;  %v2363_v43 = vpack.c.bf16 %v4539_v27, %v4527_v55  ;;  %2082 = vst [vmem:[#allocation2 + $0x10] sm:$0xff] %v4539_v27  ;;  %v2100_v46 = vmul.f32 %v4536_v19, %v2095_v24  ;;  %v4606_v24 = vld [vmem:[%s4971_s8 + $0xa] ss:$0 sm:$0xff] }
 0x299   : > { %v2117_v29 = vld [vmem:[#allocation2 + $0x3] sm:$0xff]  ;;  %v2111_v26 = vmul.f32 %v4544_v31, %v2106_v38 }
 0x29a   : > { %v2128_v56 = vld [vmem:[#allocation2 + $0x4] sm:$0xff]  ;;  %2437 = vmatmul.bf16.vlgmr.msrb.gmra.mxu2 %v2363_v43  ;;  %v2072_v8 = vadd.f32 %v3743_v36, %v2065_v44  ;;  %v2103_v17 = vadd.f32 %v2100_v46, %v2089_v2  ;;  %v2122_v61 = vmul.f32 %v4552_v63, %v2117_v29  ;;  %v2176_v44 = vmul.f32 %v4593_v39, %v4527_v55 }
 0x29b   : > { %v2139_v15 = vld [vmem:[#allocation2 + $0x5] sm:$0xff]  ;;  %v1956_v52 = vpop.f32.mrf.mxu3  ;;  %v2133_v6 = vmul.f32 %v4556_v35, %v2128_v56 }
 0x29c   : > { %v2150_v28 = vld [vmem:[#allocation2 + $0x6] sm:$0xff]  ;;  %v2075_v20 = vmax.f32 %v2072_v8, 0.0  ;;  %v2114_v0 = vadd.f32 %v2111_v26, %v2103_v17  ;;  %v2144_v36 = vmul.f32 %v4562_v34, %v2139_v15 }
 0x29d   : > { %v2161_v3 = vld [vmem:[#allocation2 + $0x7] sm:$0xff]  ;;  %v2155_v49 = vmul.f32 %v4569_v41, %v2150_v28 }
 0x29e   : > { %2470 = vst [vmem:[#allocation2] sm:$0xff] %v4417_v5  ;;  %v2078_v16 = vmul.f32 %v4184_v14, %v2075_v20  ;;  %v2125_v9 = vadd.f32 %v2122_v61, %v2114_v0  ;;  %v2166_v25 = vmul.f32 %v4579_v11, %v2161_v3  ;;  %v4611_v43 = vld [vmem:[%s4971_s8 + $0xb] ss:$0 sm:$0xff]  ;;  %v3756_v0 = vld [vmem:[%s4971_s8 + $0xc] ss:$0 sm:$0xff] }
 0x29f   : > { %v2096_v50 = vld [vmem:[#allocation2 + $0x9] sm:$0xff]  ;;  %v2097_v47 = vld [vmem:[#allocation2 + $0x11] sm:$0x1]  ;;  %v2108_v54 = vld [vmem:[#allocation2 + $0x12] sm:$0x1] }
 0x2a0   : > { %v4565_v40 = vld [vmem:[#allocation2 + $0xa] sm:$0xff]  ;;  %2083 = vst [vmem:[#allocation2 + $0x18] sm:$0x1] %v2078_v16  ;;  %v2101_v59 = vmul.f32 %v4536_v19, %v2096_v50  ;;  %v2136_v62 = vadd.f32 %v2133_v6, %v2125_v9  ;;  %v2102_v18 = vmul.f32 %v4536_v19, %v2097_v47  ;;  %v2119_v46 = vld [vmem:[#allocation2 + $0x13] sm:$0x1]  ;;  %v2113_v17 = vmul.f32 %v4544_v31, %v2108_v54 }
 0x2a1   : > { %v4574_v10 = vld [vmem:[#allocation2 + $0xb] sm:$0xff]  ;;  %v2112_v33 = vmul.f32 %v4544_v31, %v4565_v40  ;;  %v2130_v29 = vld [vmem:[#allocation2 + $0x14] sm:$0x1]  ;;  %v2141_v26 = vld [vmem:[#allocation2 + $0x15] sm:$0x1]  ;;  %v2186_v55 = vmul.f32 %v4599_v45, %v2096_v50  ;;  %v2196_v50 = vmul.f32 %v4606_v24, %v4565_v40 }
 0x2a2   : > { %v4576_v4 = vld [vmem:[#allocation2 + $0xc] sm:$0xff]  ;;  %v2104_v37 = vadd.f32 %v2101_v59, %v2090_v42  ;;  %v2147_v32 = vadd.f32 %v2144_v36, %v2136_v62  ;;  %v2123_v51 = vmul.f32 %v4552_v63, %v4574_v10  ;;  %v2152_v15 = vld [vmem:[#allocation2 + $0x16] sm:$0x1]  ;;  %v2163_v28 = vld [vmem:[#allocation2 + $0x17] sm:$0x1]  ;;  %v2124_v36 = vmul.f32 %v4552_v63, %v2119_v46 }
 0x2a3   : > { %v4581_v58 = vld [vmem:[#allocation2 + $0xd] sm:$0xff]  ;;  %v2134_v2 = vmul.f32 %v4556_v35, %v4576_v4  ;;  %v2183_v61 = vld [vmem:[#allocation2 + $0x19] sm:$0x1]  ;;  %v2193_v9 = vld [vmem:[#allocation2 + $0x1a] sm:$0x1]  ;;  %v2146_v54 = vmul.f32 %v4562_v34, %v2141_v26  ;;  %v2157_v46 = vmul.f32 %v4569_v41, %v2152_v15 }
 0x2a4   : > { %v4584_v30 = vld [vmem:[#allocation2 + $0xe] sm:$0xff]  ;;  %v2115_v7 = vadd.f32 %v2112_v33, %v2104_v37  ;;  %v2158_v57 = vadd.f32 %v2155_v49, %v2147_v32  ;;  %v2145_v19 = vmul.f32 %v4562_v34, %v4581_v58  ;;  %v2203_v47 = vld [vmem:[#allocation2 + $0x1b] sm:$0x1]  ;;  %v3757_v40 = vld [vmem:[%s4971_s8 + $0xd] ss:$0 sm:$0xff]  ;;  %v2168_v34 = vmul.f32 %v4579_v11, %v2163_v28 }
 0x2a5   : > { %v4586_v48 = vld [vmem:[#allocation2 + $0xf] sm:$0xff]  ;;  %v2156_v6 = vmul.f32 %v4569_v41, %v4584_v30  ;;  %v2188_v26 = vmul.f32 %v4599_v45, %v2183_v61  ;;  %v2208_v28 = vmul.f32 %v4611_v43, %v2203_v47 }
 0x2a6   : > { %2471 = vst [vmem:[#allocation2 + $0x8] sm:$0xff] %v4417_v5  ;;  %v2086_v23 = vld [vmem:[#allocation2 + $0x10] sm:$0x1]  ;;  %v2126_v22 = vadd.f32 %v2123_v51, %v2115_v7  ;;  %v2169_v38 = vadd.f32 %v2166_v25, %v2158_v57  ;;  %v2167_v49 = vmul.f32 %v4579_v11, %v4586_v48  ;;  %v2135_v51 = vmul.f32 %v4556_v35, %v2130_v29 }
 0x2a7   : > { %v2091_v60 = vmul.f32 %v4533_v53, %v2086_v23  ;;  %v2364_v53 = vpack.c.bf16 %v2078_v16, %v2078_v16  ;;  %v2182_v8 = vld [vmem:[#allocation2 + $0x11] sm:$0xff]  ;;  %v2206_v57 = vmul.f32 %v4611_v43, %v4574_v10  ;;  %v2226_v29 = vmul.f32 %v3757_v40, %v4581_v58  ;;  %v3760_v11 = vld [vmem:[%s4971_s8 + $0x10] ss:$0 sm:$0xff] }
 0x2a8   : > { %v2137_v56 = vadd.f32 %v2134_v2, %v2126_v22  ;;  %v2179_v3 = vadd.f32 %v2176_v44, %v2169_v38  ;;  %v2192_v52 = vld [vmem:[#allocation2 + $0x12] sm:$0xff]  ;;  %v2216_v2 = vmul.f32 %v3756_v0, %v4576_v4  ;;  %v3758_v38 = vld [vmem:[%s4971_s8 + $0xe] ss:$0 sm:$0xff]  ;;  %v2187_v44 = vmul.f32 %v4599_v45, %v2182_v8 }
 0x2a9   : > { %v2105_v1 = vadd.f32 %v2102_v18, %v2091_v60  ;;  %v2202_v20 = vld [vmem:[#allocation2 + $0x13] sm:$0xff]  ;;  %v2177_v60 = vmul.f32 %v4593_v39, %v4539_v27  ;;  %v2236_v4 = vmul.f32 %v3758_v38, %v4584_v30  ;;  %v2198_v58 = vmul.f32 %v4606_v24, %v2193_v9 }
 0x2aa   : > { %v2212_v21 = vld [vmem:[#allocation2 + $0x14] sm:$0xff]  ;;  %2442 = vmatmul.bf16.gmra.mxu2 %v2364_v53  ;;  %v2148_v16 = vadd.f32 %v2145_v19, %v2137_v56  ;;  %v2189_v37 = vadd.f32 %v2186_v55, %v2179_v3  ;;  %v2197_v56 = vmul.f32 %v4606_v24, %v2192_v52  ;;  %v2207_v8 = vmul.f32 %v4611_v43, %v2202_v20  ;;  %v3759_v55 = vld [vmem:[%s4971_s8 + $0xf] ss:$0 sm:$0xff]  ;;  %s4976_s8 = sld [smem:[#allocation23_spill]] }
 0x2ab   : > { %v2222_v42 = vld [vmem:[#allocation2 + $0x15] sm:$0xff]  ;;  %v2116_v62 = vadd.f32 %v2113_v17, %v2105_v1  ;;  %v2217_v52 = vmul.f32 %v3756_v0, %v2212_v21  ;;  %v2246_v45 = vmul.f32 %v3759_v55, %v4586_v48  ;;  %v2256_v24 = vmul.f32 %v3760_v11, %v4539_v27 }
 0x2ac   : > { %v2232_v59 = vld [vmem:[#allocation2 + $0x16] sm:$0xff]  ;;  %v2159_v32 = vadd.f32 %v2156_v6, %v2148_v16  ;;  %v2199_v63 = vadd.f32 %v2196_v50, %v2189_v37  ;;  %v2227_v37 = vmul.f32 %v3757_v40, %v2222_v42 }
 0x2ad   : > { %v2242_v31 = vld [vmem:[#allocation2 + $0x17] sm:$0xff]  ;;  %v2127_v7 = vadd.f32 %v2124_v36, %v2116_v62 }
 0x2ae   : > { %v2252_v33 = vld [vmem:[#allocation2 + $0x18] sm:$0xff]  ;;  %2472 = vst [vmem:[#allocation2 + $0x10] sm:$0xff] %v4417_v5  ;;  %v2170_v25 = vadd.f32 %v2167_v49, %v2159_v32  ;;  %v2209_v22 = vadd.f32 %v2206_v57, %v2199_v63  ;;  %v2237_v49 = vmul.f32 %v3758_v38, %v2232_v59  ;;  %v2247_v9 = vmul.f32 %v3759_v55, %v2242_v31 }
 0x2af   : > { %v2173_v23 = vld [vmem:[#allocation2 + $0x18] sm:$0x1]  ;;  %v2138_v18 = vadd.f32 %v2135_v51, %v2127_v7  ;;  %v2213_v36 = vld [vmem:[#allocation2 + $0x1c] sm:$0x1]  ;;  %v2223_v50 = vld [vmem:[#allocation2 + $0x1d] sm:$0x1]  ;;  %v2257_v43 = vmul.f32 %v3760_v11, %v2252_v33 }
 0x2b0   : > { %2473 = vst [vmem:[#allocation2 + $0x18] sm:$0xf] %v4417_v5  ;;  %v2180_v35 = vadd.f32 %v2177_v60, %v2170_v25  ;;  %v2219_v10 = vadd.f32 %v2216_v2, %v2209_v22  ;;  %v2178_v15 = vmul.f32 %v4593_v39, %v2173_v23  ;;  %v2218_v20 = vmul.f32 %v3756_v0, %v2213_v36  ;;  %v2233_v63 = vld [vmem:[#allocation2 + $0x1e] sm:$0x1]  ;;  %v2243_v0 = vld [vmem:[#allocation2 + $0x1f] sm:$0x1] }
 0x2b1   : > { %v2149_v1 = vadd.f32 %v2146_v54, %v2138_v18  ;;  %v2228_v51 = vmul.f32 %v3757_v40, %v2223_v50  ;;  %v2238_v60 = vmul.f32 %v3758_v38, %v2233_v63  ;;  %v2248_v31 = vmul.f32 %v3759_v55, %v2243_v0  ;;  %v2253_v22 = vld [vmem:[#allocation2 + $0x20] sm:$0x1]  ;;  %v4688_v63 = vld [vmem:[%s4972_s3 + $0x7] ss:$0 sm:$0xff] }
 0x2b2   : > { %v2190_v53 = vadd.f32 %v2187_v44, %v2180_v35  ;;  %v2229_v17 = vadd.f32 %v2226_v29, %v2219_v10  ;;  %v2258_v33 = vmul.f32 %v3760_v11, %v2253_v22  ;;  %v3766_v10 = vld [vmem:[%s4972_s3 + $0x1] ss:$0 sm:$0xff]  ;;  %v2492_v29 = vld [vmem:[#allocation2 + $0x2] sm:$0xff]  ;;  %v4683_v50 = vld [vmem:[%s4976_s8] ss:$0 sm:$0xff]  ;;  %s4979_s8 = sld [smem:[#allocation29_spill]] }
 0x2b3   : > { %v2160_v19 = vadd.f32 %v2157_v46, %v2149_v1  ;;  %v3765_v46 = vld [vmem:[%s4972_s3] ss:$0 sm:$0xff] }
 0x2b4   : > { %v2200_v3 = vadd.f32 %v2197_v56, %v2190_v53  ;;  %v2239_v6 = vadd.f32 %v2236_v4, %v2229_v17  ;;  %v2486_v56 = vmul.f32 %v4417_v5, %v3765_v46  ;;  %v2503_v17 = vld [vmem:[#allocation2 + $0x4] sm:$0xff] }
 0x2b5   : > { %v2171_v41 = vadd.f32 %v2168_v34, %v2160_v19  ;;  %v2497_v19 = vmul.f32 %v3766_v10, %v2492_v29  ;;  %v3767_v34 = vld [vmem:[%s4972_s3 + $0x2] ss:$0 sm:$0xff]  ;;  %v2504_v11 = vld [vmem:[#allocation2 + $0xc] sm:$0xff] }
 0x2b6   : > { %v2210_v16 = vadd.f32 %v2207_v8, %v2200_v3  ;;  %v2249_v39 = vadd.f32 %v2246_v45, %v2239_v6  ;;  %v3768_v3 = vld [vmem:[%s4972_s3 + $0x3] ss:$0 sm:$0xff]  ;;  %v2514_v8 = vld [vmem:[#allocation2 + $0x6] sm:$0xff]  ;;  %v4676_v45 = vld [vmem:[%s4973_s4] ss:$0 sm:$0xff]  ;;  %s4980_s4 = sld [smem:[#allocation30_spill]] }
 0x2b7   : > { %v2181_v62 = vadd.f32 %v2178_v15, %v2171_v41  ;;  %v2500_v4 = vadd.f32 %v2497_v19, %v2486_v56  ;;  %v2519_v15 = vmul.f32 %v3768_v3, %v2514_v8  ;;  %v4706_v19 = vld [vmem:[%s4972_s3 + $0x9] ss:$0 sm:$0xff] }
 0x2b8   : > { %v2220_v30 = vadd.f32 %v2217_v52, %v2210_v16  ;;  %v2259_v47 = vadd.f32 %v2256_v24, %v2249_v39  ;;  %v2493_v16 = vld [vmem:[#allocation2 + $0xa] sm:$0xff]  ;;  %v2509_v39 = vmul.f32 %v3767_v34, %v2504_v11  ;;  %v2494_v24 = vld [vmem:[#allocation2 + $0x12] sm:$0x1] }
 0x2b9   : > { %v2191_v61 = vadd.f32 %v2188_v26, %v2181_v62  ;;  %v2508_v26 = vmul.f32 %v3767_v34, %v2503_v17  ;;  %v4669_v62 = vld [vmem:[%s4972_s3 + $0x5] ss:$0 sm:$0xff]  ;;  %v2498_v36 = vmul.f32 %v3766_v10, %v2493_v16 }
 0x2ba   : > { %v2230_v32 = vadd.f32 %v2227_v37, %v2220_v30  ;;  %v2262_v59 = vmul.f32 %v4178_v12, %v2259_v47  ;;  %v2539_v30 = vmul.f32 %v4669_v62, %v2493_v16  ;;  %v4673_v37 = vld [vmem:[%s4972_s3 + $0x6] ss:$0 sm:$0xff]  ;;  %v2499_v47 = vmul.f32 %v3766_v10, %v2494_v24  ;;  %v2535_v10 = vld [vmem:[#allocation2 + $0x12] sm:$0xff] }
 0x2bb   : > { %v2201_v23 = vadd.f32 %v2198_v58, %v2191_v61  ;;  %v2511_v41 = vadd.f32 %v2508_v26, %v2500_v4  ;;  %v4664_v58 = vld [vmem:[%s4972_s3 + $0x4] ss:$0 sm:$0xff]  ;;  %v3590_v61 = vld [vmem:[%s4974_s26 + $0x38] sm:$0xff]  ;;  %v2540_v16 = vmul.f32 %v4669_v62, %v2535_v10 }
 0x2bc   : > { %v2240_v21 = vadd.f32 %v2237_v49, %v2230_v32  ;;  %v2529_v6 = vmul.f32 %v4417_v5, %v4664_v58  ;;  %2845 = vmatpush.bf16.msrb.mxu3 %v3590_v61  ;;  %v3589_v32 = vld [vmem:[%s4974_s26 + $0x30] sm:$0xff]  ;;  %v2501_v49 = vadd.f32 %v2498_v36, %v2486_v56 }
 0x2bd   : > { %v2211_v7 = vadd.f32 %v2208_v28, %v2201_v23  ;;  %v2522_v52 = vadd.f32 %v2519_v15, %v2511_v41  ;;  %v2483_v23 = vld [vmem:[#allocation2 + $0x10] sm:$0x1]  ;;  %v3586_v15 = vld [vmem:[%s4974_s26 + $0x18] sm:$0xff] }
 0x2be   : > { %v2250_v57 = vadd.f32 %v2247_v9, %v2240_v21  ;;  %v2515_v9 = vld [vmem:[#allocation2 + $0xe] sm:$0xff]  ;;  %v2512_v0 = vadd.f32 %v2509_v39, %v2501_v49 }
 0x2bf   : > { %v2221_v42 = vadd.f32 %v2218_v20, %v2211_v7  ;;  %v2532_v28 = vadd.f32 %v2529_v6, %v2522_v52  ;;  %v4680_v20 = vld [vmem:[%s4975_s28] ss:$0 sm:$0xff]  ;;  %v2526_v52 = vld [vmem:[#allocation2 + $0x18] sm:$0x1]  ;;  %s4981_s28 = sld [smem:[#allocation31_spill]] }
 0x2c0   : > { %v2260_v25 = vadd.f32 %v2257_v43, %v2250_v57  ;;  %v2488_v43 = vmul.f32 %v3765_v46, %v2483_v23  ;;  %2846 = vmatpush.bf16.msrb.mxu3 %v3589_v32  ;;  %v2545_v36 = vld [vmem:[#allocation2 + $0x14] sm:$0xff]  ;;  %v2531_v61 = vmul.f32 %v4664_v58, %v2526_v52  ;;  %v4765_v52 = vld [vmem:[%s4972_s3 + $0x10] ss:$0 sm:$0xff] }
 0x2c1   : > { %v2231_v48 = vadd.f32 %v2228_v51, %v2221_v42  ;;  %v2542_v7 = vadd.f32 %v2539_v30, %v2532_v28  ;;  %v2549_v51 = vmul.f32 %v4673_v37, %v2504_v11  ;;  %v2579_v28 = vmul.f32 %v4706_v19, %v2535_v10 }
 0x2c2   : > { %v2263_v18 = vmul.f32 %v4181_v13, %v2260_v25  ;;  %v2550_v39 = vmul.f32 %v4673_v37, %v2545_v36 }
 0x2c3   : > { %v2241_v54 = vadd.f32 %v2238_v60, %v2231_v48  ;;  %v4694_v48 = vld [vmem:[%s4977_s9] ss:$0 sm:$0xff]  ;;  %v3588_v60 = vld [vmem:[%s4974_s26 + $0x28] sm:$0xff]  ;;  %s4978_s9 = sld [smem:[#allocation32_spill]] }
 0x2c4   : > { %v2265_v27 = vpack.c.bf16 %v2263_v18, %v2262_v59  ;;  %v2520_v59 = vmul.f32 %v3768_v3, %v2515_v9  ;;  %v2505_v18 = vld [vmem:[#allocation2 + $0x14] sm:$0x1]  ;;  %2847 = vmatpush.bf16.msrb.mxu3 %v3588_v60 }
 0x2c5   : > { %v2251_v40 = vadd.f32 %v2248_v31, %v2241_v54  ;;  %v2559_v54 = vmul.f32 %v4688_v63, %v2515_v9  ;;  %v4699_v31 = vld [vmem:[%s4972_s3 + $0x8] ss:$0 sm:$0xff]  ;;  %v2536_v9 = vld [vmem:[#allocation2 + $0x1a] sm:$0x1] }
 0x2c6   : > { %2339 = vmatmul.bf16.vlgmr.msrb.gmra.mxu1 %v2265_v27  ;;  %v2552_v27 = vadd.f32 %v2549_v51, %v2542_v7  ;;  %v2569_v56 = vmul.f32 %v4417_v5, %v4699_v31 }
 0x2c7   : > { %v2261_v2 = vadd.f32 %v2258_v33, %v2251_v40  ;;  %v2502_v40 = vadd.f32 %v2499_v47, %v2488_v43  ;;  %v2510_v33 = vmul.f32 %v3767_v34, %v2505_v18 }
 0x2c8   : > { %v2562_v29 = vadd.f32 %v2559_v54, %v2552_v27  ;;  %v4740_v27 = vld [vmem:[%s4972_s3 + $0xc] ss:$0 sm:$0xff] }
 0x2c9   : > { %v2264_v35 = vmul.f32 %v4184_v14, %v2261_v2  ;;  %v2513_v26 = vadd.f32 %v2510_v33, %v2502_v40  ;;  %v3583_v33 = vld [vmem:[%s4974_s26] sm:$0xff] }
 0x2ca   : > { %v2572_v11 = vadd.f32 %v2569_v56, %v2562_v29  ;;  %v4753_v29 = vld [vmem:[%s4972_s3 + $0xe] ss:$0 sm:$0xff] }
 0x2cb   : > { %v2266_v38 = vpack.c.bf16 %v2264_v35, %v2264_v35  ;;  %v3587_v35 = vld [vmem:[%s4974_s26 + $0x20] sm:$0xff] }
 0x2cc   : > { %2848 = vmatpush.bf16.msrb.mxu3 %v3587_v35  ;;  %v2582_v24 = vadd.f32 %v2579_v28, %v2572_v11 }
 0x2d0   : > { %2849 = vmatpush.bf16.msrb.mxu3 %v3586_v15 }
 0x2d6   : > { %2344 = vmatmul.bf16.gmra.mxu1 %v2266_v38  ;;  %v2523_v38 = vadd.f32 %v2520_v59, %v2512_v0  ;;  %v2541_v0 = vmul.f32 %v4669_v62, %v2536_v9 }
 0x2d8   : > { %v2533_v5 = vadd.f32 %v2529_v6, %v2523_v38  ;;  %v3585_v6 = vld [vmem:[%s4974_s26 + $0x10] sm:$0xff] }
 0x2d9   : > { %2850 = vmatpush.bf16.msrb.mxu3 %v3585_v6 }
 0x2da   : > { %v2543_v49 = vadd.f32 %v2540_v16, %v2533_v5 }
 0x2dc   : > { %v2553_v60 = vadd.f32 %v2550_v39, %v2543_v49 }
 0x31d   : > { %v2438_v44 = vpop.f32.mrf.mxu2 }
 0x31e   : > { %v2451_v42 = vmul.f32 %v4680_v20, %v2438_v44  ;;  %v2516_v44 = vld [vmem:[#allocation2 + $0x16] sm:$0x1] }
 0x31f   : > { %v2521_v8 = vmul.f32 %v3768_v3, %v2516_v44  ;;  %v4720_v3 = vld [vmem:[%s4972_s3 + $0xa] ss:$0 sm:$0xff] }
 0x321   : > { %v2524_v30 = vadd.f32 %v2521_v8, %v2513_v26 }
 0x323   : > { %v2534_v43 = vadd.f32 %v2531_v61, %v2524_v30 }
 0x325   : > { %v4654_v1 = vpop.f32.mrf.mxu2  ;;  %v2544_v38 = vadd.f32 %v2541_v0, %v2534_v43 }
 0x326   : > { %v2452_v34 = vmul.f32 %v4680_v20, %v4654_v1 }
 0x32d   : > { %v4658_v53 = vpop.f32.mrf.mxu2 }
 0x32e   : > { %v2453_v58 = vmul.f32 %v4680_v20, %v4658_v53 }
 0x335   : > { %v2445_v55 = vpop.f32.mrf.mxu2 }
 0x343   : > { %v2340_v21 = vpop.f32.mrf.mxu1 }
 0x344   : > { %v2353_v57 = vmul.f32 %v4676_v45, %v2340_v21  ;;  %v2589_v21 = vmul.f32 %v4720_v3, %v2545_v36 }
 0x346   : > { %v2360_v25 = vadd.f32 %v4683_v50, %v2353_v57  ;;  %v4731_v57 = vld [vmem:[%s4972_s3 + $0xb] ss:$0 sm:$0xff]  ;;  %v2592_v18 = vadd.f32 %v2589_v21, %v2582_v24  ;;  %v4773_v24 = vld [vmem:[%s4972_s3 + $0x11] ss:$0 sm:$0xff] }
 0x348   : > { %v2454_v22 = vadd.f32 %v2451_v42, %v2360_v25  ;;  %v3584_v25 = vld [vmem:[%s4974_s26 + $0x8] sm:$0xff] }
 0x349   : > { %2851 = vmatpush.bf16.msrb.mxu3 %v3584_v25  ;;  %v4779_v25 = vld [vmem:[%s4972_s3 + $0x12] ss:$0 sm:$0xff] }
 0x34a   : > { %v2461_v2 = vadd.f32 %v4694_v48, %v2454_v22  ;;  %v4746_v22 = vld [vmem:[%s4972_s3 + $0xd] ss:$0 sm:$0xff] }
 0x34b   : > { %v2342_v46 = vpop.f32.mrf.mxu1 }
 0x34c   : > { %v2464_v17 = vmax.f32 %v2461_v2, 0.0  ;;  %v2354_v4 = vmul.f32 %v4676_v45, %v2342_v46 }
 0x34d   : > { %2852 = vmatpush.bf16.msrb.mxu3 %v3583_v33 }
 0x34e   : > { %v4712_v55 = vmul.f32 %v4178_v12, %v2464_v17  ;;  %v2361_v41 = vadd.f32 %v4683_v50, %v2354_v4 }
 0x350   : > { %2478 = vst [vmem:[#allocation2 + $0x1c] sm:$0xff] %v4712_v55  ;;  %v2455_v1 = vadd.f32 %v2452_v34, %v2361_v41  ;;  %v4757_v34 = vld [vmem:[%s4972_s3 + $0xf] ss:$0 sm:$0xff]  ;;  %v2590_v16 = vmul.f32 %v4720_v3, %v4712_v55 }
 0x352   : > { %v2462_v32 = vadd.f32 %v4694_v48, %v2455_v1 }
 0x353   : > { %v2345_v23 = vpop.f32.mrf.mxu1 }
 0x354   : > { %v2465_v7 = vmax.f32 %v2462_v32, 0.0  ;;  %v2355_v51 = vmul.f32 %v4676_v45, %v2345_v23 }
 0x356   : > { %v4734_v47 = vmul.f32 %v4181_v13, %v2465_v7  ;;  %v2362_v42 = vadd.f32 %v4683_v50, %v2355_v51 }
 0x357   : > { %v2555_v59 = vld [vmem:[#allocation2 + $0x16] sm:$0xff]  ;;  %v2556_v41 = vld [vmem:[#allocation2 + $0x1e] sm:$0x1]  ;;  %v2566_v30 = vld [vmem:[#allocation2 + $0x20] sm:$0x1] }
 0x358   : > { %v2565_v45 = vld [vmem:[#allocation2 + $0x18] sm:$0xff]  ;;  %2479 = vst [vmem:[#allocation2 + $0x24] sm:$0xff] %v4734_v47  ;;  %v2456_v53 = vadd.f32 %v2453_v58, %v2362_v42  ;;  %v2560_v20 = vmul.f32 %v4688_v63, %v2555_v59  ;;  %v2599_v50 = vmul.f32 %v4731_v57, %v2555_v59  ;;  %v2561_v49 = vmul.f32 %v4688_v63, %v2556_v41  ;;  %v2576_v21 = vld [vmem:[#allocation2 + $0x22] sm:$0x1] }
 0x359   : > { %v2575_v54 = vld [vmem:[#allocation2 + $0x1a] sm:$0xff]  ;;  %v2570_v35 = vmul.f32 %v4699_v31, %v2565_v45  ;;  %v2609_v10 = vmul.f32 %v4740_v27, %v2565_v45  ;;  %v2571_v51 = vmul.f32 %v4699_v31, %v2566_v30  ;;  %v2581_v59 = vmul.f32 %v4706_v19, %v2576_v21  ;;  %v2636_v21 = vld [vmem:[#allocation2 + $0x2e] sm:$0x1] }
 0x35a   : > { %v2546_v40 = vld [vmem:[#allocation2 + $0x1c] sm:$0x1]  ;;  %v2463_v62 = vadd.f32 %v4694_v48, %v2456_v53  ;;  %v2563_v2 = vadd.f32 %v2560_v20, %v2553_v60  ;;  %v2602_v46 = vadd.f32 %v2599_v50, %v2592_v18  ;;  %v2580_v4 = vmul.f32 %v4706_v19, %v2575_v54  ;;  %v4785_v53 = vld [vmem:[%s4972_s3 + $0x13] ss:$0 sm:$0xff] }
 0x35b   : > { %v2347_v44 = vpop.f32.mrf.mxu1  ;;  %v2551_v48 = vmul.f32 %v4673_v37, %v2546_v40  ;;  %v2619_v8 = vmul.f32 %v4746_v22, %v2575_v54  ;;  %v2629_v37 = vmul.f32 %v4753_v29, %v4712_v55  ;;  %v2630_v31 = vmul.f32 %v4753_v29, %v4734_v47  ;;  %v4790_v54 = vld [vmem:[%s4972_s3 + $0x14] ss:$0 sm:$0xff] }
 0x35c   : > { %v2466_v56 = vmax.f32 %v2463_v62, 0.0  ;;  %v2573_v17 = vadd.f32 %v2570_v35, %v2563_v2  ;;  %v2612_v26 = vadd.f32 %v2609_v10, %v2602_v46  ;;  %v2669_v19 = vmul.f32 %v4779_v25, %v4734_v47 }
 0x35d   : > { %v2554_v36 = vadd.f32 %v2551_v48, %v2544_v38 }
 0x35e   : > { %v2469_v15 = vmul.f32 %v4184_v14, %v2466_v56  ;;  %v2583_v5 = vadd.f32 %v2580_v4, %v2573_v17  ;;  %v2622_v1 = vadd.f32 %v2619_v8, %v2612_v26  ;;  %v4798_v17 = vld [vmem:[%s4972_s3 + $0x15] ss:$0 sm:$0xff]  ;;  %v4802_v8 = vld [vmem:[%s4972_s3 + $0x16] ss:$0 sm:$0xff] }
 0x35f   : > { %v2595_v11 = vld [vmem:[#allocation2 + $0x1e] sm:$0xff]  ;;  %v2564_v55 = vadd.f32 %v2561_v49, %v2554_v36  ;;  %v2596_v35 = vld [vmem:[#allocation2 + $0x26] sm:$0x1]  ;;  %v2606_v4 = vld [vmem:[#allocation2 + $0x28] sm:$0x1] }
 0x360   : > { %v2605_v28 = vld [vmem:[#allocation2 + $0x20] sm:$0xff]  ;;  %2480 = vst [vmem:[#allocation2 + $0x2c] sm:$0x1] %v2469_v15  ;;  %v2593_v61 = vadd.f32 %v2590_v16, %v2583_v5  ;;  %v2600_v32 = vmul.f32 %v4731_v57, %v2595_v11  ;;  %v2639_v6 = vmul.f32 %v4757_v34, %v2595_v11  ;;  %v2632_v23 = vadd.f32 %v2629_v37, %v2622_v1  ;;  %v2675_v26 = vld [vmem:[#allocation2 + $0x2e] sm:$0xff]  ;;  %v2616_v15 = vld [vmem:[#allocation2 + $0x2a] sm:$0x1] }
 0x361   : > { %v2615_v39 = vld [vmem:[#allocation2 + $0x22] sm:$0xff]  ;;  %v2610_v7 = vmul.f32 %v4740_v27, %v2605_v28  ;;  %v2649_v42 = vmul.f32 %v4765_v52, %v2605_v28  ;;  %v2574_v0 = vadd.f32 %v2571_v51, %v2564_v55  ;;  %v2601_v47 = vmul.f32 %v4731_v57, %v2596_v35  ;;  %v4807_v11 = vld [vmem:[%s4972_s3 + $0x17] ss:$0 sm:$0xff] }
 0x362   : > { %v2603_v9 = vadd.f32 %v2600_v32, %v2593_v61  ;;  %v2586_v58 = vld [vmem:[#allocation2 + $0x24] sm:$0x1]  ;;  %v2642_v43 = vadd.f32 %v2639_v6, %v2632_v23  ;;  %v2620_v60 = vmul.f32 %v4746_v22, %v2615_v39  ;;  %v2659_v18 = vmul.f32 %v4773_v24, %v2615_v39  ;;  %v2685_v6 = vld [vmem:[#allocation2 + $0x30] sm:$0xff]  ;;  %v4814_v39 = vld [vmem:[%s4972_s3 + $0x18] ss:$0 sm:$0xff] }
 0x363   : > { %v2584_v50 = vadd.f32 %v2581_v59, %v2574_v0  ;;  %v2591_v40 = vmul.f32 %v4720_v3, %v2586_v58  ;;  %v2611_v61 = vmul.f32 %v4740_v27, %v2606_v4  ;;  %v2680_v32 = vmul.f32 %v4785_v53, %v2675_v26  ;;  %v2695_v58 = vld [vmem:[#allocation2 + $0x32] sm:$0xff] }
 0x364   : > { %v2613_v63 = vadd.f32 %v2610_v7, %v2603_v9  ;;  %v2652_v45 = vadd.f32 %v2649_v42, %v2642_v43  ;;  %v2621_v23 = vmul.f32 %v4746_v22, %v2616_v15  ;;  %v2719_v42 = vmul.f32 %v4807_v11, %v2675_v26  ;;  %v4837_v26 = vld [vmem:[%s4972_s3 + $0x1b] ss:$0 sm:$0xff] }
 0x365   : > { %v2594_v41 = vadd.f32 %v2591_v40, %v2584_v50  ;;  %v2690_v22 = vmul.f32 %v4790_v54, %v2685_v6  ;;  %v2700_v40 = vmul.f32 %v4798_v17, %v2695_v58 }
 0x366   : > { %v2623_v20 = vadd.f32 %v2620_v60, %v2613_v63  ;;  %v2662_v2 = vadd.f32 %v2659_v18, %v2652_v45  ;;  %v4822_v63 = vld [vmem:[%s4972_s3 + $0x19] ss:$0 sm:$0xff]  ;;  %v2646_v60 = vld [vmem:[#allocation2 + $0x30] sm:$0x1]  ;;  %v2641_v45 = vmul.f32 %v4757_v34, %v2636_v21 }
 0x367   : > { %v2635_v62 = vld [vmem:[#allocation2 + $0x26] sm:$0xff]  ;;  %v2604_v30 = vadd.f32 %v2601_v47, %v2594_v41  ;;  %v2705_v18 = vld [vmem:[#allocation2 + $0x34] sm:$0xff] }
 0x368   : > { %v2645_v33 = vld [vmem:[#allocation2 + $0x28] sm:$0xff]  ;;  %v2633_v38 = vadd.f32 %v2630_v31, %v2623_v20  ;;  %v2640_v44 = vmul.f32 %v4757_v34, %v2635_v62  ;;  %v2672_v10 = vadd.f32 %v2669_v19, %v2662_v2  ;;  %v2679_v56 = vmul.f32 %v4785_v53, %v2635_v62  ;;  %v2656_v31 = vld [vmem:[#allocation2 + $0x32] sm:$0x1]  ;;  %v2715_v62 = vld [vmem:[#allocation2 + $0x36] sm:$0xff] }
 0x369   : > { %v2655_v46 = vld [vmem:[#allocation2 + $0x2a] sm:$0xff]  ;;  %v2650_v48 = vmul.f32 %v4765_v52, %v2645_v33  ;;  %v2689_v36 = vmul.f32 %v4790_v54, %v2645_v33  ;;  %v2614_v55 = vadd.f32 %v2611_v61, %v2604_v30  ;;  %v4829_v33 = vld [vmem:[%s4972_s3 + $0x1a] ss:$0 sm:$0xff]  ;;  %v2651_v19 = vmul.f32 %v4765_v52, %v2646_v60  ;;  %v2676_v41 = vld [vmem:[#allocation2 + $0x36] sm:$0x1] }
 0x36a   : > { %v2643_v3 = vadd.f32 %v2640_v44, %v2633_v38  ;;  %v2665_v5 = vld [vmem:[#allocation2 + $0x2c] sm:$0xff]  ;;  %v2682_v16 = vadd.f32 %v2679_v56, %v2672_v10  ;;  %v2660_v37 = vmul.f32 %v4773_v24, %v2655_v46  ;;  %v2699_v57 = vmul.f32 %v4798_v17, %v2655_v46  ;;  %v2666_v44 = vld [vmem:[#allocation2 + $0x34] sm:$0x1]  ;;  %v2735_v52 = vld [vmem:[#allocation2 + $0x3a] sm:$0xff] }
 0x36b   : > { %v2626_v28 = vld [vmem:[#allocation2 + $0x2c] sm:$0x1]  ;;  %v2670_v7 = vmul.f32 %v4779_v25, %v2665_v5  ;;  %v2709_v43 = vmul.f32 %v4802_v8, %v2665_v5  ;;  %v2624_v59 = vadd.f32 %v2621_v23, %v2614_v55  ;;  %v2739_v38 = vmul.f32 %v4822_v63, %v2695_v58  ;;  %v3598_v55 = vld [vmem:[%s4978_s9 + $0x38] sm:$0xff]  ;;  %v3597_v60 = vld [vmem:[%s4978_s9 + $0x30] sm:$0xff] }
 0x36c   : > { %v2653_v1 = vadd.f32 %v2650_v48, %v2643_v3  ;;  %v2692_v49 = vadd.f32 %v2689_v36, %v2682_v16  ;;  %v2631_v51 = vmul.f32 %v4753_v29, %v2626_v28  ;;  %v2729_v29 = vmul.f32 %v4814_v39, %v2685_v6  ;;  %v2725_v3 = vld [vmem:[#allocation2 + $0x38] sm:$0xff]  ;;  %2959 = vmatpush.bf16.msra.mxu0 %v3598_v55 }
 0x36d   : > { %v2710_v46 = vmul.f32 %v4802_v8, %v2705_v18  ;;  %v2661_v56 = vmul.f32 %v4773_v24, %v2656_v31  ;;  %v2720_v4 = vmul.f32 %v4807_v11, %v2715_v62  ;;  %v2749_v15 = vmul.f32 %v4829_v33, %v2705_v18  ;;  %v2686_v28 = vld [vmem:[#allocation2 + $0x38] sm:$0x1]  ;;  %v2706_v58 = vld [vmem:[#allocation2 + $0x3c] sm:$0x1]  ;;  %3607 = vmatpush.bf16.msra.mxu2 %v3598_v55  ;;  %v2726_v31 = vld [vmem:[#allocation2 + $0x40] sm:$0x1] }
 0x36e   : > { %v2663_v9 = vadd.f32 %v2660_v37, %v2653_v1  ;;  %v2702_v27 = vadd.f32 %v2699_v57, %v2692_v49  ;;  %v2634_v2 = vadd.f32 %v2631_v51, %v2624_v59  ;;  %v2671_v16 = vmul.f32 %v4779_v25, %v2666_v44  ;;  %v2745_v37 = vld [vmem:[#allocation2 + $0x3c] sm:$0xff]  ;;  %v2696_v57 = vld [vmem:[#allocation2 + $0x3a] sm:$0x1]  ;;  %v2746_v44 = vld [vmem:[#allocation2 + $0x44] sm:$0x1] }
 0x36f   : > { %v2730_v24 = vmul.f32 %v4814_v39, %v2725_v3  ;;  %v2681_v61 = vmul.f32 %v4785_v53, %v2676_v41  ;;  %v2759_v6 = vmul.f32 %v4837_v26, %v2715_v62  ;;  %v3793_v49 = vld [vmem:[%s4972_s3 + $0x1c] ss:$0 sm:$0xff]  ;;  %v2755_v25 = vld [vmem:[#allocation2 + $0x3e] sm:$0xff]  ;;  %v2750_v51 = vmul.f32 %v4829_v33, %v2745_v37 }
 0x370   : > { %v2673_v0 = vadd.f32 %v2670_v7, %v2663_v9  ;;  %v2712_v20 = vadd.f32 %v2709_v43, %v2702_v27  ;;  %v2644_v10 = vadd.f32 %v2641_v45, %v2634_v2  ;;  %v2691_v7 = vmul.f32 %v4790_v54, %v2686_v28  ;;  %v2766_v43 = vld [vmem:[#allocation2 + $0x40] sm:$0xff]  ;;  %v2716_v59 = vld [vmem:[#allocation2 + $0x3e] sm:$0x1]  ;;  %2960 = vmatpush.bf16.msra.mxu0 %v3597_v60 }
 0x371   : > { %v2711_v54 = vmul.f32 %v4802_v8, %v2706_v58  ;;  %v2721_v62 = vmul.f32 %v4807_v11, %v2716_v59  ;;  %3608 = vmatpush.bf16.msra.mxu2 %v3597_v60  ;;  %v2756_v8 = vld [vmem:[#allocation2 + $0x46] sm:$0x1] }
 0x372   : > { %v2683_v50 = vadd.f32 %v2680_v32, %v2673_v0  ;;  %v2722_v35 = vadd.f32 %v2719_v42, %v2712_v20  ;;  %v2654_v5 = vadd.f32 %v2651_v19, %v2644_v10  ;;  %v2740_v32 = vmul.f32 %v4822_v63, %v2735_v52  ;;  %v3595_v28 = vld [vmem:[%s4978_s9 + $0x20] sm:$0xff] }
 0x373   : > { %v2701_v42 = vmul.f32 %v4798_v17, %v2696_v57  ;;  %v2760_v0 = vmul.f32 %v4837_v26, %v2755_v25  ;;  %v2736_v17 = vld [vmem:[#allocation2 + $0x42] sm:$0x1] }
 0x374   : > { %v2693_v34 = vadd.f32 %v2690_v22, %v2683_v50  ;;  %v2732_v48 = vadd.f32 %v2729_v29, %v2722_v35  ;;  %v2664_v30 = vadd.f32 %v2661_v56, %v2654_v5  ;;  %v2770_v22 = vmul.f32 %v3793_v49, %v2725_v3  ;;  %v3591_v37 = vld [vmem:[%s4978_s9] sm:$0xff] }
 0x375   : > { %v2771_v29 = vmul.f32 %v3793_v49, %v2766_v43  ;;  %v2741_v10 = vmul.f32 %v4822_v63, %v2736_v17  ;;  %v2751_v3 = vmul.f32 %v4829_v33, %v2746_v44  ;;  %v3596_v33 = vld [vmem:[%s4978_s9 + $0x28] sm:$0xff]  ;;  %v3601_v17 = vld [vmem:[%s4956_s1 + $0x10] sm:$0xff]  ;;  %v3599_v44 = vld [vmem:[%s4956_s1] sm:$0xff] }
 0x376   : > { %v2703_v47 = vadd.f32 %v2700_v40, %v2693_v34  ;;  %v2742_v36 = vadd.f32 %v2739_v38, %v2732_v48  ;;  %v2674_v9 = vadd.f32 %v2671_v16, %v2664_v30  ;;  %v2731_v38 = vmul.f32 %v4814_v39, %v2726_v31  ;;  %v2767_v39 = vld [vmem:[#allocation2 + $0x48] sm:$0x1]  ;;  %2961 = vmatpush.bf16.msra.mxu0 %v3596_v33  ;;  %v3794_v30 = vld [vmem:[%s4979_s8] ss:$0 sm:$0xff]  ;;  %s4982_s8 = sld [smem:[#allocation33_spill]] }
 0x377   : > { %3609 = vmatpush.bf16.msra.mxu2 %v3596_v33  ;;  %v3604_v31 = vld [vmem:[%s4956_s1 + $0x28] sm:$0xff] }
 0x378   : > { %v2713_v1 = vadd.f32 %v2710_v46, %v2703_v47  ;;  %v2752_v21 = vadd.f32 %v2749_v15, %v2742_v36  ;;  %v2684_v53 = vadd.f32 %v2681_v61, %v2674_v9  ;;  %v2761_v47 = vmul.f32 %v4837_v26, %v2756_v8  ;;  %v3594_v26 = vld [vmem:[%s4978_s9 + $0x18] sm:$0xff]  ;;  %v3795_v61 = vld [vmem:[%s4980_s4] ss:$0 sm:$0xff]  ;;  %s1099_s4 = sand.u32 1, %s3870_s0  }
 0x379   : > { %v2772_v15 = vmul.f32 %v3793_v49, %v2767_v39  ;;  %v3796_v9 = vld [vmem:[%s4981_s28] ss:$0 sm:$0xff]  ;;  %s3101_s28 = scalar_lea.hbm %s4114_s16, %s4139_s5  ;;  %s3834_s5 = scalar_lea.hbm %s4114_s16, 2 }
 0x37a   : > { %v2723_v23 = vadd.f32 %v2720_v4, %v2713_v1  ;;  %v2762_v18 = vadd.f32 %v2759_v6, %v2752_v21  ;;  %v2694_v20 = vadd.f32 %v2691_v7, %v2684_v53  ;;  %2962 = vmatpush.bf16.msra.mxu0 %v3595_v28  ;;  %v3593_v1 = vld [vmem:[%s4978_s9 + $0x10] sm:$0xff]  ;;  %s3105_s3 = sshll.u32 %s3101_s28, 4  ;;  %s3106_s3 = int_to_ptr.hbm [resolvable:$true] %s3105_s3 }
 0x37b   : > { %3610 = vmatpush.bf16.msra.mxu2 %v3595_v28  ;;  %s3828_s10 = sshra.s32 %s3106_s3, 4  ;;  %s3829_s10 = int_to_ptr.hbm [resolvable:$true] %s3828_s10 }
 0x37c   : > { %v2733_v27 = vadd.f32 %v2730_v24, %v2723_v23  ;;  %v2704_v40 = vadd.f32 %v2701_v42, %v2694_v20  ;;  %v2773_v19 = vadd.f32 %v2770_v22, %v2762_v18  ;;  %v3592_v24 = vld [vmem:[%s4978_s9 + $0x8] sm:$0xff]  ;;  %s3093_s9 = scalar_lea.sflag [#allocation6], %s1099_s4  ;;  %s3830_s12 = scalar_lea.hbm %s3829_s10, 1 }
 0x37d   : > { %p3831_p2 = scmp.ne.s32.totalorder %s3829_s10, %s3830_s12  ;;  %p3835_p5 = scmp.lt.s32.totalorder %s3829_s10, %s4114_s16 }
 0x37e   : > { %v2743_v45 = vadd.f32 %v2740_v32, %v2733_v27  ;;  %v2714_v35 = vadd.f32 %v2711_v54, %v2704_v40  ;;  %v2776_v56 = vmul.f32 %v4178_v12, %v2773_v19  ;;  %2963 = vmatpush.bf16.msra.mxu0 %v3594_v26  ;;  %v3602_v40 = vld [vmem:[%s4956_s1 + $0x18] sm:$0xff]  ;;  %p3836_p6 = scmp.lt.s32.totalorder %s3834_s5, %s3830_s12 }
 0x37f   : > { %3611 = vmatpush.bf16.msra.mxu2 %v3594_v26  ;;  %p3832_p3 = pnand %p3831_p2, %p4156_p10 }
 0x380   : > { %v2753_v50 = vadd.f32 %v2750_v51, %v2743_v45  ;;  %v2724_v46 = vadd.f32 %v2721_v62, %v2714_v35  ;;  %v3919_v35 = vmov 17.0   ;;  %p3837_p7 = por %p3836_p6, %p3835_p5 }
 0x381   : > { %3799 = vrcp.f32 %v3919_v35  ;;  %p3833_p4 = pneg %p3832_p3 }
 0x382   : > { %v2763_v2 = vadd.f32 %v2760_v0, %v2753_v50  ;;  %v2734_v11 = vadd.f32 %v2731_v38, %v2724_v46  ;;  %2964 = vmatpush.bf16.msra.mxu0 %v3593_v1  ;;  %v3603_v50 = vld [vmem:[%s4956_s1 + $0x20] sm:$0xff] }
 0x383   : > { %3612 = vmatpush.bf16.msra.mxu2 %v3593_v1  ;;  %v3798_v46 = vld [vmem:[%s4098_s20] ss:$0 sm:$0xff]  ;;  %p3838_p8 = pnand %p3837_p7, %p3833_p4 }
 0x384   : > { %v2774_v34 = vadd.f32 %v2771_v29, %v2763_v2  ;;  %v2744_v41 = vadd.f32 %v2741_v10, %v2734_v11  ;;  %v3797_v2 = vld [vmem:[%s4982_s8] ss:$0 sm:$0xff]  ;;  %s1100_s8 = scalar_lea.vmem [#allocation5], %s1099_s4 }
 0x386   : > { %v2777_v4 = vmul.f32 %v4181_v13, %v2774_v34  ;;  %v2754_v52 = vadd.f32 %v2751_v3, %v2744_v41  ;;  %2965 = vmatpush.bf16.msra.mxu0 %v3592_v24 }
 0x387   : > { %3613 = vmatpush.bf16.msra.mxu2 %v3592_v24  ;;  %v3800_v8 = vpop.eup %3799 }
 0x388   : > { %v2779_v48 = vpack.c.bf16 %v2777_v4, %v2776_v56  ;;  %v2764_v63 = vadd.f32 %v2761_v47, %v2754_v52  ;;  %v3005_v41 = vmul.f32 17.0, %v3800_v8  ;;  %vm3009_vm4 = vweird.f32 %v3800_v8 }
 0x38a   : > { %2853 = vmatmul.bf16.vlgmr.msrb.gmra.mxu3 %v2779_v48  ;;  %v2775_v5 = vadd.f32 %v2772_v15, %v2764_v63  ;;  %2966 = vmatpush.bf16.msra.mxu0 %v3591_v37  ;;  %v3006_v15 = vsub.f32 1.0, %v3005_v41 }
 0x38b   : > { %3614 = vmatpush.bf16.msra.mxu2 %v3591_v37 }
 0x38c   : > { %v2778_v16 = vmul.f32 %v4184_v14, %v2775_v5  ;;  %v3007_v33 = vmul.f32 %v3800_v8, %v3006_v15 }
 0x38e   : > { %v2780_v36 = vpack.c.bf16 %v2778_v16, %v2778_v16  ;;  %v3008_v1 = vadd.f32 %v3800_v8, %v3007_v33 }
 0x39a   : > { %2858 = vmatmul.bf16.gmra.mxu3 %v2780_v36 }
 0x40d   : > { %v2854_v32 = vpop.f32.mrf.mxu3 }
 0x40e   : > { %v2867_v6 = vmul.f32 %v3794_v30, %v2854_v32 }
 0x410   : > { %v2874_v49 = vadd.f32 %v3795_v61, %v2867_v6 }
 0x412   : > { %v2877_v57 = vmax.f32 %v2874_v49, 0.0  ;;  %v3029_v49 = vld [vmem:[%s4109_s30] sm:$0x1] }
 0x414   : > { %v2880_v25 = vmul.f32 %v4178_v12, %v2877_v57 }
 0x415   : > { %v2856_v23 = vpop.f32.mrf.mxu3 }
 0x416   : > { %v2868_v21 = vmul.f32 %v3794_v30, %v2856_v23  ;;  %v2887_v51 = vmul.f32 %v3796_v9, %v2880_v25 }
 0x418   : > { %v2875_v7 = vadd.f32 %v3795_v61, %v2868_v21  ;;  %v2890_v42 = vmul.f32 %v4178_v12, %v2887_v51  ;;  %v3606_v12 = vld [vmem:[%s4956_s1 + $0x38] sm:$0xff] }
 0x419   : > { %3078 = vmatpush.bf16.msra.mxu1 %v3606_v12 }
 0x41a   : > { %v2878_v55 = vmax.f32 %v2875_v7, 0.0 }
 0x41c   : > { %v2881_v58 = vmul.f32 %v4181_v13, %v2878_v55 }
 0x41d   : > { %v2859_v27 = vpop.f32.mrf.mxu3 }
 0x41e   : > { %v2888_v43 = vmul.f32 %v3796_v9, %v2881_v58  ;;  %v2869_v53 = vmul.f32 %v3794_v30, %v2859_v27  ;;  %v3010_v30 = vsel %vm3009_vm4, %v3800_v8, %v3008_v1 }
 0x420   : > { %v2891_v60 = vmul.f32 %v4181_v13, %v2888_v43  ;;  %v2876_v0 = vadd.f32 %v3795_v61, %v2869_v53  ;;  %v3605_v13 = vld [vmem:[%s4956_s1 + $0x30] sm:$0xff] }
 0x421   : > { %3079 = vmatpush.bf16.msra.mxu1 %v3605_v13 }
 0x422   : > { %v2879_v22 = vmax.f32 %v2876_v0, 0.0  ;;  %v2893_v59 = vpack.c.bf16 %v2891_v60, %v2890_v42 }
 0x424   : > { %v2882_v45 = vmul.f32 %v4184_v14, %v2879_v22  ;;  %2967 = vmatmul.bf16.vlgmr.msra.gmra.mxu0 %v2893_v59 }
 0x425   : > { %v2861_v18 = vpop.f32.mrf.mxu3  ;;  %3080 = vmatpush.bf16.msra.mxu1 %v3604_v31 }
 0x426   : > { %v2889_v20 = vmul.f32 %v3796_v9, %v2882_v45 }
 0x428   : > { %v2892_v54 = vmul.f32 %v4184_v14, %v2889_v20  ;;  %v3600_v14 = vld [vmem:[%s4956_s1 + $0x8] sm:$0xff]  ;;  %s3103_s1 = sshll.u32 %s1100_s8, 4  ;;  %s3104_s1 = int_to_ptr.vmem [resolvable:$true] %s3103_s1 }
 0x429   : > { %3081 = vmatpush.bf16.msra.mxu1 %v3603_v50 }
 0x42a   : > { %v2894_v29 = vpack.c.bf16 %v2892_v54, %v2892_v54 }
 0x42c   : > { %2972 = vmatmul.bf16.vlgmr.msra.gmra.mxu2 %v2894_v29 }
 0x42d   : > { %3082 = vmatpush.bf16.msra.mxu1 %v3602_v40 }
 0x431   : > { %3083 = vmatpush.bf16.msra.mxu1 %v3601_v17 }
 0x435   : > { %3084 = vmatpush.bf16.msra.mxu1 %v3600_v14 }
 0x439   : > { %3085 = vmatpush.bf16.msra.mxu1 %v3599_v44 }
 0x4a1   : > { %v2968_v62 = vpop.f32.mrf.mxu0 }
 0x4a2   : > { %v2981_v34 = vmul.f32 %v3797_v2, %v2968_v62 }
 0x4a4   : > { %v2988_v56 = vadd.f32 %v3798_v46, %v2981_v34 }
 0x4a6   : > { %v2991_v47 = vmax.f32 %v2988_v56, 0.0 }
 0x4a9   : > { %v2970_v19 = vpop.f32.mrf.mxu0 }
 0x4aa   : > { %v2982_v38 = vmul.f32 %v3797_v2, %v2970_v19 }
 0x4ac   : > { %v2989_v10 = vadd.f32 %v3798_v46, %v2982_v38 }
 0x4ae   : > { %v2992_v3 = vmax.f32 %v2989_v10, 0.0 }
 0x4af   : > { %v2973_v4 = vpop.f32.mrf.mxu2 }
 0x4b0   : > { %v2983_v11 = vmul.f32 %v3797_v2, %v2973_v4  ;;  %v2994_v52 = vadd.f32 %v2992_v3, %v2991_v47 }
 0x4b2   : > { %v2990_v48 = vadd.f32 %v3798_v46, %v2983_v11 }
 0x4b4   : > { %v2993_v39 = vmax.f32 %v2990_v48, 0.0 }
 0x4b6   : > { %v2996_v63 = vsel %vm2995_vm3, %v2993_v39, 0.0 }
 0x4b7   : > { %v2997_v5 = vadd.f32 %v2996_v63, %v2994_v52  ;;  %v2975_v16 = vpop.f32.mrf.mxu2 }
 0x4b9   : > { %v2998_v36 = vrot.slane %v2997_v5, 4 }
 0x4bb   : > { %v2999_v28 = vadd.f32 %v2998_v36, %v2997_v5 }
 0x4bd   : > { %v3000_v26 = vrot.slane %v2999_v28, 2 }
 0x4bf   : > { %v3001_v24 = vadd.f32 %v3000_v26, %v2999_v28 }
 0x4c1   : > { %v3002_v37 = vrot.slane %v3001_v24, 1 }
 0x4c3   : > { %v3003_v61 = vadd.f32 %v3002_v37, %v3001_v24 }
 0x4c5   : > { %v3011_v32 = vmul.f32 %v3010_v30, %v3003_v61 }
 0x4c7   : > { %v3012_v6 = vpack.c.bf16 %v3011_v32, %v3011_v32 }
 0x4c9   : > { %3086 = vmatmul.bf16.vlgmr.msra.gmra.mxu1 %v3012_v6 }
 0x546   : > { %v3087_v57 = vpop.f32.mrf.mxu1 }
 0x547   : > { %v3088_v23 = vadd.f32 %v3087_v57, %v3029_v49 }
 0x549   : > { %3091 = vst [vmem:[%s1100_s8] sm:$0x1] %v3088_v23 }
 0x54a   : > { %3841 = shalt.err (!%p3838_p8)
}
 0x54b   : > { %3616 = dma.vmem_to_hbm [thread:$0]  (%p4156_p10), %s3104_s1, 16, %s3106_s3, %s3093_s9  }
 0x54e   : > { %v3089_v21 = vpop.f32.mrf.mxu1 }
 0x54f PF: > { %p3622_p9 = scmp.ge.s32.totalorder %s3878_s15, 2  ;;  %s3117_s4 = sand.u32 1, %s3866_s27  }
 0x550   : > { %s3118_s28 = scalar_lea.sflag [#allocation6], %s3117_s4 }
 0x551   : > { %p3619_p12 = pnand %p3622_p9, %p4160_p11 }
 0x553   : > { %p3620_p13 = pneg %p3619_p12 }
 0x555   : > { %3861 = dma.done.wait (%p3620_p13), %s3118_s28, 16  }
 0x556   : > { %3863 = vsyncadd (%p3620_p13), %s3118_s28, 4294967280  ;;  %p93_p0 = scmp.ge.s32.totalorder %s4143_s22, 4   ;;  %s4983_s27 = smov %s3870_s0 }
 0x557   : > { %s4984_s0 = smov %s3874_s6  ;;  %s4985_s6 = smov %s4154_s2 }
 0x558   : > { %s4986_s15 = smov %s4143_s22  ;;  %95 = sbr.rel (!%p93_p0) target bundleno = 78 (0x4e), region = 236 }
 0x55d   :  { %3123 = vsyncpa [#allocation6], 1 }
 0x55e   :  { %3125 = vsyncpa [#allocation6 + $0x1], 1 }

</bundles_post_ra>
